<compile_context>
chip_gen: v5e
topology: v5e:2x2
jax: 0.10.0
libtpu: 0.0.40
codegen_flags: <defaults>
</compile_context>

<pallas_src>
import functools

import jax
import jax.numpy as jnp
from jax.experimental import pallas as pl
from jax.experimental.pallas import tpu as pltpu


def _projection_head_kernel(num_x, *refs):
    """Fused ProjectionHead: LayerNorm(fc(gelu(proj(x))) + proj(x)).

    refs = (x_0, ..., x_{num_x-1}, w1, w2, consts, out)
      x_i    : (tm, emb)   row tiles; summed before the first matmul (fuses the
               `expression + centers_x + centers_y` add for the spot path)
      w1     : (emb, proj)  bf16, fully resident
      w2     : (proj, proj) bf16, fully resident
      consts : (4, proj) f32 -- rows: b1, b2, ln_gamma, ln_beta
      out    : (tm, proj)
    """
    x_refs = refs[:num_x]
    w1_ref, w2_ref, c_ref, o_ref = refs[num_x:]

    # Sum the row inputs in f32 (cheap VPU work, hides under the matmuls).
    x = x_refs[0][...]
    for r in x_refs[1:]:
        x = x + r[...]

    c = c_ref[...].astype(jnp.float32)
    b1, b2, g, beta = c[0:1, :], c[1:2, :], c[2:3, :], c[3:4, :]

    # Linear 1 on the MXU: bf16 operands, f32 accumulation.
    projected = jnp.dot(x.astype(w1_ref.dtype), w1_ref[...],
                        preferred_element_type=jnp.float32) + b1

    # Exact GELU (PyTorch nn.GELU() default): 0.5 * x * (1 + erf(x / sqrt(2))).
    h = 0.5 * projected * (1.0 + jax.lax.erf(projected * jnp.float32(0.7071067811865476)))

    # Linear 2 on the MXU: bf16 operands, f32 accumulation.
    fc = jnp.dot(h.astype(w2_ref.dtype), w2_ref[...],
                 preferred_element_type=jnp.float32) + b2

    # Dropout(p=0.0) == identity; residual add with the first projection.
    y = fc + projected

    # LayerNorm over projection_dim, single-pass stats (biased variance, eps=1e-5).
    mean = jnp.mean(y, axis=-1, keepdims=True)
    mean_sq = jnp.mean(y * y, axis=-1, keepdims=True)
    var = mean_sq - mean * mean
    y = (y - mean) * jax.lax.rsqrt(var + jnp.float32(1e-5))
    y = y * g + beta

    o_ref[...] = y.astype(o_ref.dtype)


def _round_up(x, m):
    return (x + m - 1) // m * m


@functools.partial(jax.jit, static_argnames=("tm", "out_dtype"))
def projection_head(x, w1, b1, w2, b2, gamma, beta, *, extras=(), tm=512, out_dtype=None):
    """ProjectionHead forward.  (x + sum(extras)): [N, emb] -> [N, proj]."""
    N, emb = x.shape
    proj = w1.shape[1]
    out_dtype = x.dtype if out_dtype is None else out_dtype

    # MXU is bf16-native on v5e/v6e/v7x; accumulation stays f32 in-kernel.
    w1_lo = w1.astype(jnp.bfloat16)
    w2_lo = w2.astype(jnp.bfloat16)
    # Pack the four (proj,) vectors into one (4, proj) block: one padded VMEM tile
    # and one DMA descriptor instead of four.
    consts = jnp.stack([b1, b2, gamma, beta]).astype(jnp.float32)

    # Row tile: large (amortizes ~0.35us/step pipeline overhead, keeps the MXU full),
    # clamped (a) to the 8-rounded row count and (b) so the grid has >= 2 balanced row
    # blocks, letting dimension_semantics=("parallel",) use both v7x TensorCores
    # (no effect on single-TC v5e/v6e).
    tm = max(8, min(tm, _round_up(N, 8)))
    if N > 8:
        tm = min(tm, _round_up(pl.cdiv(N, 2), 8))
    grid = (pl.cdiv(N, tm),)  # trailing N % tm rows handled by a masked last block

    x_inputs = (x,) + tuple(extras)
    num_x = len(x_inputs)

    row_spec = pl.BlockSpec((tm, emb), lambda i: (i, 0))
    in_specs = [row_spec] * num_x + [
        pl.BlockSpec((emb, proj), lambda i: (0, 0)),    # W1 (constant across grid)
        pl.BlockSpec((proj, proj), lambda i: (0, 0)),   # W2 (constant across grid)
        pl.BlockSpec((4, proj), lambda i: (0, 0)),      # [b1; b2; gamma; beta]
    ]
    # NOTE: the constant blocks above total < 1 MiB at these shapes, so the default
    # double-buffering is left in place; with production-size weights, single-buffer them
    # (pipeline_mode=pl.Buffered(1)) to halve their resident VMEM.

    cost = pl.CostEstimate(
        flops=2 * N * emb * proj + 2 * N * proj * proj + (num_x - 1) * N * emb,
        transcendentals=N * proj,  # erf
        bytes_accessed=sum(a.size * a.dtype.itemsize for a in x_inputs)
        + w1_lo.size * w1_lo.dtype.itemsize
        + w2_lo.size * w2_lo.dtype.itemsize
        + consts.size * consts.dtype.itemsize
        + N * proj * jnp.dtype(out_dtype).itemsize,
    )

    return pl.pallas_call(
        functools.partial(_projection_head_kernel, num_x),
        out_shape=jax.ShapeDtypeStruct((N, proj), out_dtype),
        grid_spec=pltpu.PrefetchScalarGridSpec(
            num_scalar_prefetch=0,
            grid=grid,
            in_specs=in_specs,
            out_specs=pl.BlockSpec((tm, proj), lambda i: (i, 0)),
        ),
        # vmem_limit_bytes left at the compiler default: the whole working set
        # (double-buffered bf16 x/out tiles + resident weights) is a few MiB,
        # far below even v7x's 64 MiB per-TC VMEM.
        compiler_params=pltpu.CompilerParams(
            dimension_semantics=("parallel",),
        ),
        cost_estimate=cost,
    )(*x_inputs, w1_lo, w2_lo, consts)


def soft_cross_entropy(logits, targets):
    # torch.nn.functional.cross_entropy with probability targets, reduction='mean'.
    logp = jax.nn.log_softmax(logits, axis=-1)
    return jnp.mean(jnp.sum(-targets * logp, axis=-1))


def mclstexp_mlp_forward(batch, params, temperature):
    """mclSTExp_MLP.forward, with the DenseNet image encoder replaced by precomputed features."""
    # TODO(synk): ImageEncoder (DenseNet121 backbone + adaptive_avg_pool2d) not translated;
    # batch['image_features'] must already be the pooled CNN features.
    image_features = batch["image_features"]
    pos = batch["position"].astype(jnp.int32)

    # Positional nn.Embedding gathers stay as XLA ops; the `expression + cx + cy` add is
    # fused into the spot projection kernel (no materialized [N, genes] sum in HBM).
    centers_x = jnp.take(params["x_embed"], pos[:, 0], axis=0)
    centers_y = jnp.take(params["y_embed"], pos[:, 1], axis=0)

    # bf16 embeddings: halves kernel writeback + the cosine-similarity matmul's reads,
    # and gives that matmul bf16 MXU operands too (f32 accumulation below).
    image_embeddings = projection_head(image_features, *params["image_projection"],
                                       out_dtype=jnp.bfloat16)
    spot_embeddings = projection_head(batch["expression"], *params["spot_projection"],
                                      extras=(centers_x, centers_y), out_dtype=jnp.bfloat16)

    cos_smi = jnp.dot(spot_embeddings, image_embeddings.T,
                      preferred_element_type=jnp.float32) / temperature
    label = jnp.eye(cos_smi.shape[0], cos_smi.shape[1], dtype=cos_smi.dtype)
    spots_loss = soft_cross_entropy(cos_smi, label)
    images_loss = soft_cross_entropy(cos_smi.T, label.T)
    loss = (images_loss + spots_loss) / 2.0
    return loss, (image_embeddings, spot_embeddings)


def init_projection_head(key, embedding_dim, projection_dim, dtype=jnp.float32):
    k1, k2, k3, k4, k5, k6 = jax.random.split(key, 6)
    s1 = 1.0 / (embedding_dim ** 0.5)
    s2 = 1.0 / (projection_dim ** 0.5)
    w1 = jax.random.uniform(k1, (embedding_dim, projection_dim), dtype, -s1, s1)
    b1 = jax.random.uniform(k2, (projection_dim,), dtype, -s1, s1)
    w2 = jax.random.uniform(k3, (projection_dim, projection_dim), dtype, -s2, s2)
    b2 = jax.random.uniform(k4, (projection_dim,), dtype, -s2, s2)
    gamma = 1.0 + 0.1 * jax.random.normal(k5, (projection_dim,), dtype)
    beta = 0.1 * jax.random.normal(k6, (projection_dim,), dtype)
    return (w1, b1, w2, b2, gamma, beta)


def _projection_head_ref(x, w1, b1, w2, b2, gamma, beta):
    projected = jnp.dot(x, w1) + b1
    h = 0.5 * projected * (1.0 + jax.lax.erf(projected * 0.7071067811865476))
    fc = jnp.dot(h, w2) + b2
    y = fc + projected
    mean = jnp.mean(y, axis=-1, keepdims=True)
    var = jnp.mean(jnp.square(y - mean), axis=-1, keepdims=True)
    return (y - mean) * jax.lax.rsqrt(var + 1e-5) * gamma + beta


if __name__ == "__main__":
    # Small but TPU-friendly demo shapes: projection_dim=256 matches the real model and
    # fills the 256-wide v6e/v7x MXU; n=300 is deliberately NOT a multiple of the row
    # tile so the cdiv + masked-last-block path and the 2-row-block (2-TensorCore) split
    # are both exercised.  (Real model: image_embedding=1024 DenseNet121 features,
    # spot_embedding = #genes.)
    n = 300
    image_embedding = 512
    spot_embedding = 256
    projection_dim = 256
    temperature = 1.0

    key = jax.random.PRNGKey(0)
    k_img, k_expr, k_pos, k_xt, k_yt, k_ip, k_sp = jax.random.split(key, 7)

    batch = {
        # Stand-in for ImageEncoder(batch['image']) output (DenseNet not translated).
        "image_features": jax.random.normal(k_img, (n, image_embedding), jnp.float32),
        "expression": jax.random.normal(k_expr, (n, spot_embedding), jnp.float32),
        "position": jax.random.randint(k_pos, (n, 2), 0, 65536, dtype=jnp.int32),
    }

    params = {
        "x_embed": 0.02 * jax.random.normal(k_xt, (65536, spot_embedding), jnp.float32),
        "y_embed": 0.02 * jax.random.normal(k_yt, (65536, spot_embedding), jnp.float32),
        "image_projection": init_projection_head(k_ip, image_embedding, projection_dim),
        "spot_projection": init_projection_head(k_sp, spot_embedding, projection_dim),
    }

    loss, (img_emb, spot_emb) = mclstexp_mlp_forward(batch, params, temperature)
    jax.block_until_ready(loss)

    # Pure-JAX f32 reference of the whole forward.
    cx = jnp.take(params["x_embed"], batch["position"][:, 0], axis=0)
    cy = jnp.take(params["y_embed"], batch["position"][:, 1], axis=0)
    spot_feat_ref = batch["expression"] + cx + cy
    img_emb_ref = _projection_head_ref(batch["image_features"], *params["image_projection"])
    spot_emb_ref = _projection_head_ref(spot_feat_ref, *params["spot_projection"])
    cos_ref = jnp.dot(spot_emb_ref, img_emb_ref.T) / temperature
    label = jnp.eye(n, dtype=cos_ref.dtype)
    loss_ref = (soft_cross_entropy(cos_ref, label) + soft_cross_entropy(cos_ref.T, label.T)) / 2.0

    # bf16 MXU operands + bf16 embedding outputs -> tolerances looser than the f32 path.
    assert jnp.allclose(img_emb.astype(jnp.float32), img_emb_ref, atol=1e-1, rtol=5e-2), \
        "image embeddings mismatch"
    assert jnp.allclose(spot_emb.astype(jnp.float32), spot_emb_ref, atol=1e-1, rtol=5e-2), \
        "spot embeddings mismatch"
    assert jnp.allclose(loss, loss_ref, atol=1e-1, rtol=5e-2), "loss mismatch"

    print("KERNEL_OK")
</pallas_src>

<mosaic_0001>
module attributes {stable_mosaic.version = 11 : i64} {
  func.func @_projection_head_kernel(%arg0: i32, %arg1: memref<152x512xf32, #tpu.memory_space<vmem>>, %arg2: memref<512x256xbf16, #tpu.memory_space<vmem>>, %arg3: memref<256x256xbf16, #tpu.memory_space<vmem>>, %arg4: memref<4x256xf32, #tpu.memory_space<vmem>>, %arg5: memref<152x256xbf16, #tpu.memory_space<vmem>>) attributes {dimension_semantics = [#tpu.dimension_semantics<parallel>], iteration_bounds = array<i64: 2>, scalar_prefetch = 0 : i64, scratch_operands = 0 : i64, tpu.core_type = #tpu.core_type<tc>, window_params = [{transform_indices = @transform_0, window_bounds = array<i64: 152, 512>}, {pipeline_mode = #tpu.pipeline_mode<synchronous>, transform_indices = @transform_1, window_bounds = array<i64: 512, 256>}, {pipeline_mode = #tpu.pipeline_mode<synchronous>, transform_indices = @transform_2, window_bounds = array<i64: 256, 256>}, {pipeline_mode = #tpu.pipeline_mode<synchronous>, transform_indices = @transform_3, window_bounds = array<i64: 4, 256>}, {transform_indices = @transform_4, window_bounds = array<i64: 152, 256>}]} {
    %c0 = arith.constant 0 : index
    %c0_0 = arith.constant 0 : index
    %0 = vector.load %arg1[%c0, %c0_0] : memref<152x512xf32, #tpu.memory_space<vmem>>, vector<152x512xf32>
    %c0_1 = arith.constant 0 : index
    %c0_2 = arith.constant 0 : index
    %1 = vector.load %arg4[%c0_1, %c0_2] : memref<4x256xf32, #tpu.memory_space<vmem>>, vector<4x256xf32>
    %2 = vector.extract_strided_slice %1 {offsets = [0, 0], sizes = [1, 256], strides = [1, 1]} : vector<4x256xf32> to vector<1x256xf32>
    %3 = vector.extract_strided_slice %1 {offsets = [1, 0], sizes = [1, 256], strides = [1, 1]} : vector<4x256xf32> to vector<1x256xf32>
    %4 = vector.extract_strided_slice %1 {offsets = [2, 0], sizes = [1, 256], strides = [1, 1]} : vector<4x256xf32> to vector<1x256xf32>
    %5 = vector.extract_strided_slice %1 {offsets = [3, 0], sizes = [1, 256], strides = [1, 1]} : vector<4x256xf32> to vector<1x256xf32>
    %6 = arith.truncf %0 : vector<152x512xf32> to vector<152x512xbf16>
    %c0_3 = arith.constant 0 : index
    %c0_4 = arith.constant 0 : index
    %7 = vector.load %arg2[%c0_3, %c0_4] : memref<512x256xbf16, #tpu.memory_space<vmem>>, vector<512x256xbf16>
    %cst = arith.constant dense<0.000000e+00> : vector<152x256xf32>
    %8 = tpu.matmul %6, %7, %cst {dimension_numbers = #tpu.dot_dimension_numbers<[1], [0], [0], [1], [0, 0, 1, 1], [], []>} : vector<152x512xbf16>, vector<512x256xbf16>, vector<152x256xf32> -> vector<152x256xf32>
    %9 = vector.broadcast %2 : vector<1x256xf32> to vector<152x256xf32>
    %10 = arith.addf %8, %9 : vector<152x256xf32>
    %cst_5 = arith.constant 5.000000e-01 : f32
    %11 = vector.broadcast %cst_5 : f32 to vector<152x256xf32>
    %12 = arith.mulf %11, %10 : vector<152x256xf32>
    %cst_6 = arith.constant 0.707106769 : f32
    %13 = vector.broadcast %cst_6 : f32 to vector<152x256xf32>
    %14 = arith.mulf %10, %13 : vector<152x256xf32>
    %15 = math.erf %14 : vector<152x256xf32>
    %cst_7 = arith.constant 1.000000e+00 : f32
    %16 = vector.broadcast %cst_7 : f32 to vector<152x256xf32>
    %17 = arith.addf %16, %15 : vector<152x256xf32>
    %18 = arith.mulf %12, %17 : vector<152x256xf32>
    %19 = arith.truncf %18 : vector<152x256xf32> to vector<152x256xbf16>
    %c0_8 = arith.constant 0 : index
    %c0_9 = arith.constant 0 : index
    %20 = vector.load %arg3[%c0_8, %c0_9] : memref<256x256xbf16, #tpu.memory_space<vmem>>, vector<256x256xbf16>
    %cst_10 = arith.constant dense<0.000000e+00> : vector<152x256xf32>
    %21 = tpu.matmul %19, %20, %cst_10 {dimension_numbers = #tpu.dot_dimension_numbers<[1], [0], [0], [1], [0, 0, 1, 1], [], []>} : vector<152x256xbf16>, vector<256x256xbf16>, vector<152x256xf32> -> vector<152x256xf32>
    %22 = vector.broadcast %3 : vector<1x256xf32> to vector<152x256xf32>
    %23 = arith.addf %21, %22 : vector<152x256xf32>
    %24 = arith.addf %23, %10 : vector<152x256xf32>
    %cst_11 = arith.constant dense<0.000000e+00> : vector<152xf32>
    %25 = vector.multi_reduction <add>, %24, %cst_11 [1] : vector<152x256xf32> to vector<152xf32>
    %26 = vector.shape_cast %25 : vector<152xf32> to vector<152x1xf32>
    %cst_12 = arith.constant 2.560000e+02 : f32
    %27 = vector.broadcast %cst_12 : f32 to vector<152x1xf32>
    %28 = arith.divf %26, %27 : vector<152x1xf32>
    %29 = arith.mulf %24, %24 : vector<152x256xf32>
    %cst_13 = arith.constant dense<0.000000e+00> : vector<152xf32>
    %30 = vector.multi_reduction <add>, %29, %cst_13 [1] : vector<152x256xf32> to vector<152xf32>
    %31 = vector.shape_cast %30 : vector<152xf32> to vector<152x1xf32>
    %cst_14 = arith.constant 2.560000e+02 : f32
    %32 = vector.broadcast %cst_14 : f32 to vector<152x1xf32>
    %33 = arith.divf %31, %32 : vector<152x1xf32>
    %34 = arith.mulf %28, %28 : vector<152x1xf32>
    %35 = arith.subf %33, %34 : vector<152x1xf32>
    %36 = vector.broadcast %28 : vector<152x1xf32> to vector<152x256xf32>
    %37 = arith.subf %24, %36 : vector<152x256xf32>
    %cst_15 = arith.constant 9.99999974E-6 : f32
    %38 = vector.broadcast %cst_15 : f32 to vector<152x1xf32>
    %39 = arith.addf %35, %38 : vector<152x1xf32>
    %40 = math.rsqrt %39 : vector<152x1xf32>
    %41 = vector.broadcast %40 : vector<152x1xf32> to vector<152x256xf32>
    %42 = arith.mulf %37, %41 : vector<152x256xf32>
    %43 = vector.broadcast %4 : vector<1x256xf32> to vector<152x256xf32>
    %44 = arith.mulf %42, %43 : vector<152x256xf32>
    %45 = vector.broadcast %5 : vector<1x256xf32> to vector<152x256xf32>
    %46 = arith.addf %44, %45 : vector<152x256xf32>
    %47 = arith.truncf %46 : vector<152x256xf32> to vector<152x256xbf16>
    %c0_16 = arith.constant 0 : index
    %c0_17 = arith.constant 0 : index
    %48 = vector.load %arg5[%c0_16, %c0_17] : memref<152x256xbf16, #tpu.memory_space<vmem>>, vector<152x256xbf16>
    tpu.vector_store %arg5[%c0_16, %c0_17], %47 {strides = array<i32>} : memref<152x256xbf16, #tpu.memory_space<vmem>>, vector<152x256xbf16>,
    return
  }
  func.func @transform_0(%arg0: i32) -> (i32, i32) {
    %c0_i32 = arith.constant 0 : i32
    %c0_i32_0 = arith.constant 0 : i32
    return %arg0, %c0_i32 : i32, i32
  }
  func.func @transform_1(%arg0: i32) -> (i32, i32) {
    %c0_i32 = arith.constant 0 : i32
    %c0_i32_0 = arith.constant 0 : i32
    %c0_i32_1 = arith.constant 0 : i32
    return %c0_i32, %c0_i32_0 : i32, i32
  }
  func.func @transform_2(%arg0: i32) -> (i32, i32) {
    %c0_i32 = arith.constant 0 : i32
    %c0_i32_0 = arith.constant 0 : i32
    %c0_i32_1 = arith.constant 0 : i32
    return %c0_i32, %c0_i32_0 : i32, i32
  }
  func.func @transform_3(%arg0: i32) -> (i32, i32) {
    %c0_i32 = arith.constant 0 : i32
    %c0_i32_0 = arith.constant 0 : i32
    %c0_i32_1 = arith.constant 0 : i32
    return %c0_i32, %c0_i32_0 : i32, i32
  }
  func.func @transform_4(%arg0: i32) -> (i32, i32) {
    %c0_i32 = arith.constant 0 : i32
    %c0_i32_0 = arith.constant 0 : i32
    return %arg0, %c0_i32 : i32, i32
  }
}

</mosaic_0001>

<bundles_post_ra>
// kernel: projection_head.1
= control target key start
LH: loop header
LB: loop body
LE: loop exit
PB: predicated region body
PF: predicated region fallthrough
CT: control target
= control target key end

     0   :  { %9 = vsyncpa [#allocation3], 0  ;;  %s8303_s0 = inlined_call_operand.vmem [shape: f32[300,512], index: 0, kind: input, shape index: {}]   ;;  %s8304_s1 = inlined_call_operand.vmem [shape: bf16[512,256], index: 1, kind: input, shape index: {}]   ;;  %s8305_s2 = inlined_call_operand.vmem [shape: bf16[256,256], index: 2, kind: input, shape index: {}]   ;;  %s8306_s3 = inlined_call_operand.vmem [shape: f32[4,256], index: 3, kind: input, shape index: {}]   ;;  %s8307_s4 = inlined_call_operand.hbm [shape: bf16[300,256], index: 4, kind: output, shape index: {}]  }
   0x1   :  { %11 = vsyncpa [#allocation3 + $0x1], 0  ;;  %s4844_s15 = smov 0   ;;  %s4846_s16 = smov 0  }
   0x2   :  { %s4848_s17 = smov 0   ;;  %s4850_s18 = smov 0  }
   0x3 LB: > { %s4865_s19 = sadd.s32 4294967295, %s4814_s18   ;;  %s4059_s20 = sadd.s32 4294967294, %s4814_s18   ;;  %s4814_s18 = sphi %s4850_s18, %s8610_s18   ;;  %s4810_s17 = sphi %s4848_s17, %s8609_s17   ;;  %s4806_s16 = sphi %s4846_s16, %s8608_s16   ;;  %s4802_s15 = sphi %s4844_s15, %s8607_s15  }
   0x4   : > { %s4869_s21 = sadd.s32 1, %s4814_s18   ;;  %s113_s22 = sadd.s32 1, %s4810_s17 }
   0x5   : > { %s110_s23 = ssub.s32 %s4814_s18, %s4869_s21  ;;  %p123_p0 = scmp.ne.s32.totalorder %s4810_s17, %s4806_s16 }
   0x6   : > { %p111_p1 = scmp.eq.s32.totalorder %s110_s23, 0  ;;  %p124_p2 = scmp.eq.s32.totalorder %s4865_s19, 1 }
   0x7   : > { %p129_p3 = scmp.ne.s32.totalorder %s4806_s16, %s4802_s15  ;;  %p130_p4 = scmp.eq.s32.totalorder %s4059_s20, 1 }
   0x8   : > { %s4880_s24 = scalar_select %p111_p1, %s4810_s17, %s113_s22  }
   0x9   : > { %p4882_p5 = por %p124_p2, %p123_p0  ;;  %p4886_p6 = por %p130_p4, %p129_p3 }
   0xa   : > { %p4062_p7 = scmp.ge.s32.totalorder %s4814_s18, 1  ;;  %p167_p8 = scmp.lt.s32.totalorder %s4814_s18, 3 }
   0xc   : > { %p168_p9 = pnand %p4062_p7, %p167_p8 }
   0xe   : > { %171 = sbr.rel (%p168_p9) target bundleno = 1011 (0x3f3), region = 36 }
  0x13   : > { %v4123_v0 = vld [vmem:[%s8304_s1 + $0x70] sm:$0xf]  ;;  %v4507_v1 = vld [vmem:[%s8304_s1 + $0x74] sm:$0xf0]  ;;  %v4115_v11 = vld [vmem:[%s8304_s1 + $0x60] sm:$0xf] }
  0x14   : > { %v4187_v2 = vld [vmem:[%s8304_s1 + $0xf0] sm:$0xf]  ;;  %v4124_v3 = vor.u32 %v4507_v1, %v4123_v0  ;;  %v4523_v4 = vld [vmem:[%s8304_s1 + $0xf4] sm:$0xf0]  ;;  %v4505_v13 = vld [vmem:[%s8304_s1 + $0x64] sm:$0xf0] }
  0x15   : > { %v4251_v5 = vld [vmem:[%s8304_s1 + $0x170] sm:$0xf]  ;;  %v4539_v6 = vld [vmem:[%s8304_s1 + $0x174] sm:$0xf0]  ;;  %v4188_v7 = vor.u32 %v4523_v4, %v4187_v2  ;;  %v4179_v14 = vld [vmem:[%s8304_s1 + $0xe0] sm:$0xf]  ;;  %v4116_v16 = vor.u32 %v4505_v13, %v4115_v11 }
  0x16   : > { %v4252_v8 = vor.u32 %v4539_v6, %v4251_v5  ;;  %v4315_v9 = vld [vmem:[%s8304_s1 + $0x1f0] sm:$0xf]  ;;  %v4555_v10 = vld [vmem:[%s8304_s1 + $0x1f4] sm:$0xf0]  ;;  %710 = vmatpush.bf16.msra.mxu0 %v4124_v3  ;;  %v4521_v15 = vld [vmem:[%s8304_s1 + $0xe4] sm:$0xf0] }
  0x17   : > { %v4316_v12 = vor.u32 %v4555_v10, %v4315_v9  ;;  %768 = vmatpush.bf16.msra.mxu1 %v4188_v7  ;;  %v4180_v17 = vor.u32 %v4521_v15, %v4179_v14  ;;  %v4243_v18 = vld [vmem:[%s8304_s1 + $0x160] sm:$0xf]  ;;  %v4537_v19 = vld [vmem:[%s8304_s1 + $0x164] sm:$0xf0]  ;;  %v4107_v23 = vld [vmem:[%s8304_s1 + $0x50] sm:$0xf] }
  0x18   : > { %826 = vmatpush.bf16.msra.mxu2 %v4252_v8  ;;  %v4307_v20 = vld [vmem:[%s8304_s1 + $0x1e0] sm:$0xf]  ;;  %v4244_v21 = vor.u32 %v4537_v19, %v4243_v18  ;;  %v4553_v22 = vld [vmem:[%s8304_s1 + $0x1e4] sm:$0xf0]  ;;  %v4503_v24 = vld [vmem:[%s8304_s1 + $0x54] sm:$0xf0] }
  0x19   : > { %884 = vmatpush.bf16.msra.mxu3 %v4316_v12  ;;  %v4308_v25 = vor.u32 %v4553_v22, %v4307_v20  ;;  %v4171_v26 = vld [vmem:[%s8304_s1 + $0xd0] sm:$0xf]  ;;  %v4519_v27 = vld [vmem:[%s8304_s1 + $0xd4] sm:$0xf0]  ;;  %v4108_v29 = vor.u32 %v4503_v24, %v4107_v23  ;;  %v4099_v35 = vld [vmem:[%s8304_s1 + $0x40] sm:$0xf] }
  0x1a   : > { %v4235_v28 = vld [vmem:[%s8304_s1 + $0x150] sm:$0xf]  ;;  %711 = vmatpush.bf16.msra.mxu0 %v4116_v16  ;;  %v4535_v30 = vld [vmem:[%s8304_s1 + $0x154] sm:$0xf0]  ;;  %v4172_v33 = vor.u32 %v4519_v27, %v4171_v26  ;;  %v4501_v36 = vld [vmem:[%s8304_s1 + $0x44] sm:$0xf0] }
  0x1b   : > { %v4299_v31 = vld [vmem:[%s8304_s1 + $0x1d0] sm:$0xf]  ;;  %v4551_v32 = vld [vmem:[%s8304_s1 + $0x1d4] sm:$0xf0]  ;;  %769 = vmatpush.bf16.msra.mxu1 %v4180_v17  ;;  %v4236_v34 = vor.u32 %v4535_v30, %v4235_v28  ;;  %v4163_v37 = vld [vmem:[%s8304_s1 + $0xc0] sm:$0xf]  ;;  %v4100_v44 = vor.u32 %v4501_v36, %v4099_v35 }
  0x1c   : > { %827 = vmatpush.bf16.msra.mxu2 %v4244_v21  ;;  %v4300_v38 = vor.u32 %v4551_v32, %v4299_v31  ;;  %v4517_v39 = vld [vmem:[%s8304_s1 + $0xc4] sm:$0xf0]  ;;  %v4227_v40 = vld [vmem:[%s8304_s1 + $0x140] sm:$0xf]  ;;  %v4091_v47 = vld [vmem:[%s8304_s1 + $0x30] sm:$0xf] }
  0x1d   : > { %885 = vmatpush.bf16.msra.mxu3 %v4308_v25  ;;  %v4533_v41 = vld [vmem:[%s8304_s1 + $0x144] sm:$0xf0]  ;;  %v4291_v42 = vld [vmem:[%s8304_s1 + $0x1c0] sm:$0xf]  ;;  %v4164_v45 = vor.u32 %v4517_v39, %v4163_v37  ;;  %v4499_v48 = vld [vmem:[%s8304_s1 + $0x34] sm:$0xf0] }
  0x1e   : > { %v4549_v43 = vld [vmem:[%s8304_s1 + $0x1c4] sm:$0xf0]  ;;  %712 = vmatpush.bf16.msra.mxu0 %v4108_v29  ;;  %v4228_v46 = vor.u32 %v4533_v41, %v4227_v40  ;;  %v4155_v49 = vld [vmem:[%s8304_s1 + $0xb0] sm:$0xf]  ;;  %v4515_v51 = vld [vmem:[%s8304_s1 + $0xb4] sm:$0xf0]  ;;  %v4092_v56 = vor.u32 %v4499_v48, %v4091_v47 }
  0x1f   : > { %770 = vmatpush.bf16.msra.mxu1 %v4172_v33  ;;  %v4292_v50 = vor.u32 %v4549_v43, %v4291_v42  ;;  %v4219_v52 = vld [vmem:[%s8304_s1 + $0x130] sm:$0xf]  ;;  %v4531_v53 = vld [vmem:[%s8304_s1 + $0x134] sm:$0xf0]  ;;  %v4156_v57 = vor.u32 %v4515_v51, %v4155_v49  ;;  %v4083_v59 = vld [vmem:[%s8304_s1 + $0x20] sm:$0xf] }
  0x20   : > { %828 = vmatpush.bf16.msra.mxu2 %v4236_v34  ;;  %v4283_v54 = vld [vmem:[%s8304_s1 + $0x1b0] sm:$0xf]  ;;  %v4547_v55 = vld [vmem:[%s8304_s1 + $0x1b4] sm:$0xf0]  ;;  %v4220_v58 = vor.u32 %v4531_v53, %v4219_v52  ;;  %v4497_v60 = vld [vmem:[%s8304_s1 + $0x24] sm:$0xf0] }
  0x21   : > { %886 = vmatpush.bf16.msra.mxu3 %v4300_v38  ;;  %v4147_v61 = vld [vmem:[%s8304_s1 + $0xa0] sm:$0xf]  ;;  %v4284_v62 = vor.u32 %v4547_v55, %v4283_v54  ;;  %v4513_v63 = vld [vmem:[%s8304_s1 + $0xa4] sm:$0xf0]  ;;  %v4084_v4 = vor.u32 %v4497_v60, %v4083_v59  ;;  %v4075_v5 = vld [vmem:[%s8304_s1 + $0x10] sm:$0xf] }
  0x22   : > { %713 = vmatpush.bf16.msra.mxu0 %v4100_v44  ;;  %v4211_v0 = vld [vmem:[%s8304_s1 + $0x120] sm:$0xf]  ;;  %v4529_v1 = vld [vmem:[%s8304_s1 + $0x124] sm:$0xf0]  ;;  %v4148_v6 = vor.u32 %v4513_v63, %v4147_v61  ;;  %v4495_v8 = vld [vmem:[%s8304_s1 + $0x14] sm:$0xf0] }
  0x23   : > { %771 = vmatpush.bf16.msra.mxu1 %v4164_v45  ;;  %v4275_v2 = vld [vmem:[%s8304_s1 + $0x1a0] sm:$0xf]  ;;  %v4545_v3 = vld [vmem:[%s8304_s1 + $0x1a4] sm:$0xf0]  ;;  %v4212_v7 = vor.u32 %v4529_v1, %v4211_v0  ;;  %v4139_v9 = vld [vmem:[%s8304_s1 + $0x90] sm:$0xf]  ;;  %v4076_v16 = vor.u32 %v4495_v8, %v4075_v5 }
  0x24   : > { %829 = vmatpush.bf16.msra.mxu2 %v4228_v46  ;;  %v4511_v10 = vld [vmem:[%s8304_s1 + $0x94] sm:$0xf0]  ;;  %v4276_v11 = vor.u32 %v4545_v3, %v4275_v2  ;;  %v4203_v12 = vld [vmem:[%s8304_s1 + $0x110] sm:$0xf]  ;;  %s194_s7 = smul.u32 19, %s4865_s19  ;;  %s191_s13 = sand.u32 1, %s4806_s16  }
  0x25   : > { %887 = vmatpush.bf16.msra.mxu3 %v4292_v50  ;;  %v4527_v13 = vld [vmem:[%s8304_s1 + $0x114] sm:$0xf0]  ;;  %v4267_v14 = vld [vmem:[%s8304_s1 + $0x190] sm:$0xf]  ;;  %v4067_v17 = vld [vmem:[%s8304_s1] sm:$0xf]  ;;  %v4140_v19 = vor.u32 %v4511_v10, %v4139_v9 }
  0x26   : > { %714 = vmatpush.bf16.msra.mxu0 %v4092_v56  ;;  %v4543_v15 = vld [vmem:[%s8304_s1 + $0x194] sm:$0xf0]  ;;  %v4493_v18 = vld [vmem:[%s8304_s1 + $0x4] sm:$0xf0]  ;;  %p195_p10 = scmp.lt.s32.totalorder %s194_s7, 37  ;;  %v4204_v20 = vor.u32 %v4527_v13, %v4203_v12  ;;  %s7984_s14 = smul.u32 152, %s191_s13 }
  0x27   : > { %772 = vmatpush.bf16.msra.mxu1 %v4156_v57  ;;  %v4131_v21 = vld [vmem:[%s8304_s1 + $0x80] sm:$0xf]  ;;  %v4509_v22 = vld [vmem:[%s8304_s1 + $0x84] sm:$0xf0]  ;;  %v4268_v24 = vor.u32 %v4543_v15, %v4267_v14  ;;  %v4538_v28 = vld [vmem:[%s8304_s1 + $0x174] sm:$0xf]  ;;  %v4068_v30 = vor.u32 %v4493_v18, %v4067_v17 }
  0x28   : > { %830 = vmatpush.bf16.msra.mxu2 %v4220_v58  ;;  %v4195_v23 = vld [vmem:[%s8304_s1 + $0x100] sm:$0xf]  ;;  %v4525_v25 = vld [vmem:[%s8304_s1 + $0x104] sm:$0xf0]  ;;  %s8612_s7 = smov (!%p195_p10, %s194_s7), 37  ;;  %v4132_v35 = vor.u32 %v4509_v22, %v4131_v21  ;;  %s8013_s20 = scalar_lea.vmem [#allocation2], %s7984_s14 }
  0x29   : > { %888 = vmatpush.bf16.msra.mxu3 %v4284_v62  ;;  %v4259_v26 = vld [vmem:[%s8304_s1 + $0x180] sm:$0xf]  ;;  %v4541_v27 = vld [vmem:[%s8304_s1 + $0x184] sm:$0xf0]  ;;  %v4253_v29 = vld [vmem:[%s8304_s1 + $0x178] sm:$0xf0]  ;;  %v4196_v36 = vor.u32 %v4525_v25, %v4195_v23 }
  0x2a   : > { %715 = vmatpush.bf16.msra.mxu0 %v4084_v4  ;;  %s4491_s22 = sshll.u32 %s8612_s7, 5  ;;  %v4506_v31 = vld [vmem:[%s8304_s1 + $0x74] sm:$0xf]  ;;  %v4125_v32 = vld [vmem:[%s8304_s1 + $0x78] sm:$0xf0]  ;;  %v4260_v41 = vor.u32 %v4541_v27, %v4259_v26  ;;  %v4256_v45 = vor.u32 %v4538_v28, %v4253_v29  ;;  %s4590_s23 = smul.u32 152, %s4865_s19 }
  0x2b   : > { %773 = vmatpush.bf16.msra.mxu1 %v4148_v6  ;;  %v4554_v33 = vld [vmem:[%s8304_s1 + $0x1f4] sm:$0xf]  ;;  %v4317_v34 = vld [vmem:[%s8304_s1 + $0x1f8] sm:$0xf0]  ;;  %s5106_s10 = scalar_lea.vmem %s8303_s0, %s4491_s22  ;;  %v4536_v39 = vld [vmem:[%s8304_s1 + $0x164] sm:$0xf]  ;;  %v4128_v58 = vor.u32 %v4506_v31, %v4125_v32 }
  0x2c   : > { %831 = vmatpush.bf16.msra.mxu2 %v4212_v7  ;;  %v4522_v37 = vld [vmem:[%s8304_s1 + $0xf4] sm:$0xf]  ;;  %v4189_v38 = vld [vmem:[%s8304_s1 + $0xf8] sm:$0xf0]  ;;  %v4245_v40 = vld [vmem:[%s8304_s1 + $0x168] sm:$0xf0]  ;;  %v4320_v51 = vor.u32 %v4554_v33, %v4317_v34  ;;  %s3993_s22 = scalar_lea.hbm %s8307_s4, %s4590_s23 }
  0x2d   : > { %889 = vmatpush.bf16.msra.mxu3 %v4276_v11  ;;  %v202_v42 = vld [vmem:[%s5106_s10] sm:$0xff]  ;;  %v203_v44 = vld [vmem:[%s5106_s10 + $0x8] sm:$0xff]  ;;  %v204_v49 = vld [vmem:[%s5106_s10 + $0x10] sm:$0xff]  ;;  %v4192_v59 = vor.u32 %v4522_v37, %v4189_v38  ;;  %v4248_v60 = vor.u32 %v4536_v39, %v4245_v40  ;;  %s3994_s27 = sshll.u32 %s8013_s20, 4  ;;  %s3996_s28 = sshll.u32 %s3993_s22, 4  ;;  %s3995_s27 = int_to_ptr.vmem [resolvable:$true] %s3994_s27  ;;  %s3997_s28 = int_to_ptr.hbm [resolvable:$true] %s3996_s28 }
  0x2e   : > { %716 = vmatpush.bf16.msra.mxu0 %v4076_v16  ;;  %v206_v43 = vld [vmem:[%s5106_s10 + $0x20] sm:$0xff]  ;;  %v207_v48 = vld [vmem:[%s5106_s10 + $0x28] sm:$0xff]  ;;  %v208_v50 = vld [vmem:[%s5106_s10 + $0x30] sm:$0xff]  ;;  %s3981_s29 = scalar_lea.sflag [#allocation3], %s191_s13  ;;  %s4766_s30 = sshra.s32 %s3997_s28, 4  ;;  %s4767_s30 = int_to_ptr.hbm [resolvable:$true] %s4766_s30 }
  0x2f   : > { %774 = vmatpush.bf16.msra.mxu1 %v4140_v19  ;;  %v4552_v46 = vld [vmem:[%s8304_s1 + $0x1e4] sm:$0xf]  ;;  %v5126_v47 = vpack.c.bf16 %v206_v43, %v202_v42  ;;  %v5131_v52 = vpack.c.bf16 %v207_v48, %v203_v44  ;;  %v5133_v53 = vpack.c.bf16 %v208_v50, %v204_v49  ;;  %v205_v54 = vld [vmem:[%s5106_s10 + $0x18] sm:$0xff]  ;;  %v4309_v56 = vld [vmem:[%s8304_s1 + $0x1e8] sm:$0xf0]  ;;  %s4768_s5 = scalar_lea.hbm %s4767_s30, 152  ;;  %p4773_p0 = scmp.lt.s32.totalorder %s4767_s30, %s8307_s4 }
  0x30   : > { %832 = vmatpush.bf16.msra.mxu2 %v4204_v20  ;;  %v209_v55 = vld [vmem:[%s5106_s10 + $0x38] sm:$0xff]  ;;  %v4504_v61 = vld [vmem:[%s8304_s1 + $0x64] sm:$0xf]  ;;  %v4117_v62 = vld [vmem:[%s8304_s1 + $0x68] sm:$0xf0]  ;;  %v4312_v63 = vor.u32 %v4552_v46, %v4309_v56  ;;  %p4769_p11 = scmp.ne.s32.totalorder %s4767_s30, %s4768_s5  ;;  %s4772_s7 = scalar_lea.hbm %s8307_s4, 304 }
  0x31   : > { %890 = vmatpush.bf16.msra.mxu3 %v4268_v24  ;;  %v5140_v57 = vpack.c.bf16 %v209_v55, %v205_v54  ;;  %v4520_v0 = vld [vmem:[%s8304_s1 + $0xe4] sm:$0xf]  ;;  %v4181_v1 = vld [vmem:[%s8304_s1 + $0xe8] sm:$0xf0]  ;;  %v4120_v2 = vor.u32 %v4504_v61, %v4117_v62  ;;  %v4534_v4 = vld [vmem:[%s8304_s1 + $0x154] sm:$0xf]  ;;  %p4774_p1 = scmp.lt.s32.totalorder %s4772_s7, %s4768_s5 }
  0x32   : > { %717 = vmatpush.bf16.msra.mxu0 %v4068_v30  ;;  %v4184_v3 = vor.u32 %v4520_v0, %v4181_v1  ;;  %v4237_v5 = vld [vmem:[%s8304_s1 + $0x158] sm:$0xf0]  ;;  %v4502_v6 = vld [vmem:[%s8304_s1 + $0x54] sm:$0xf]  ;;  %v210_v16 = vld [vmem:[%s5106_s10 + $0x40] sm:$0xff]  ;;  %p4770_p12 = pnand %p4769_p11, %p4882_p5 }
  0x33   : > { %775 = vmatpush.bf16.msra.mxu1 %v4132_v35  ;;  %v4240_v7 = vor.u32 %v4534_v4, %v4237_v5  ;;  %v4109_v8 = vld [vmem:[%s8304_s1 + $0x58] sm:$0xf0]  ;;  %v4550_v9 = vld [vmem:[%s8304_s1 + $0x1d4] sm:$0xf]  ;;  %v214_v17 = vld [vmem:[%s5106_s10 + $0x60] sm:$0xff]  ;;  %p4775_p2 = por %p4774_p1, %p4773_p0 }
  0x34   : > { %833 = vmatpush.bf16.msra.mxu2 %v4196_v36  ;;  %v4301_v10 = vld [vmem:[%s8304_s1 + $0x1d8] sm:$0xf0]  ;;  %v4518_v12 = vld [vmem:[%s8304_s1 + $0xd4] sm:$0xf]  ;;  %v4112_v14 = vor.u32 %v4502_v6, %v4109_v8  ;;  %v211_v18 = vld [vmem:[%s5106_s10 + $0x48] sm:$0xff]  ;;  %v5190_v24 = vpack.c.bf16 %v214_v17, %v210_v16  ;;  %p4771_p13 = pneg %p4770_p12 }
  0x35   : > { %891 = vmatpush.bf16.msra.mxu3 %v4260_v41  ;;  %718 = vmatmul.bf16.vlgmr.msra.gmra.mxu0 %v5126_v47  ;;  %v4304_v11 = vor.u32 %v4550_v9, %v4301_v10  ;;  %v4173_v13 = vld [vmem:[%s8304_s1 + $0xd8] sm:$0xf0]  ;;  %v215_v19 = vld [vmem:[%s5106_s10 + $0x68] sm:$0xff]  ;;  %v212_v20 = vld [vmem:[%s5106_s10 + $0x50] sm:$0xff] }
  0x36   : > { %776 = vmatmul.bf16.vlgmr.msra.gmra.mxu1 %v5131_v52  ;;  %942 = vmatpush.bf16.msrb.mxu0 %v4128_v58  ;;  %v4176_v15 = vor.u32 %v4518_v12, %v4173_v13  ;;  %v216_v21 = vld [vmem:[%s5106_s10 + $0x70] sm:$0xff]  ;;  %v213_v22 = vld [vmem:[%s5106_s10 + $0x58] sm:$0xff]  ;;  %v5192_v25 = vpack.c.bf16 %v215_v19, %v211_v18  ;;  %v4532_v28 = vld [vmem:[%s8304_s1 + $0x144] sm:$0xf]  ;;  %p4776_p3 = pnand %p4775_p2, %p4771_p13 }
  0x37   : > { %834 = vmatmul.bf16.vlgmr.msra.gmra.mxu2 %v5133_v53  ;;  %1000 = vmatpush.bf16.msrb.mxu1 %v4192_v59  ;;  %v217_v23 = vld [vmem:[%s5106_s10 + $0x78] sm:$0xff]  ;;  %v5194_v26 = vpack.c.bf16 %v216_v21, %v212_v20  ;;  %v4229_v29 = vld [vmem:[%s8304_s1 + $0x148] sm:$0xf0]  ;;  %v4500_v30 = vld [vmem:[%s8304_s1 + $0x44] sm:$0xf] }
  0x38   : > { %1058 = vmatpush.bf16.msrb.mxu2 %v4256_v45  ;;  %892 = vmatmul.bf16.vlgmr.msra.gmra.mxu3 %v5140_v57  ;;  %v5196_v27 = vpack.c.bf16 %v217_v23, %v213_v22  ;;  %v4232_v31 = vor.u32 %v4532_v28, %v4229_v29  ;;  %v4101_v32 = vld [vmem:[%s8304_s1 + $0x48] sm:$0xf0]  ;;  %v4548_v33 = vld [vmem:[%s8304_s1 + $0x1c4] sm:$0xf]  ;;  %v220_v41 = vld [vmem:[%s5106_s10 + $0x90] sm:$0xff] }
  0x39   : > { %1116 = vmatpush.bf16.msrb.mxu3 %v4320_v51  ;;  %v4293_v34 = vld [vmem:[%s8304_s1 + $0x1c8] sm:$0xf0]  ;;  %v4104_v35 = vor.u32 %v4500_v30, %v4101_v32  ;;  %v218_v37 = vld [vmem:[%s5106_s10 + $0x80] sm:$0xff]  ;;  %v224_v42 = vld [vmem:[%s5106_s10 + $0xb0] sm:$0xff] }
  0x3a   : > { %943 = vmatpush.bf16.msrb.mxu0 %v4120_v2  ;;  %v4296_v36 = vor.u32 %v4548_v33, %v4293_v34  ;;  %v222_v38 = vld [vmem:[%s5106_s10 + $0xa0] sm:$0xff]  ;;  %v219_v39 = vld [vmem:[%s5106_s10 + $0x88] sm:$0xff]  ;;  %v221_v43 = vld [vmem:[%s5106_s10 + $0x98] sm:$0xff]  ;;  %v5232_v48 = vpack.c.bf16 %v224_v42, %v220_v41 }
  0x3b   : > { %1001 = vmatpush.bf16.msrb.mxu1 %v4184_v3  ;;  %v223_v40 = vld [vmem:[%s5106_s10 + $0xa8] sm:$0xff]  ;;  %v225_v44 = vld [vmem:[%s5106_s10 + $0xb8] sm:$0xff]  ;;  %v5228_v45 = vpack.c.bf16 %v222_v38, %v218_v37  ;;  %v4516_v50 = vld [vmem:[%s8304_s1 + $0xc4] sm:$0xf] }
  0x3c   : > { %1059 = vmatpush.bf16.msrb.mxu2 %v4248_v60  ;;  %v5230_v46 = vpack.c.bf16 %v223_v40, %v219_v39  ;;  %v5234_v49 = vpack.c.bf16 %v225_v44, %v221_v43  ;;  %v4165_v51 = vld [vmem:[%s8304_s1 + $0xc8] sm:$0xf0]  ;;  %v226_v55 = vld [vmem:[%s5106_s10 + $0xc0] sm:$0xff]  ;;  %v228_v60 = vld [vmem:[%s5106_s10 + $0xd0] sm:$0xff] }
  0x3d   : > { %1117 = vmatpush.bf16.msrb.mxu3 %v4312_v63  ;;  %v4168_v54 = vor.u32 %v4516_v50, %v4165_v51  ;;  %v230_v56 = vld [vmem:[%s5106_s10 + $0xe0] sm:$0xff]  ;;  %v227_v58 = vld [vmem:[%s5106_s10 + $0xc8] sm:$0xff]  ;;  %v232_v61 = vld [vmem:[%s5106_s10 + $0xf0] sm:$0xff] }
  0x3e   : > { %944 = vmatpush.bf16.msrb.mxu0 %v4112_v14  ;;  %v231_v59 = vld [vmem:[%s5106_s10 + $0xe8] sm:$0xff]  ;;  %v229_v62 = vld [vmem:[%s5106_s10 + $0xd8] sm:$0xff]  ;;  %v5254_v0 = vpack.c.bf16 %v230_v56, %v226_v55  ;;  %v5258_v2 = vpack.c.bf16 %v232_v61, %v228_v60  ;;  %v4530_v4 = vld [vmem:[%s8304_s1 + $0x134] sm:$0xf] }
  0x3f   : > { %1002 = vmatpush.bf16.msrb.mxu1 %v4176_v15  ;;  %v233_v63 = vld [vmem:[%s5106_s10 + $0xf8] sm:$0xff]  ;;  %v5256_v1 = vpack.c.bf16 %v231_v59, %v227_v58  ;;  %v4498_v6 = vld [vmem:[%s8304_s1 + $0x34] sm:$0xf]  ;;  %v234_v16 = vld [vmem:[%s5106_s10 + $0x100] sm:$0xff] }
  0x40   : > { %1060 = vmatpush.bf16.msrb.mxu2 %v4240_v7  ;;  %v5260_v3 = vpack.c.bf16 %v233_v63, %v229_v62  ;;  %v4221_v5 = vld [vmem:[%s8304_s1 + $0x138] sm:$0xf0]  ;;  %v4546_v9 = vld [vmem:[%s8304_s1 + $0x1b4] sm:$0xf]  ;;  %v238_v17 = vld [vmem:[%s5106_s10 + $0x120] sm:$0xff] }
  0x41   : > { %1118 = vmatpush.bf16.msrb.mxu3 %v4304_v11  ;;  %v4224_v7 = vor.u32 %v4530_v4, %v4221_v5  ;;  %v4093_v8 = vld [vmem:[%s8304_s1 + $0x38] sm:$0xf0]  ;;  %v4514_v13 = vld [vmem:[%s8304_s1 + $0xb4] sm:$0xf]  ;;  %v235_v18 = vld [vmem:[%s5106_s10 + $0x108] sm:$0xff]  ;;  %v5298_v28 = vpack.c.bf16 %v238_v17, %v234_v16 }
  0x42   : > { %945 = vmatpush.bf16.msrb.mxu0 %v4104_v35  ;;  %v4285_v10 = vld [vmem:[%s8304_s1 + $0x1b8] sm:$0xf0]  ;;  %v4096_v11 = vor.u32 %v4498_v6, %v4093_v8  ;;  %v239_v19 = vld [vmem:[%s5106_s10 + $0x128] sm:$0xff]  ;;  %v236_v20 = vld [vmem:[%s5106_s10 + $0x110] sm:$0xff] }
  0x43   : > { %1003 = vmatpush.bf16.msrb.mxu1 %v4168_v54  ;;  %v4288_v12 = vor.u32 %v4546_v9, %v4285_v10  ;;  %v4157_v14 = vld [vmem:[%s8304_s1 + $0xb8] sm:$0xf0]  ;;  %v240_v21 = vld [vmem:[%s5106_s10 + $0x130] sm:$0xff]  ;;  %v5300_v29 = vpack.c.bf16 %v239_v19, %v235_v18  ;;  %v4528_v32 = vld [vmem:[%s8304_s1 + $0x124] sm:$0xf] }
  0x44   : > { %1061 = vmatpush.bf16.msrb.mxu2 %v4232_v31  ;;  %v4160_v15 = vor.u32 %v4514_v13, %v4157_v14  ;;  %v237_v22 = vld [vmem:[%s5106_s10 + $0x118] sm:$0xff]  ;;  %v5302_v30 = vpack.c.bf16 %v240_v21, %v236_v20  ;;  %v4213_v33 = vld [vmem:[%s8304_s1 + $0x128] sm:$0xf0]  ;;  %v4496_v34 = vld [vmem:[%s8304_s1 + $0x24] sm:$0xf] }
  0x45   : > { %723 = vmatmul.bf16.gmra.mxu0 %v5190_v24  ;;  %1119 = vmatpush.bf16.msrb.mxu3 %v4296_v36  ;;  %v241_v23 = vld [vmem:[%s5106_s10 + $0x138] sm:$0xff]  ;;  %v4216_v35 = vor.u32 %v4528_v32, %v4213_v33  ;;  %v4085_v36 = vld [vmem:[%s8304_s1 + $0x28] sm:$0xf0]  ;;  %v4544_v37 = vld [vmem:[%s8304_s1 + $0x1a4] sm:$0xf] }
  0x46   : > { %781 = vmatmul.bf16.gmra.mxu1 %v5192_v25  ;;  %946 = vmatpush.bf16.msrb.mxu0 %v4096_v11  ;;  %v5304_v31 = vpack.c.bf16 %v241_v23, %v237_v22  ;;  %v4277_v38 = vld [vmem:[%s8304_s1 + $0x1a8] sm:$0xf0]  ;;  %v4088_v39 = vor.u32 %v4496_v34, %v4085_v36  ;;  %v4512_v41 = vld [vmem:[%s8304_s1 + $0xa4] sm:$0xf]  ;;  %v244_v55 = vld [vmem:[%s5106_s10 + $0x150] sm:$0xff] }
  0x47   : > { %839 = vmatmul.bf16.gmra.mxu2 %v5194_v26  ;;  %1004 = vmatpush.bf16.msrb.mxu1 %v4160_v15  ;;  %v4280_v40 = vor.u32 %v4544_v37, %v4277_v38  ;;  %v4149_v42 = vld [vmem:[%s8304_s1 + $0xa8] sm:$0xf0]  ;;  %v242_v44 = vld [vmem:[%s5106_s10 + $0x140] sm:$0xff]  ;;  %v248_v56 = vld [vmem:[%s5106_s10 + $0x170] sm:$0xff] }
  0x48   : > { %897 = vmatmul.bf16.gmra.mxu3 %v5196_v27  ;;  %1062 = vmatpush.bf16.msrb.mxu2 %v4224_v7  ;;  %v4152_v43 = vor.u32 %v4512_v41, %v4149_v42  ;;  %v246_v50 = vld [vmem:[%s5106_s10 + $0x160] sm:$0xff]  ;;  %v243_v51 = vld [vmem:[%s5106_s10 + $0x148] sm:$0xff]  ;;  %v245_v58 = vld [vmem:[%s5106_s10 + $0x158] sm:$0xff]  ;;  %v5346_v62 = vpack.c.bf16 %v248_v56, %v244_v55 }
  0x49   : > { %1120 = vmatpush.bf16.msrb.mxu3 %v4288_v12  ;;  %v247_v54 = vld [vmem:[%s5106_s10 + $0x168] sm:$0xff]  ;;  %v249_v59 = vld [vmem:[%s5106_s10 + $0x178] sm:$0xff]  ;;  %v5342_v60 = vpack.c.bf16 %v246_v50, %v242_v44  ;;  %v4526_v4 = vld [vmem:[%s8304_s1 + $0x114] sm:$0xf] }
  0x4a   : > { %947 = vmatpush.bf16.msrb.mxu0 %v4088_v39  ;;  %v5344_v61 = vpack.c.bf16 %v247_v54, %v243_v51  ;;  %v5348_v63 = vpack.c.bf16 %v249_v59, %v245_v58  ;;  %v4205_v5 = vld [vmem:[%s8304_s1 + $0x118] sm:$0xf0]  ;;  %v4494_v6 = vld [vmem:[%s8304_s1 + $0x14] sm:$0xf]  ;;  %v250_v16 = vld [vmem:[%s5106_s10 + $0x180] sm:$0xff] }
  0x4b   : > { %1005 = vmatpush.bf16.msrb.mxu1 %v4152_v43  ;;  %v4208_v7 = vor.u32 %v4526_v4, %v4205_v5  ;;  %v4077_v8 = vld [vmem:[%s8304_s1 + $0x18] sm:$0xf0]  ;;  %v4542_v9 = vld [vmem:[%s8304_s1 + $0x194] sm:$0xf]  ;;  %v254_v17 = vld [vmem:[%s5106_s10 + $0x1a0] sm:$0xff] }
  0x4c   : > { %1063 = vmatpush.bf16.msrb.mxu2 %v4216_v35  ;;  %v4269_v10 = vld [vmem:[%s8304_s1 + $0x198] sm:$0xf0]  ;;  %v4080_v11 = vor.u32 %v4494_v6, %v4077_v8  ;;  %v4510_v13 = vld [vmem:[%s8304_s1 + $0x94] sm:$0xf]  ;;  %v251_v18 = vld [vmem:[%s5106_s10 + $0x188] sm:$0xff]  ;;  %v5386_v32 = vpack.c.bf16 %v254_v17, %v250_v16 }
  0x4d   : > { %1121 = vmatpush.bf16.msrb.mxu3 %v4280_v40  ;;  %v4272_v12 = vor.u32 %v4542_v9, %v4269_v10  ;;  %v4141_v14 = vld [vmem:[%s8304_s1 + $0x98] sm:$0xf0]  ;;  %v255_v19 = vld [vmem:[%s5106_s10 + $0x1a8] sm:$0xff]  ;;  %v252_v20 = vld [vmem:[%s5106_s10 + $0x190] sm:$0xff] }
  0x4e   : > { %v4144_v15 = vor.u32 %v4510_v13, %v4141_v14  ;;  %948 = vmatpush.bf16.msrb.mxu0 %v4080_v11  ;;  %v256_v21 = vld [vmem:[%s5106_s10 + $0x1b0] sm:$0xff]  ;;  %v253_v22 = vld [vmem:[%s5106_s10 + $0x198] sm:$0xff]  ;;  %v5388_v33 = vpack.c.bf16 %v255_v19, %v251_v18  ;;  %v258_v36 = vld [vmem:[%s5106_s10 + $0x1c0] sm:$0xff] }
  0x4f   : > { %v257_v23 = vld [vmem:[%s5106_s10 + $0x1b8] sm:$0xff]  ;;  %v5390_v34 = vpack.c.bf16 %v256_v21, %v252_v20  ;;  %v262_v37 = vld [vmem:[%s5106_s10 + $0x1e0] sm:$0xff]  ;;  %v259_v38 = vld [vmem:[%s5106_s10 + $0x1c8] sm:$0xff] }
  0x50   : > { %1064 = vmatpush.bf16.msrb.mxu2 %v4208_v7  ;;  %1006 = vmatpush.bf16.msrb.mxu1 %v4144_v15  ;;  %v5392_v35 = vpack.c.bf16 %v257_v23, %v253_v22  ;;  %v263_v39 = vld [vmem:[%s5106_s10 + $0x1e8] sm:$0xff]  ;;  %v260_v40 = vld [vmem:[%s5106_s10 + $0x1d0] sm:$0xff]  ;;  %v261_v42 = vld [vmem:[%s5106_s10 + $0x1d8] sm:$0xff]  ;;  %v5406_v44 = vpack.c.bf16 %v262_v37, %v258_v36 }
  0x51   : > { %1122 = vmatpush.bf16.msrb.mxu3 %v4272_v12  ;;  %v264_v41 = vld [vmem:[%s5106_s10 + $0x1f0] sm:$0xff]  ;;  %v265_v43 = vld [vmem:[%s5106_s10 + $0x1f8] sm:$0xff]  ;;  %v5408_v50 = vpack.c.bf16 %v263_v39, %v259_v38  ;;  %v278_v55 = vld [vmem:[%s8306_s3] sm:$0xff] }
  0x52   : > { %v5410_v51 = vpack.c.bf16 %v264_v41, %v260_v40  ;;  %v5412_v54 = vpack.c.bf16 %v265_v43, %v261_v42  ;;  %v384_v56 = vperm.slane %v278_v55, 0  ;;  %v266_v58 = vld [vmem:[%s5106_s10 + $0x200] sm:$0xff]  ;;  %v267_v4 = vld [vmem:[%s5106_s10 + $0x208] sm:$0xff]  ;;  %v268_v7 = vld [vmem:[%s5106_s10 + $0x210] sm:$0xff] }
  0x53   : > { %v270_v59 = vld [vmem:[%s5106_s10 + $0x220] sm:$0xff]  ;;  %v271_v6 = vld [vmem:[%s5106_s10 + $0x228] sm:$0xff]  ;;  %v272_v8 = vld [vmem:[%s5106_s10 + $0x230] sm:$0xff] }
  0x54   : > { %v5424_v5 = vperm.slane %v384_v56, 0  ;;  %v269_v9 = vld [vmem:[%s5106_s10 + $0x218] sm:$0xff]  ;;  %v5431_v11 = vpack.c.bf16 %v270_v59, %v266_v58  ;;  %v5433_v13 = vpack.c.bf16 %v271_v6, %v267_v4  ;;  %v5435_v14 = vpack.c.bf16 %v272_v8, %v268_v7  ;;  %v4524_v15 = vld [vmem:[%s8304_s1 + $0x104] sm:$0xf]  ;;  %v4197_v16 = vld [vmem:[%s8304_s1 + $0x108] sm:$0xf0] }
  0x55   : > { %728 = vmatmul.bf16.gmra.mxu0 %v5228_v45  ;;  %v273_v10 = vld [vmem:[%s5106_s10 + $0x238] sm:$0xff]  ;;  %v4492_v17 = vld [vmem:[%s8304_s1 + $0x4] sm:$0xf]  ;;  %v4200_v21 = vor.u32 %v4524_v15, %v4197_v16  ;;  %v4069_v22 = vld [vmem:[%s8304_s1 + $0x8] sm:$0xf0] }
  0x56   : > { %786 = vmatmul.bf16.gmra.mxu1 %v5230_v46  ;;  %8388 = vst [vmem:[#allocation5_spill] sm:$0xff] %v5431_v11  ;;  %v5447_v20 = vpack.c.bf16 %v273_v10, %v269_v9  ;;  %v4540_v23 = vld [vmem:[%s8304_s1 + $0x184] sm:$0xf]  ;;  %v4261_v36 = vld [vmem:[%s8304_s1 + $0x188] sm:$0xf0]  ;;  %v4072_v37 = vor.u32 %v4492_v17, %v4069_v22  ;;  %v276_v10 = vld [vmem:[%s5106_s10 + $0x250] sm:$0xff] }
  0x57   : > { %844 = vmatmul.bf16.gmra.mxu2 %v5232_v48  ;;  %8389 = vst [vmem:[#allocation6_spill] sm:$0xff] %v5433_v13  ;;  %v4264_v38 = vor.u32 %v4540_v23, %v4261_v36  ;;  %v4508_v39 = vld [vmem:[%s8304_s1 + $0x84] sm:$0xf]  ;;  %v4133_v40 = vld [vmem:[%s8304_s1 + $0x88] sm:$0xf0]  ;;  %v5479_v22 = vpack.c.bf16 %v276_v10, %v276_v10 }
  0x58   : > { %902 = vmatmul.bf16.gmra.mxu3 %v5234_v49  ;;  %8390 = vst [vmem:[#allocation7_spill] sm:$0xff] %v5435_v14  ;;  %1065 = vmatpush.bf16.msrb.mxu2 %v4200_v21  ;;  %v4136_v42 = vor.u32 %v4508_v39, %v4133_v40  ;;  %v274_v8 = vld [vmem:[%s5106_s10 + $0x240] sm:$0xff]  ;;  %v275_v9 = vld [vmem:[%s5106_s10 + $0x248] sm:$0xff] }
  0x59   : > { %8391 = vst [vmem:[#allocation8_spill] sm:$0xff] %v5447_v20  ;;  %949 = vmatpush.bf16.msrb.mxu0 %v4072_v37  ;;  %1123 = vmatpush.bf16.msrb.mxu3 %v4264_v38  ;;  %v5475_v16 = vpack.c.bf16 %v274_v8, %v274_v8  ;;  %v5477_v21 = vpack.c.bf16 %v275_v9, %v275_v9 }
  0x5a   : > { %1007 = vmatpush.bf16.msrb.mxu1 %v4136_v42  ;;  %8395 = vst [vmem:[#allocation12_spill] sm:$0xff] %v5479_v22 }
  0x5b   : > { %8393 = vst [vmem:[#allocation10_spill] sm:$0xff] %v5475_v16 }
  0x5c   : > { %8394 = vst [vmem:[#allocation11_spill] sm:$0xff] %v5477_v21 }
  0x65   : > { %733 = vmatmul.bf16.gmra.mxu0 %v5254_v0 }
  0x66   : > { %791 = vmatmul.bf16.gmra.mxu1 %v5256_v1 }
  0x67   : > { %849 = vmatmul.bf16.gmra.mxu2 %v5258_v2 }
  0x68   : > { %907 = vmatmul.bf16.gmra.mxu3 %v5260_v3 }
  0x75   : > { %738 = vmatmul.bf16.gmra.mxu0 %v5298_v28 }
  0x76   : > { %796 = vmatmul.bf16.gmra.mxu1 %v5300_v29 }
  0x77   : > { %854 = vmatmul.bf16.gmra.mxu2 %v5302_v30 }
  0x78   : > { %912 = vmatmul.bf16.gmra.mxu3 %v5304_v31 }
  0x85   : > { %743 = vmatmul.bf16.gmra.mxu0 %v5342_v60 }
  0x86   : > { %801 = vmatmul.bf16.gmra.mxu1 %v5344_v61 }
  0x87   : > { %859 = vmatmul.bf16.gmra.mxu2 %v5346_v62 }
  0x88   : > { %917 = vmatmul.bf16.gmra.mxu3 %v5348_v63 }
  0x95   : > { %748 = vmatmul.bf16.gmra.mxu0 %v5386_v32 }
  0x96   : > { %806 = vmatmul.bf16.gmra.mxu1 %v5388_v33 }
  0x97   : > { %864 = vmatmul.bf16.gmra.mxu2 %v5390_v34 }
  0x98   : > { %922 = vmatmul.bf16.gmra.mxu3 %v5392_v35 }
  0xa5   : > { %753 = vmatmul.bf16.gmra.mxu0 %v5406_v44 }
  0xa6   : > { %811 = vmatmul.bf16.gmra.mxu1 %v5408_v50 }
  0xa7   : > { %869 = vmatmul.bf16.gmra.mxu2 %v5410_v51 }
  0xa8   : > { %927 = vmatmul.bf16.gmra.mxu3 %v5412_v54 }
  0xb2   : > { %v719_v12 = vpop.f32.mrf.mxu0 }
  0xb3   : > { %v720_v18 = vadd.f32 %v719_v12, %v5424_v5  ;;  %v777_v19 = vpop.f32.mrf.mxu1  ;;  %v277_v12 = vld [vmem:[%s5106_s10 + $0x258] sm:$0xff] }
  0xb4   : > { %v5482_v37 = vpack.c.bf16 %v277_v12, %v277_v12 }
  0xb5   : > { %v778_v41 = vadd.f32 %v777_v19, %v720_v18  ;;  %758 = vmatmul.bf16.gmra.mxu0 %v5431_v11 }
  0xb6   : > { %816 = vmatmul.bf16.gmra.mxu1 %v5433_v13  ;;  %8396 = vst [vmem:[#allocation13_spill] sm:$0xff] %v5482_v37 }
  0xb7   : > { %874 = vmatmul.bf16.gmra.mxu2 %v5435_v14 }
  0xb8   : > { %932 = vmatmul.bf16.gmra.mxu3 %v5447_v20 }
  0xba   : > { %v835_v43 = vpop.f32.mrf.mxu2  ;;  %v721_v58 = vpop.f32.mrf.mxu0 }
  0xbb   : > { %v836_v55 = vadd.f32 %v835_v43, %v778_v41  ;;  %v893_v56 = vpop.f32.mrf.mxu3  ;;  %v722_v59 = vadd.f32 %v721_v58, %v5424_v5  ;;  %v779_v4 = vpop.f32.mrf.mxu1 }
  0xbd   : > { %v5469_v6 = vadd.f32 %v893_v56, %v836_v55  ;;  %v780_v7 = vadd.f32 %v779_v4, %v722_v59 }
  0xbf   : > { %8392 = vst [vmem:[#allocation9_spill] sm:$0xff] %v5469_v6  ;;  %v5491_v40 = vmul.f32 0.70710677, %v5469_v6  ;;  %v5611_v14 = vmul.f32 0.5, %v5469_v6 }
  0xc1   : > { %v1250_v59 = vmul.f32 %v5491_v40, %v5491_v40  ;;  %8407 = vst [vmem:[#allocation24_spill] sm:$0xff] %v5611_v14 }
  0xc2   : > { %v837_v15 = vpop.f32.mrf.mxu2  ;;  %v724_v19 = vpop.f32.mrf.mxu0 }
  0xc3   : > { %v838_v17 = vadd.f32 %v837_v15, %v780_v7  ;;  %v895_v18 = vpop.f32.mrf.mxu3  ;;  %v725_v23 = vadd.f32 %v724_v19, %v5424_v5  ;;  %v782_v36 = vpop.f32.mrf.mxu1  ;;  %v5498_v8 = vmin.f32 %v1250_v59, 16.0 }
  0xc5   : > { %v5484_v38 = vadd.f32 %v895_v18, %v838_v17  ;;  %v783_v39 = vadd.f32 %v782_v36, %v725_v23  ;;  %763 = vmatmul.bf16.gmra.mxu0 %v5475_v16  ;;  %v1263_v19 = vmul.f32 3.8918573e-05, %v5498_v8 }
  0xc6   : > { %821 = vmatmul.bf16.gmra.mxu1 %v5477_v21 }
  0xc7   : > { %8397 = vst [vmem:[#allocation14_spill] sm:$0xff] %v5484_v38  ;;  %879 = vmatmul.bf16.gmra.mxu2 %v5479_v22  ;;  %v5503_v23 = vmul.f32 0.70710677, %v5484_v38 }
  0xc8   : > { %937 = vmatmul.bf16.gmra.mxu3 %v5482_v37 }
  0xca   : > { %v840_v41 = vpop.f32.mrf.mxu2  ;;  %v726_v55 = vpop.f32.mrf.mxu0 }
  0xcb   : > { %v841_v42 = vadd.f32 %v840_v41, %v783_v39  ;;  %v898_v43 = vpop.f32.mrf.mxu3  ;;  %v727_v56 = vadd.f32 %v726_v55, %v5424_v5  ;;  %v784_v58 = vpop.f32.mrf.mxu1  ;;  %v1264_v41 = vadd.f32 0.001143296, %v1263_v19 }
  0xcd   : > { %v5496_v4 = vadd.f32 %v898_v43, %v841_v42  ;;  %v785_v7 = vadd.f32 %v784_v58, %v727_v56  ;;  %v1330_v42 = vmul.f32 %v5503_v23, %v5503_v23 }
  0xcf   : > { %8398 = vst [vmem:[#allocation15_spill] sm:$0xff] %v5496_v4 }
  0xd2   : > { %v842_v9 = vpop.f32.mrf.mxu2  ;;  %v729_v15 = vpop.f32.mrf.mxu0 }
  0xd3   : > { %v843_v10 = vadd.f32 %v842_v9, %v785_v7  ;;  %v900_v12 = vpop.f32.mrf.mxu3  ;;  %v730_v17 = vadd.f32 %v729_v15, %v5424_v5  ;;  %v787_v18 = vpop.f32.mrf.mxu1  ;;  %v1265_v9 = vmul.f32 %v1264_v41, %v5498_v8 }
  0xd5   : > { %v5505_v36 = vadd.f32 %v900_v12, %v843_v10  ;;  %v788_v39 = vadd.f32 %v787_v18, %v730_v17  ;;  %950 = vmatmul.bf16.vlgmr.msrb.gmra.mxu0 %v5126_v47  ;;  %v5515_v47 = vmin.f32 %v1330_v42, 16.0  ;;  %v1266_v10 = vadd.f32 0.014752088, %v1265_v9 }
  0xd6   : > { %1008 = vmatmul.bf16.vlgmr.msrb.gmra.mxu1 %v5131_v52  ;;  %v1252_v12 = vmul.f32 2.1237322e-06, %v5498_v8 }
  0xd7   : > { %8399 = vst [vmem:[#allocation16_spill] sm:$0xff] %v5505_v36  ;;  %1066 = vmatmul.bf16.vlgmr.msrb.gmra.mxu2 %v5133_v53 }
  0xd8   : > { %1124 = vmatmul.bf16.vlgmr.msrb.gmra.mxu3 %v5140_v57  ;;  %v1343_v57 = vmul.f32 3.8918573e-05, %v5515_v47  ;;  %v1253_v42 = vadd.f32 0.00028619796, %v1252_v12 }
  0xda   : > { %v845_v43 = vpop.f32.mrf.mxu2  ;;  %v731_v58 = vpop.f32.mrf.mxu0  ;;  %v1344_v41 = vadd.f32 0.001143296, %v1343_v57  ;;  %v1254_v9 = vmul.f32 %v1253_v42, %v5498_v8 }
  0xdb   : > { %v846_v55 = vadd.f32 %v845_v43, %v788_v39  ;;  %v903_v56 = vpop.f32.mrf.mxu3  ;;  %v732_v59 = vadd.f32 %v731_v58, %v5424_v5  ;;  %v789_v7 = vpop.f32.mrf.mxu1  ;;  %v1267_v58 = vmul.f32 %v1266_v10, %v5498_v8 }
  0xdd   : > { %v5517_v52 = vadd.f32 %v903_v56, %v846_v55  ;;  %v790_v53 = vadd.f32 %v789_v7, %v732_v59  ;;  %v5527_v56 = vmul.f32 0.70710677, %v5496_v4  ;;  %v1268_v59 = vadd.f32 0.112945676, %v1267_v58 }
  0xde   : > { %v1345_v7 = vmul.f32 %v1344_v41, %v5515_v47 }
  0xdf   : > { %8400 = vst [vmem:[#allocation17_spill] sm:$0xff] %v5517_v52  ;;  %v1410_v10 = vmul.f32 %v5527_v56, %v5527_v56  ;;  %v5592_v16 = vmul.f32 0.70710677, %v5517_v52 }
  0xe1   : > { %8406 = vst [vmem:[#allocation23_spill] sm:$0xff] %v5592_v16 }
  0xe2   : > { %v847_v15 = vpop.f32.mrf.mxu2  ;;  %v734_v18 = vpop.f32.mrf.mxu0 }
  0xe3   : > { %v905_v17 = vpop.f32.mrf.mxu3  ;;  %v848_v19 = vadd.f32 %v847_v15, %v790_v53  ;;  %v735_v39 = vadd.f32 %v734_v18, %v5424_v5  ;;  %v792_v43 = vpop.f32.mrf.mxu1 }
  0xe5   : > { %v5523_v37 = vadd.f32 %v905_v17, %v848_v19  ;;  %v793_v55 = vadd.f32 %v792_v43, %v735_v39  ;;  %955 = vmatmul.bf16.gmra.mxu0 %v5190_v24  ;;  %v1269_v17 = vmul.f32 %v1268_v59, %v5498_v8  ;;  %v1332_v19 = vmul.f32 2.1237322e-06, %v5515_v47 }
  0xe6   : > { %1013 = vmatmul.bf16.gmra.mxu1 %v5192_v25  ;;  %v1346_v25 = vadd.f32 0.014752088, %v1345_v7  ;;  %v5541_v39 = vmin.f32 %v1410_v10, 16.0 }
  0xe7   : > { %8401 = vst [vmem:[#allocation18_spill] sm:$0xff] %v5523_v37  ;;  %1071 = vmatmul.bf16.gmra.mxu2 %v5194_v26  ;;  %v1270_v58 = vadd.f32 0.4994258, %v1269_v17 }
  0xe8   : > { %1129 = vmatmul.bf16.gmra.mxu3 %v5196_v27  ;;  %v1255_v27 = vadd.f32 0.0036580483, %v1254_v9  ;;  %v1347_v41 = vmul.f32 %v1346_v25, %v5515_v47 }
  0xea   : > { %v850_v53 = vpop.f32.mrf.mxu2  ;;  %v736_v12 = vpop.f32.mrf.mxu0  ;;  %v1256_v42 = vmul.f32 %v1255_v27, %v5498_v8  ;;  %v1348_v10 = vadd.f32 0.112945676, %v1347_v41  ;;  %v4570_v41 = vld [vmem:[%s8305_s2 + $0x74] sm:$0xf] }
  0xeb   : > { %v851_v57 = vadd.f32 %v850_v53, %v793_v55  ;;  %v908_v24 = vpop.f32.mrf.mxu3  ;;  %v794_v15 = vpop.f32.mrf.mxu1  ;;  %v737_v26 = vadd.f32 %v736_v12, %v5424_v5  ;;  %v1333_v53 = vadd.f32 0.00028619796, %v1332_v19  ;;  %v1271_v12 = vmul.f32 %v1270_v58, %v5498_v8 }
  0xec   : > { %v5556_v19 = vmul.f32 0.70710677, %v5505_v36 }
  0xed   : > { %v5537_v18 = vadd.f32 %v908_v24, %v851_v57  ;;  %v795_v43 = vadd.f32 %v794_v15, %v737_v26  ;;  %v1423_v57 = vmul.f32 3.8918573e-05, %v5541_v39  ;;  %v1257_v15 = vadd.f32 0.05243302, %v1256_v42 }
  0xee   : > { %v1334_v25 = vmul.f32 %v1333_v53, %v5515_v47  ;;  %v1412_v26 = vmul.f32 2.1237322e-06, %v5541_v39  ;;  %8404 = vst [vmem:[#allocation21_spill] sm:$0xff] %v5556_v19 }
  0xef   : > { %8402 = vst [vmem:[#allocation19_spill] sm:$0xff] %v5537_v18  ;;  %v1424_v27 = vadd.f32 0.001143296, %v1423_v57 }
  0xf0   : > { %v1413_v42 = vadd.f32 0.00028619796, %v1412_v26 }
  0xf1   : > { %v1425_v57 = vmul.f32 %v1424_v27, %v5541_v39 }
  0xf2   : > { %v852_v55 = vpop.f32.mrf.mxu2  ;;  %v739_v7 = vpop.f32.mrf.mxu0 }
  0xf3   : > { %v853_v21 = vadd.f32 %v852_v55, %v795_v43  ;;  %v910_v59 = vpop.f32.mrf.mxu3  ;;  %v740_v24 = vadd.f32 %v739_v7, %v5424_v5  ;;  %v797_v9 = vpop.f32.mrf.mxu1  ;;  %v1349_v43 = vmul.f32 %v1348_v10, %v5515_v47  ;;  %v4483_v7 = vld [vmem:[%s8305_s2 + $0xf8] sm:$0xf0] }
  0xf5   : > { %v5548_v22 = vadd.f32 %v910_v59, %v853_v21  ;;  %v798_v17 = vadd.f32 %v797_v9, %v740_v24  ;;  %960 = vmatmul.bf16.gmra.mxu0 %v5228_v45  ;;  %v5559_v21 = vadd.f32 1.0, %v1271_v12  ;;  %v1258_v45 = vmul.f32 %v1257_v15, %v5498_v8 }
  0xf6   : > { %1018 = vmatmul.bf16.gmra.mxu1 %v5230_v46  ;;  %v4419_v46 = vld [vmem:[%s8305_s2 + $0x78] sm:$0xf0]  ;;  %v1490_v24 = vmul.f32 %v5556_v19, %v5556_v19  ;;  %v1350_v26 = vadd.f32 0.4994258, %v1349_v43 }
  0xf7   : > { %8403 = vst [vmem:[#allocation20_spill] sm:$0xff] %v5548_v22  ;;  %1076 = vmatmul.bf16.gmra.mxu2 %v5232_v48  ;;  %v4586_v48 = vld [vmem:[%s8305_s2 + $0xf4] sm:$0xf]  ;;  %v4422_v9 = vor.u32 %v4570_v41, %v4419_v46  ;;  %4634 = vrcp.f32 %v5559_v21  ;;  %v1259_v46 = vadd.f32 0.18741608, %v1258_v45  ;;  %vm1278_vm1 = vweird.f32 %v5559_v21 }
  0xf8   : > { %1134 = vmatmul.bf16.gmra.mxu3 %v5234_v49  ;;  %v1335_v49 = vadd.f32 0.0036580483, %v1334_v25  ;;  %v4486_v15 = vor.u32 %v4586_v48, %v4483_v7  ;;  %v4571_v25 = vld [vmem:[%s8305_s2 + $0x74] sm:$0xf0]  ;;  %v1426_v48 = vadd.f32 0.014752088, %v1425_v57  ;;  %v1351_v43 = vmul.f32 %v1350_v26, %v5515_v47 }
  0xf9   : > { %3180 = vmatpush.bf16.msra.mxu2 %v4422_v9  ;;  %v5589_v7 = vmin.f32 %v1490_v24, 16.0  ;;  %v4587_v45 = vld [vmem:[%s8305_s2 + $0xf4] sm:$0xf0] }
  0xfa   : > { %v855_v58 = vpop.f32.mrf.mxu2  ;;  %v741_v59 = vpop.f32.mrf.mxu0  ;;  %3238 = vmatpush.bf16.msra.mxu3 %v4486_v15  ;;  %v1336_v20 = vmul.f32 %v1335_v49, %v5515_v47  ;;  %v1427_v49 = vmul.f32 %v1426_v48, %v5541_v39  ;;  %v5620_v48 = vmul.f32 0.5, %v5484_v38 }
  0xfb   : > { %v856_v55 = vadd.f32 %v855_v58, %v798_v17  ;;  %v913_v53 = vpop.f32.mrf.mxu3  ;;  %v742_v12 = vadd.f32 %v741_v59, %v5424_v5  ;;  %v799_v10 = vpop.f32.mrf.mxu1  ;;  %v4417_v17 = vld [vmem:[%s8305_s2 + $0x70] sm:$0xf]  ;;  %v1414_v59 = vmul.f32 %v1413_v42, %v5541_v39  ;;  %v1260_v42 = vmul.f32 %v1259_v46, %v5498_v8 }
  0xfc   : > { %v4418_v58 = vor.u32 %v4571_v25, %v4417_v17  ;;  %v1492_v17 = vmul.f32 2.1237322e-06, %v5589_v7  ;;  %v1570_v25 = vmul.f32 %v5592_v16, %v5592_v16  ;;  %v1337_v13 = vadd.f32 0.05243302, %v1336_v20  ;;  %8409 = vst [vmem:[#allocation26_spill] sm:$0xff] %v5620_v48 }
  0xfd   : > { %v5586_v27 = vadd.f32 %v913_v53, %v856_v55  ;;  %v800_v41 = vadd.f32 %v799_v10, %v742_v12  ;;  %v4481_v53 = vld [vmem:[%s8305_s2 + $0xf0] sm:$0xf]  ;;  %v5602_v57 = vpop.eup %4634  ;;  %v1415_v15 = vadd.f32 0.0036580483, %v1414_v59  ;;  %v5613_v8 = vadd.f32 1.0, %v1351_v43 }
  0xfe   : > { %3064 = vmatpush.bf16.msra.mxu0 %v4418_v58  ;;  %v4482_v12 = vor.u32 %v4587_v45, %v4481_v53  ;;  %v1274_v46 = vmul.f32 %v5602_v57, %v5559_v21  ;;  %v5623_v59 = vmul.f32 0.70710677, %v5523_v37  ;;  %v1261_v53 = vadd.f32 1.1283791, %v1260_v42 }
  0xff   : > { %8405 = vst [vmem:[#allocation22_spill] sm:$0xff] %v5586_v27  ;;  %v1282_v20 = vand.u32 2147483647, %v5559_v21  ;;  %v1428_v43 = vadd.f32 0.112945676, %v1427_v49  ;;  %v1416_v45 = vmul.f32 %v1415_v15, %v5541_v39  ;;  %4636 = vrcp.f32 %v5613_v8 }
 0x100   : > { %3122 = vmatpush.bf16.msra.mxu1 %v4482_v12  ;;  %8410 = vst [vmem:[#allocation27_spill] sm:$0xff] %v5623_v59  ;;  %v1503_v12 = vmul.f32 3.8918573e-05, %v5589_v7  ;;  %v1275_v42 = vsub.f32 1.0, %v1274_v46  ;;  %v5659_v48 = vmul.f32 0.5, %v5496_v4  ;;  %vm1279_vm2 = vweird.f32 %v5602_v57 }
 0x101   : > { %v1429_v46 = vmul.f32 %v1428_v43, %v5541_v39  ;;  %v1417_v11 = vadd.f32 0.05243302, %v1416_v45  ;;  %v5665_v43 = vmul.f32 0.5, %v5505_v36  ;;  %vm5676_vm0 = vcmp.eq.f32.partialorder %v1282_v20, 8.507059e+37  ;;  %v4569_v20 = vld [vmem:[%s8305_s2 + $0x64] sm:$0xf0]  ;;  %vm5715_vm3 = vmor %vm1278_vm1, %vm1279_vm2 }
 0x102   : > { %v857_v55 = vpop.f32.mrf.mxu2  ;;  %v744_v10 = vpop.f32.mrf.mxu0  ;;  %8412 = vst [vmem:[#allocation29_spill] sm:$0xff] %v5659_v48  ;;  %vm1358_vm4 = vweird.f32 %v5613_v8 }
 0x103   : > { %v858_v24 = vadd.f32 %v857_v55, %v800_v41  ;;  %v915_v9 = vpop.f32.mrf.mxu3  ;;  %v745_v26 = vadd.f32 %v744_v10, %v5424_v5  ;;  %v802_v58 = vpop.f32.mrf.mxu1  ;;  %v1338_v10 = vmul.f32 %v1337_v13, %v5515_v47  ;;  %v1650_v13 = vmul.f32 %v5623_v59, %v5623_v59  ;;  %8414 = vst [vmem:[#allocation31_spill] sm:$0xff] %v5665_v43 }
 0x105   : > { %v5615_v41 = vadd.f32 %v915_v9, %v858_v24  ;;  %v803_v55 = vadd.f32 %v802_v58, %v745_v26  ;;  %965 = vmatmul.bf16.gmra.mxu0 %v5254_v0  ;;  %v1493_v24 = vadd.f32 0.00028619796, %v1492_v17  ;;  %v5630_v9 = vmin.f32 %v1570_v25, 16.0  ;;  %v4568_v0 = vld [vmem:[%s8305_s2 + $0x64] sm:$0xf] }
 0x106   : > { %1023 = vmatmul.bf16.gmra.mxu1 %v5256_v1  ;;  %v4411_v1 = vld [vmem:[%s8305_s2 + $0x68] sm:$0xf0]  ;;  %v5652_v25 = vmul.f32 0.70710677, %v5537_v18  ;;  %v1339_v19 = vadd.f32 0.18741608, %v1338_v10 }
 0x107   : > { %8408 = vst [vmem:[#allocation25_spill] sm:$0xff] %v5615_v41  ;;  %1081 = vmatmul.bf16.gmra.mxu2 %v5258_v2  ;;  %v4584_v2 = vld [vmem:[%s8305_s2 + $0xe4] sm:$0xf]  ;;  %v4414_v15 = vor.u32 %v4568_v0, %v4411_v1  ;;  %v4475_v17 = vld [vmem:[%s8305_s2 + $0xe8] sm:$0xf0]  ;;  %v1494_v16 = vmul.f32 %v1493_v24, %v5589_v7  ;;  %v5667_v45 = vmin.f32 %v1650_v13, 16.0 }
 0x108   : > { %1139 = vmatmul.bf16.gmra.mxu3 %v5260_v3  ;;  %v1284_v3 = vand.u32 2147483648, %v5559_v21  ;;  %8411 = vst [vmem:[#allocation28_spill] sm:$0xff] %v5652_v25  ;;  %v4478_v6 = vor.u32 %v4584_v2, %v4475_v17  ;;  %v1572_v59 = vmul.f32 2.1237322e-06, %v5630_v9  ;;  %v1276_v2 = vmul.f32 %v5602_v57, %v1275_v42 }
 0x109   : > { %3181 = vmatpush.bf16.msra.mxu2 %v4414_v15  ;;  %v1730_v15 = vmul.f32 %v5652_v25, %v5652_v25  ;;  %v1430_v17 = vadd.f32 0.4994258, %v1429_v46  ;;  %v1495_v42 = vadd.f32 0.0036580483, %v1494_v16  ;;  %v4585_v46 = vld [vmem:[%s8305_s2 + $0xe4] sm:$0xf0] }
 0x10a   : > { %v860_v49 = vpop.f32.mrf.mxu2  ;;  %v746_v38 = vpop.f32.mrf.mxu0  ;;  %3239 = vmatpush.bf16.msra.mxu3 %v4478_v6  ;;  %v1285_v10 = vor.u32 1.1754944e-38, %v1284_v3  ;;  %v1573_v13 = vadd.f32 0.00028619796, %v1572_v59  ;;  %v1277_v59 = vadd.f32 %v5602_v57, %v1276_v2 }
 0x10b   : > { %v861_v26 = vadd.f32 %v860_v49, %v803_v55  ;;  %v918_v58 = vpop.f32.mrf.mxu3  ;;  %v747_v0 = vadd.f32 %v746_v38, %v5424_v5  ;;  %v804_v1 = vpop.f32.mrf.mxu1  ;;  %v1504_v55 = vadd.f32 0.001143296, %v1503_v12  ;;  %v5672_v38 = vmul.f32 %v1261_v53, %v5491_v40  ;;  %v4409_v53 = vld [vmem:[%s8305_s2 + $0x60] sm:$0xf] }
 0x10c   : > { %v5669_v49 = vpop.eup %4636  ;;  %v1418_v12 = vmul.f32 %v1417_v11, %v5541_v39  ;;  %v1340_v40 = vmul.f32 %v1339_v19, %v5515_v47  ;;  %v4473_v11 = vld [vmem:[%s8305_s2 + $0xe0] sm:$0xf]  ;;  %v1652_v47 = vmul.f32 2.1237322e-06, %v5667_v45  ;;  %v1496_v48 = vmul.f32 %v1495_v42, %v5589_v7 }
 0x10d   : > { %v5661_v14 = vadd.f32 %v918_v58, %v861_v26  ;;  %v805_v24 = vadd.f32 %v804_v1, %v747_v0  ;;  %v5682_v26 = vmul.f32 0.70710677, %v5548_v22  ;;  %v1505_v16 = vmul.f32 %v1504_v55, %v5589_v7 }
 0x10e   : > { %v1354_v3 = vmul.f32 %v5669_v49, %v5613_v8  ;;  %v4410_v58 = vor.u32 %v4569_v20, %v4409_v53  ;;  %v5704_v0 = vmin.f32 %v1730_v15, 16.0  ;;  %v4474_v43 = vor.u32 %v4585_v46, %v4473_v11 }
 0x10f   : > { %8413 = vst [vmem:[#allocation30_spill] sm:$0xff] %v5661_v14  ;;  %v1431_v55 = vmul.f32 %v1430_v17, %v5541_v39  ;;  %v1419_v2 = vadd.f32 0.18741608, %v1418_v12  ;;  %v1810_v25 = vmul.f32 %v5682_v26, %v5682_v26  ;;  %v1574_v15 = vmul.f32 %v1573_v13, %v5630_v9 }
 0x110   : > { %3065 = vmatpush.bf16.msra.mxu0 %v4410_v58  ;;  %v5721_v17 = vmul.f32 0.70710677, %v5586_v27  ;;  %3123 = vmatpush.bf16.msra.mxu1 %v4474_v43  ;;  %v1506_v42 = vadd.f32 0.014752088, %v1505_v16  ;;  %v1355_v11 = vsub.f32 1.0, %v1354_v3  ;;  %v5730_v46 = vmul.f32 0.5, %v5517_v52 }
 0x111   : > { %v1341_v58 = vadd.f32 1.1283791, %v1340_v40  ;;  %v1732_v13 = vmul.f32 2.1237322e-06, %v5704_v0  ;;  %v1497_v43 = vadd.f32 0.05243302, %v1496_v48  ;;  %vm1359_vm5 = vweird.f32 %v5669_v49 }
 0x112   : > { %v862_v19 = vpop.f32.mrf.mxu2  ;;  %v749_v4 = vpop.f32.mrf.mxu0  ;;  %8420 = vst [vmem:[#allocation33_spill] sm:$0xff] %v5730_v46  ;;  %v5739_v16 = vmin.f32 %v1810_v25, 16.0  ;;  %v1575_v40 = vadd.f32 0.0036580483, %v1574_v15  ;;  %v1364_v3 = vand.u32 2147483648, %v5613_v8  ;;  %vm5784_vm7 = vmor %vm1358_vm4, %vm1359_vm5 }
 0x113   : > { %v863_v1 = vadd.f32 %v862_v19, %v805_v24  ;;  %v920_v36 = vpop.f32.mrf.mxu3  ;;  %v750_v53 = vadd.f32 %v749_v4, %v5424_v5  ;;  %v807_v20 = vpop.f32.mrf.mxu1  ;;  %v1281_v4 = vsel %vm5715_vm3, %v5602_v57, %v1277_v59  ;;  %v1653_v19 = vadd.f32 0.00028619796, %v1652_v47  ;;  %v4401_v46 = vld [vmem:[%s8305_s2 + $0x50] sm:$0xf] }
 0x114   : > { %v1362_v57 = vand.u32 2147483647, %v5613_v8  ;;  %v1356_v59 = vmul.f32 %v5669_v49, %v1355_v11  ;;  %v1420_v47 = vmul.f32 %v1419_v2, %v5541_v39  ;;  %v1576_v24 = vmul.f32 %v1575_v40, %v5630_v9 }
 0x115   : > { %v5723_v12 = vadd.f32 %v920_v36, %v863_v1  ;;  %v808_v21 = vadd.f32 %v807_v20, %v750_v53  ;;  %970 = vmatmul.bf16.gmra.mxu0 %v5298_v28  ;;  %v5735_v36 = vadd.f32 1.0, %v1431_v55  ;;  %v1286_v28 = vsel %vm5676_vm0, %v1285_v10, %v1281_v4 }
 0x116   : > { %1028 = vmatmul.bf16.gmra.mxu1 %v5300_v29  ;;  %v1890_v29 = vmul.f32 %v5721_v17, %v5721_v17  ;;  %v1654_v48 = vmul.f32 %v1653_v19, %v5667_v45  ;;  %v5754_v55 = vmul.f32 %v1286_v28, %v5672_v38  ;;  %v1498_v53 = vmul.f32 %v1497_v43, %v5589_v7 }
 0x117   : > { %8419 = vst [vmem:[#allocation32_spill] sm:$0xff] %v5723_v12  ;;  %1086 = vmatmul.bf16.gmra.mxu2 %v5302_v30  ;;  %v1507_v30 = vmul.f32 %v1506_v42, %v5589_v7  ;;  %4638 = vrcp.f32 %v5735_v36  ;;  %v1812_v20 = vmul.f32 2.1237322e-06, %v5739_v16  ;;  %v1357_v11 = vadd.f32 %v5669_v49, %v1356_v59 }
 0x118   : > { %1144 = vmatmul.bf16.gmra.mxu3 %v5304_v31  ;;  %v1733_v31 = vadd.f32 0.00028619796, %v1732_v13  ;;  %v5760_v15 = vmin.f32 %v1890_v29, 16.0  ;;  %v1655_v19 = vadd.f32 0.0036580483, %v1654_v48  ;;  %vm5768_vm6 = vcmp.eq.f32.partialorder %v1362_v57, 8.507059e+37 }
 0x119   : > { %v1508_v4 = vadd.f32 0.112945676, %v1507_v30  ;;  %v5766_v38 = vmul.f32 0.70710677, %v5615_v41  ;;  %v1365_v43 = vor.u32 1.1754944e-38, %v1364_v3  ;;  %v4321_v29 = vclamps-f32 %v5754_v55, 1.0 }
 0x11a   : > { %v865_v25 = vpop.f32.mrf.mxu2  ;;  %v751_v1 = vpop.f32.mrf.mxu0  ;;  %v1734_v28 = vmul.f32 %v1733_v31, %v5704_v0  ;;  %v1583_v40 = vmul.f32 3.8918573e-05, %v5630_v9  ;;  %v5776_v30 = vmul.f32 0.5, %v5523_v37  ;;  %v1813_v59 = vadd.f32 0.00028619796, %v1812_v20 }
 0x11b   : > { %v866_v6 = vadd.f32 %v865_v25, %v808_v21  ;;  %v923_v10 = vpop.f32.mrf.mxu3  ;;  %v752_v39 = vadd.f32 %v751_v1, %v5424_v5  ;;  %v809_v2 = vpop.f32.mrf.mxu1  ;;  %v1421_v25 = vadd.f32 1.1283791, %v1420_v47  ;;  %v1499_v3 = vadd.f32 0.18741608, %v1498_v53  ;;  %v4566_v53 = vld [vmem:[%s8305_s2 + $0x54] sm:$0xf] }
 0x11c   : > { %8424 = vst [vmem:[#allocation35_spill] sm:$0xff] %v5776_v30  ;;  %v1577_v31 = vadd.f32 0.05243302, %v1576_v24  ;;  %v1509_v47 = vmul.f32 %v1508_v4, %v5589_v7  ;;  %v1361_v1 = vsel %vm5784_vm7, %v5669_v49, %v1357_v11  ;;  %v1656_v55 = vmul.f32 %v1655_v19, %v5667_v45  ;;  %v4467_v11 = vld [vmem:[%s8305_s2 + $0xd8] sm:$0xf0] }
 0x11d   : > { %v5762_v42 = vadd.f32 %v923_v10, %v866_v6  ;;  %v810_v21 = vadd.f32 %v809_v2, %v752_v39  ;;  %v5778_v48 = vpop.eup %4638  ;;  %v1892_v6 = vmul.f32 2.1237322e-06, %v5760_v15  ;;  %v1342_v10 = vmul.f32 %v1341_v58, %v5503_v23  ;;  %v4403_v39 = vld [vmem:[%s8305_s2 + $0x58] sm:$0xf0]  ;;  %v4582_v23 = vld [vmem:[%s8305_s2 + $0xd4] sm:$0xf] }
 0x11e   : > { %v1970_v8 = vmul.f32 %v5766_v38, %v5766_v38  ;;  %v1735_v58 = vadd.f32 0.0036580483, %v1734_v28  ;;  %v4406_v24 = vor.u32 %v4566_v53, %v4403_v39  ;;  %v1584_v19 = vadd.f32 0.001143296, %v1583_v40 }
 0x11f   : > { %8421 = vst [vmem:[#allocation34_spill] sm:$0xff] %v5762_v42  ;;  %v1814_v57 = vmul.f32 %v1813_v59, %v5739_v16  ;;  %v4470_v30 = vor.u32 %v4582_v23, %v4467_v11  ;;  %v1434_v28 = vmul.f32 %v5778_v48, %v5735_v36  ;;  %v1510_v59 = vadd.f32 0.4994258, %v1509_v47 }
 0x120   : > { %3182 = vmatpush.bf16.msra.mxu2 %v4406_v24  ;;  %v5822_v39 = vmul.f32 %v1421_v25, %v5527_v56  ;;  %v5824_v23 = vmin.f32 %v1970_v8, 16.0  ;;  %v1585_v56 = vmul.f32 %v1584_v19, %v5630_v9  ;;  %v1500_v25 = vmul.f32 %v1499_v3, %v5589_v7 }
 0x121   : > { %3240 = vmatpush.bf16.msra.mxu3 %v4470_v30  ;;  %v1736_v13 = vmul.f32 %v1735_v58, %v5704_v0  ;;  %vm1439_vm8 = vweird.f32 %v5778_v48  ;;  %vm1438_vm9 = vweird.f32 %v5735_v36 }
 0x122   : > { %v867_v20 = vpop.f32.mrf.mxu2  ;;  %v754_v4 = vpop.f32.mrf.mxu0  ;;  %v1972_v30 = vmul.f32 2.1237322e-06, %v5824_v23  ;;  %v1586_v19 = vadd.f32 0.014752088, %v1585_v56  ;;  %vm5900_vm10 = vmor %vm1438_vm9, %vm1439_vm8 }
 0x123   : > { %v868_v49 = vadd.f32 %v867_v20, %v810_v21  ;;  %v925_v2 = vpop.f32.mrf.mxu3  ;;  %v755_v37 = vadd.f32 %v754_v4, %v5424_v5  ;;  %v812_v52 = vpop.f32.mrf.mxu1  ;;  %v4567_v21 = vld [vmem:[%s8305_s2 + $0x54] sm:$0xf0]  ;;  %v1893_v20 = vadd.f32 0.00028619796, %v1892_v6  ;;  %v5827_v4 = vmul.f32 0.70710677, %v5661_v14 }
 0x124   : > { %v4402_v40 = vor.u32 %v4567_v21, %v4401_v46  ;;  %v1366_v6 = vsel %vm5768_vm6, %v1365_v43, %v1361_v1  ;;  %v5836_v46 = vadd.f32 1.0, %v4321_v29  ;;  %v4583_v43 = vld [vmem:[%s8305_s2 + $0xd4] sm:$0xf0]  ;;  %v1511_v29 = vmul.f32 %v1510_v59, %v5589_v7 }
 0x125   : > { %v5819_v53 = vadd.f32 %v925_v2, %v868_v49  ;;  %8428 = vst [vmem:[#allocation37_spill] sm:$0xff] %v5827_v4  ;;  %v813_v11 = vadd.f32 %v812_v52, %v755_v37  ;;  %975 = vmatmul.bf16.gmra.mxu0 %v5342_v60  ;;  %v1578_v49 = vmul.f32 %v1577_v31, %v5630_v9  ;;  %v1657_v2 = vadd.f32 0.05243302, %v1656_v55 }
 0x126   : > { %1033 = vmatmul.bf16.gmra.mxu1 %v5344_v61  ;;  %v1815_v37 = vadd.f32 0.0036580483, %v1814_v57  ;;  %3066 = vmatpush.bf16.msra.mxu0 %v4402_v40  ;;  %v1435_v60 = vsub.f32 1.0, %v1434_v28  ;;  %v5841_v52 = vmul.f32 0.5, %v5537_v18  ;;  %v1894_v61 = vmul.f32 %v1893_v20, %v5760_v15 }
 0x127   : > { %8427 = vst [vmem:[#allocation36_spill] sm:$0xff] %v5819_v53  ;;  %1091 = vmatmul.bf16.gmra.mxu2 %v5346_v62  ;;  %v4465_v62 = vld [vmem:[%s8305_s2 + $0xd0] sm:$0xf]  ;;  %v2050_v3 = vmul.f32 %v5827_v4, %v5827_v4  ;;  %v1579_v1 = vadd.f32 0.18741608, %v1578_v49  ;;  %v1658_v55 = vmul.f32 %v1657_v2, %v5667_v45 }
 0x128   : > { %1149 = vmatmul.bf16.gmra.mxu3 %v5348_v63  ;;  %8429 = vst [vmem:[#allocation38_spill] sm:$0xff] %v5841_v52  ;;  %v5852_v63 = vmul.f32 %v1366_v6, %v1342_v10  ;;  %v4466_v47 = vor.u32 %v4583_v43, %v4465_v62  ;;  %v5858_v57 = vadd.f32 1.1283791, %v1500_v25  ;;  %v1816_v7 = vmul.f32 %v1815_v37, %v5739_v16 }
 0x129   : > { %v1436_v28 = vmul.f32 %v5778_v48, %v1435_v60  ;;  %v1737_v20 = vadd.f32 0.05243302, %v1736_v13  ;;  %v1895_v40 = vadd.f32 0.0036580483, %v1894_v61  ;;  %v5865_v6 = vadd.f32 1.0, %v1511_v29 }
 0x12a   : > { %v870_v31 = vpop.f32.mrf.mxu2  ;;  %v756_v24 = vpop.f32.mrf.mxu0  ;;  %3124 = vmatpush.bf16.msra.mxu1 %v4466_v47  ;;  %v1973_v49 = vadd.f32 0.00028619796, %v1972_v30  ;;  %v5868_v2 = vmin.f32 %v2050_v3, 16.0  ;;  %v1580_v25 = vmul.f32 %v1579_v1, %v5630_v9  ;;  %v1659_v37 = vadd.f32 0.18741608, %v1658_v55 }
 0x12b   : > { %v871_v8 = vadd.f32 %v870_v31, %v813_v11  ;;  %v928_v58 = vpop.f32.mrf.mxu3  ;;  %v757_v10 = vadd.f32 %v756_v24, %v5424_v5  ;;  %v814_v21 = vpop.f32.mrf.mxu1  ;;  %v4323_v11 = vclamps-f32 %v5852_v63, 1.0  ;;  %v1444_v62 = vand.u32 2147483648, %v5735_v36  ;;  %v4564_v30 = vld [vmem:[%s8305_s2 + $0x44] sm:$0xf]  ;;  %v4395_v3 = vld [vmem:[%s8305_s2 + $0x48] sm:$0xf0] }
 0x12c   : > { %8431 = vst [vmem:[#allocation40_spill] sm:$0xff] %v5868_v2  ;;  %v1587_v43 = vmul.f32 %v1586_v19, %v5630_v9  ;;  %v1817_v60 = vadd.f32 0.05243302, %v1816_v7  ;;  %v1437_v13 = vadd.f32 %v5778_v48, %v1436_v28  ;;  %v1663_v61 = vmul.f32 3.8918573e-05, %v5667_v45 }
 0x12d   : > { %v5863_v59 = vadd.f32 %v928_v58, %v871_v8  ;;  %v815_v56 = vadd.f32 %v814_v21, %v757_v10  ;;  %v1738_v29 = vmul.f32 %v1737_v20, %v5704_v0  ;;  %v1896_v63 = vmul.f32 %v1895_v40, %v5760_v15  ;;  %v4580_v31 = vld [vmem:[%s8305_s2 + $0xc4] sm:$0xf]  ;;  %v4459_v58 = vld [vmem:[%s8305_s2 + $0xc8] sm:$0xf0] }
 0x12e   : > { %4640 = vrcp.f32 %v5865_v6  ;;  %v1974_v47 = vmul.f32 %v1973_v49, %v5824_v23  ;;  %v2052_v1 = vmul.f32 2.1237322e-06, %v5868_v2  ;;  %v4398_v8 = vor.u32 %v4564_v30, %v4395_v3 }
 0x12f   : > { %8430 = vst [vmem:[#allocation39_spill] sm:$0xff] %v5863_v59  ;;  %v1442_v24 = vand.u32 2147483647, %v5735_v36  ;;  %v5896_v19 = vmul.f32 0.70710677, %v5723_v12  ;;  %v4462_v28 = vor.u32 %v4580_v31, %v4459_v58  ;;  %v1818_v49 = vmul.f32 %v1817_v60, %v5739_v16 }
 0x130   : > { %v1588_v40 = vadd.f32 0.112945676, %v1587_v43  ;;  %3183 = vmatpush.bf16.msra.mxu2 %v4398_v8  ;;  %v1441_v36 = vsel %vm5900_vm10, %v5778_v48, %v1437_v13  ;;  %v1897_v31 = vadd.f32 0.05243302, %v1896_v63  ;;  %v1445_v18 = vor.u32 1.1754944e-38, %v1444_v62 }
 0x131   : > { %3241 = vmatpush.bf16.msra.mxu3 %v4462_v28  ;;  %v1975_v52 = vadd.f32 0.0036580483, %v1974_v47  ;;  %v2053_v4 = vadd.f32 0.00028619796, %v2052_v1  ;;  %vm1443_vm11 = vcmp.eq.f32.partialorder %v1442_v24, 8.507059e+37  ;;  %v5914_v8 = vadd.f32 1.0, %v4323_v11 }
 0x132   : > { %v872_v55 = vpop.f32.mrf.mxu2  ;;  %v759_v21 = vpop.f32.mrf.mxu0  ;;  %v2130_v48 = vmul.f32 %v5896_v19, %v5896_v19  ;;  %v1446_v13 = vsel %vm1443_vm11, %v1445_v18, %v1441_v36  ;;  %v1589_v62 = vmul.f32 %v1588_v40, %v5630_v9  ;;  %v5927_v63 = vadd.f32 1.1283791, %v1580_v25  ;;  %v4565_v25 = vld [vmem:[%s8305_s2 + $0x44] sm:$0xf0]  ;;  %v4457_v24 = vld [vmem:[%s8305_s2 + $0xc0] sm:$0xf] }
 0x133   : > { %v873_v7 = vadd.f32 %v872_v55, %v815_v56  ;;  %v930_v10 = vpop.f32.mrf.mxu3  ;;  %v760_v30 = vadd.f32 %v759_v21, %v5424_v5  ;;  %v817_v3 = vpop.f32.mrf.mxu1  ;;  %v1664_v56 = vadd.f32 0.001143296, %v1663_v61  ;;  %v1739_v55 = vadd.f32 0.18741608, %v1738_v29  ;;  %v4581_v40 = vld [vmem:[%s8305_s2 + $0xc4] sm:$0xf0] }
 0x134   : > { %v5912_v60 = vpop.eup %4640  ;;  %v1660_v61 = vmul.f32 %v1659_v37, %v5667_v45  ;;  %v5923_v29 = vmul.f32 0.5, %v5548_v22  ;;  %v1976_v18 = vmul.f32 %v1975_v52, %v5824_v23  ;;  %v2054_v37 = vmul.f32 %v2053_v4, %v5868_v2 }
 0x135   : > { %v5909_v58 = vadd.f32 %v930_v10, %v873_v7  ;;  %v818_v43 = vadd.f32 %v817_v3, %v760_v30  ;;  %980 = vmatmul.bf16.gmra.mxu0 %v5386_v32  ;;  %v1819_v32 = vadd.f32 0.18741608, %v1818_v49  ;;  %v1665_v11 = vmul.f32 %v1664_v56, %v5667_v45 }
 0x136   : > { %1038 = vmatmul.bf16.gmra.mxu1 %v5388_v33  ;;  %v1740_v47 = vmul.f32 %v1739_v55, %v5704_v0  ;;  %v5931_v33 = vmul.f32 0.5, %v5586_v27  ;;  %v1447_v7 = vmul.f32 %v1446_v13, %v5822_v39  ;;  %v1514_v52 = vmul.f32 %v5912_v60, %v5865_v6 }
 0x137   : > { %8434 = vst [vmem:[#allocation41_spill] sm:$0xff] %v5909_v58  ;;  %1096 = vmatmul.bf16.gmra.mxu2 %v5390_v34  ;;  %v1898_v34 = vmul.f32 %v1897_v31, %v5760_v15  ;;  %v5948_v10 = vmin.f32 %v2130_v48, 16.0  ;;  %v1590_v49 = vadd.f32 0.4994258, %v1589_v62  ;;  %v5953_v30 = vadd.f32 1.1283791, %v1660_v61 }
 0x138   : > { %1154 = vmatmul.bf16.gmra.mxu3 %v5392_v35  ;;  %8435 = vst [vmem:[#allocation42_spill] sm:$0xff] %v5931_v33  ;;  %v4393_v35 = vld [vmem:[%s8305_s2 + $0x40] sm:$0xf]  ;;  %v1820_v3 = vmul.f32 %v1819_v32, %v5739_v16  ;;  %v4458_v39 = vor.u32 %v4581_v40, %v4457_v24  ;;  %v1666_v56 = vadd.f32 0.014752088, %v1665_v11  ;;  %v5962_v13 = vmul.f32 0.5, %v5615_v41 }
 0x139   : > { %8436 = vst [vmem:[#allocation43_spill] sm:$0xff] %v5948_v10  ;;  %v4394_v20 = vor.u32 %v4565_v25, %v4393_v35  ;;  %v5956_v55 = vadd.f32 1.1283791, %v1740_v47  ;;  %v1899_v31 = vadd.f32 0.18741608, %v1898_v34  ;;  %v1515_v61 = vsub.f32 1.0, %v1514_v52 }
 0x13a   : > { %v875_v1 = vpop.f32.mrf.mxu2  ;;  %v761_v28 = vpop.f32.mrf.mxu0  ;;  %8438 = vst [vmem:[#allocation45_spill] sm:$0xff] %v5962_v13  ;;  %v2055_v62 = vadd.f32 0.0036580483, %v2054_v37  ;;  %3125 = vmatpush.bf16.msra.mxu1 %v4458_v39  ;;  %v2132_v32 = vmul.f32 2.1237322e-06, %v5948_v10  ;;  %v4325_v11 = vclamps-f32 %v1447_v7, 1.0  ;;  %v1591_v47 = vmul.f32 %v1590_v49, %v5630_v9 }
 0x13b   : > { %v876_v4 = vadd.f32 %v875_v1, %v818_v43  ;;  %v933_v21 = vpop.f32.mrf.mxu3  ;;  %v819_v36 = vpop.f32.mrf.mxu1  ;;  %v762_v43 = vadd.f32 %v761_v28, %v5424_v5  ;;  %3067 = vmatpush.bf16.msra.mxu0 %v4394_v20  ;;  %v1977_v1 = vadd.f32 0.05243302, %v1976_v18  ;;  %v5966_v35 = vmul.f32 0.70710677, %v5762_v42  ;;  %v4443_v33 = vld [vmem:[%s8305_s2 + $0xa8] sm:$0xf0] }
 0x13c   : > { %v5969_v34 = vadd.f32 1.1283791, %v1820_v3  ;;  %v5972_v25 = vmul.f32 0.5, %v5661_v14  ;;  %v5975_v24 = vmul.f32 0.70710677, %v5819_v53  ;;  %v1667_v18 = vmul.f32 %v1666_v56, %v5667_v45 }
 0x13d   : > { %v5958_v48 = vadd.f32 %v933_v21, %v876_v4  ;;  %v820_v37 = vadd.f32 %v819_v36, %v762_v43  ;;  %vm1518_vm12 = vweird.f32 %v5865_v6  ;;  %v1522_v52 = vand.u32 2147483647, %v5865_v6 }
 0x13e   : > { %8439 = vst [vmem:[#allocation46_spill] sm:$0xff] %v5972_v25  ;;  %v1524_v4 = vand.u32 2147483648, %v5865_v6  ;;  %v1900_v7 = vmul.f32 %v1899_v31, %v5760_v15  ;;  %v1978_v9 = vmul.f32 %v1977_v1, %v5824_v23  ;;  %v2056_v21 = vmul.f32 %v2055_v62, %v5868_v2  ;;  %v4451_v6 = vld [vmem:[%s8305_s2 + $0xb8] sm:$0xf0]  ;;  %v8475_v25 = vld [vmem:[#allocation12_spill] sm:$0xff] }
 0x13f   : > { %8437 = vst [vmem:[#allocation44_spill] sm:$0xff] %v5958_v48  ;;  %v1516_v20 = vmul.f32 %v5912_v60, %v1515_v61  ;;  %v2133_v40 = vadd.f32 0.00028619796, %v2132_v32  ;;  %v2210_v49 = vmul.f32 %v5966_v35, %v5966_v35  ;;  %v5991_v56 = vadd.f32 1.0, %v1591_v47 }
 0x140   : > { %8440 = vst [vmem:[#allocation47_spill] sm:$0xff] %v5975_v24  ;;  %v2290_v31 = vmul.f32 %v5975_v24, %v5975_v24  ;;  %v1668_v62 = vadd.f32 0.112945676, %v1667_v18  ;;  %v1743_v61 = vmul.f32 3.8918573e-05, %v5704_v0  ;;  %vm1519_vm13 = vweird.f32 %v5912_v60 }
 0x141   : > { %vm5998_vm14 = vcmp.eq.f32.partialorder %v1522_v52, 8.507059e+37  ;;  %v6004_v47 = vadd.f32 1.1283791, %v1900_v7  ;;  %v1979_v14 = vadd.f32 0.18741608, %v1978_v9  ;;  %v6009_v27 = vmin.f32 %v2210_v49, 16.0  ;;  %vm6027_vm15 = vmor %vm1518_vm12, %vm1519_vm13 }
 0x142   : > { %v877_v28 = vpop.f32.mrf.mxu2  ;;  %v764_v39 = vpop.f32.mrf.mxu0  ;;  %v2057_v18 = vadd.f32 0.05243302, %v2056_v21  ;;  %4642 = vrcp.f32 %v5991_v56  ;;  %v6017_v52 = vmin.f32 %v2290_v31, 16.0  ;;  %v8448_v7 = vld [vmem:[#allocation24_spill] sm:$0xff]  ;;  %v4578_v21 = vld [vmem:[%s8305_s2 + $0xb4] sm:$0xf]  ;;  %vm1598_vm1 = vweird.f32 %v5991_v56 }
 0x143   : > { %v5987_v3 = vadd.f32 %v877_v28, %v820_v37  ;;  %v5989_v36 = vpop.f32.mrf.mxu3  ;;  %v765_v43 = vadd.f32 %v764_v39, %v5424_v5  ;;  %v822_v1 = vpop.f32.mrf.mxu1  ;;  %v1525_v37 = vor.u32 1.1754944e-38, %v1524_v4  ;;  %v6002_v28 = vadd.f32 1.0, %v4325_v11  ;;  %8443 = vst [vmem:[#allocation48_spill] sm:$0xff] %v6009_v27 }
 0x144   : > { %v1517_v5 = vadd.f32 %v5912_v60, %v1516_v20  ;;  %v2134_v39 = vmul.f32 %v2133_v40, %v5948_v10  ;;  %v6015_v11 = vmul.f32 0.5, %v5723_v12  ;;  %8445 = vst [vmem:[#allocation50_spill] sm:$0xff] %v6017_v52  ;;  %v1744_v4 = vadd.f32 0.001143296, %v1743_v61 }
 0x145   : > { %v823_v41 = vadd.f32 %v822_v1, %v765_v43  ;;  %985 = vmatmul.bf16.gmra.mxu0 %v5406_v44  ;;  %v4562_v44 = vld [vmem:[%s8305_s2 + $0x34] sm:$0xf]  ;;  %v2808_v9 = vmul.f32 %v5836_v46, %v8448_v7  ;;  %v1980_v20 = vmul.f32 %v1979_v14, %v5824_v23  ;;  %v4454_v31 = vor.u32 %v4578_v21, %v4451_v6  ;;  %v4385_v46 = vld [vmem:[%s8305_s2 + $0x30] sm:$0xf]  ;;  %v4563_v43 = vld [vmem:[%s8305_s2 + $0x34] sm:$0xf0] }
 0x146   : > { %1043 = vmatmul.bf16.gmra.mxu1 %v5408_v50  ;;  %8444 = vst [vmem:[#allocation49_spill] sm:$0xff] %v6015_v11  ;;  %v4449_v1 = vld [vmem:[%s8305_s2 + $0xb0] sm:$0xf]  ;;  %v2135_v14 = vadd.f32 0.0036580483, %v2134_v39  ;;  %v4386_v21 = vor.u32 %v4563_v43, %v4385_v46  ;;  %v4750_v50 = vld [vmem:[%s8306_s3] sm:$0xff]  ;;  %v1745_v39 = vmul.f32 %v1744_v4, %v5704_v0 }
 0x147   : > { %1101 = vmatmul.bf16.gmra.mxu2 %v5410_v51  ;;  %v1669_v51 = vmul.f32 %v1668_v62, %v5667_v45  ;;  %v1521_v62 = vsel %vm6027_vm15, %v5912_v60, %v1517_v5  ;;  %v2212_v61 = vmul.f32 2.1237322e-06, %v6009_v27  ;;  %v4579_v6 = vld [vmem:[%s8305_s2 + $0xb4] sm:$0xf0]  ;;  %3242 = vmatpush.bf16.msra.mxu3 %v4454_v31  ;;  %v385_v60 = vperm.slane %v4750_v50, 4 }
 0x148   : > { %1159 = vmatmul.bf16.gmra.mxu3 %v5412_v54  ;;  %v4387_v54 = vld [vmem:[%s8305_s2 + $0x38] sm:$0xf0]  ;;  %v4450_v22 = vor.u32 %v4579_v6, %v4449_v1  ;;  %3068 = vmatpush.bf16.msra.mxu0 %v4386_v21  ;;  %v4379_v1 = vld [vmem:[%s8305_s2 + $0x28] sm:$0xf0]  ;;  %v4561_v4 = vld [vmem:[%s8305_s2 + $0x24] sm:$0xf0]  ;;  %v2136_v6 = vmul.f32 %v2135_v14, %v5948_v10 }
 0x149   : > { %v4390_v49 = vor.u32 %v4562_v44, %v4387_v54  ;;  %v1670_v5 = vadd.f32 0.4994258, %v1669_v51  ;;  %v8449_v46 = vld [vmem:[#allocation26_spill] sm:$0xff]  ;;  %v4377_v51 = vld [vmem:[%s8305_s2 + $0x20] sm:$0xf] }
 0x14a   : > { %v880_v40 = vpop.f32.mrf.mxu2  ;;  %v766_v54 = vpop.f32.mrf.mxu0  ;;  %3126 = vmatpush.bf16.msra.mxu1 %v4450_v22  ;;  %v6088_v21 = vadd.f32 1.1283791, %v1980_v20  ;;  %v2213_v50 = vadd.f32 0.00028619796, %v2212_v61  ;;  %v4369_v14 = vld [vmem:[%s8305_s2 + $0x10] sm:$0xf] }
 0x14b   : > { %v881_v44 = vadd.f32 %v880_v40, %v823_v41  ;;  %v938_v7 = vpop.f32.mrf.mxu3  ;;  %3184 = vmatpush.bf16.msra.mxu2 %v4390_v49  ;;  %v824_v12 = vpop.f32.mrf.mxu1  ;;  %v4560_v41 = vld [vmem:[%s8305_s2 + $0x24] sm:$0xf]  ;;  %v2810_v49 = vmul.f32 %v5914_v8, %v8449_v46  ;;  %v1526_v8 = vsel %vm5998_vm14, %v1525_v37, %v1521_v62  ;;  %v4378_v54 = vor.u32 %v4561_v4, %v4377_v51  ;;  %v4559_v61 = vld [vmem:[%s8305_s2 + $0x14] sm:$0xf0] }
 0x14c   : > { %v6067_v40 = vpop.eup %4642  ;;  %v8450_v12 = vld [vmem:[#allocation21_spill] sm:$0xff]  ;;  %v6092_v46 = vmul.f32 0.70710677, %v5863_v59  ;;  %v1671_v37 = vmul.f32 %v1670_v5, %v5667_v45  ;;  %v8453_v62 = vld [vmem:[#allocation23_spill] sm:$0xff]  ;;  %v4370_v5 = vor.u32 %v4559_v61, %v4369_v14 }
 0x14d   : > { %v1502_v31 = vmul.f32 %v5858_v57, %v8450_v12  ;;  %v6073_v43 = vadd.f32 %v938_v7, %v881_v44  ;;  %v2058_v57 = vmul.f32 %v2057_v18, %v5868_v2  ;;  %v2292_v44 = vmul.f32 2.1237322e-06, %v6017_v52  ;;  %3069 = vmatpush.bf16.msra.mxu0 %v4378_v54  ;;  %v4558_v45 = vld [vmem:[%s8305_s2 + $0x14] sm:$0xf]  ;;  %v8454_v61 = vld [vmem:[#allocation27_spill] sm:$0xff] }
 0x14e   : > { %v4382_v7 = vor.u32 %v4560_v41, %v4379_v1  ;;  %8452 = vst [vmem:[#allocation26_spill] sm:$0xff] %v6092_v46  ;;  %v6094_v12 = vperm.slane %v385_v60, 0  ;;  %v1594_v32 = vmul.f32 %v6067_v40, %v5991_v56  ;;  %v1746_v18 = vadd.f32 0.014752088, %v1745_v39 }
 0x14f   : > { %8451 = vst [vmem:[#allocation24_spill] sm:$0xff] %v6073_v43  ;;  %v6099_v22 = vpack.c.bf16 %v2810_v49, %v2808_v9  ;;  %v6103_v20 = vmul.f32 %v5927_v63, %v8453_v62  ;;  %v2059_v60 = vadd.f32 0.18741608, %v2058_v57  ;;  %v2293_v9 = vadd.f32 0.00028619796, %v2292_v44 }
 0x150   : > { %3185 = vmatpush.bf16.msra.mxu2 %v4382_v7  ;;  %v4371_v63 = vld [vmem:[%s8305_s2 + $0x18] sm:$0xf0]  ;;  %v1527_v39 = vmul.f32 %v1526_v8, %v1502_v31  ;;  %v2137_v49 = vadd.f32 0.05243302, %v2136_v6  ;;  %v2214_v1 = vmul.f32 %v2213_v50, %v6009_v27  ;;  %v2370_v51 = vmul.f32 %v6092_v46, %v6092_v46  ;;  %v8455_v8 = vld [vmem:[#allocation28_spill] sm:$0xff] }
 0x151   : > { %v4374_v54 = vor.u32 %v4558_v45, %v4371_v63  ;;  %v1595_v44 = vsub.f32 1.0, %v1594_v32  ;;  %v1747_v14 = vmul.f32 %v1746_v18, %v5704_v0  ;;  %v6126_v31 = vmul.f32 %v5953_v30, %v8454_v61  ;;  %3070 = vmatpush.bf16.msra.mxu0 %v4370_v5  ;;  %v4361_v32 = vld [vmem:[%s8305_s2] sm:$0xf]  ;;  %v8456_v45 = vld [vmem:[#allocation5_spill] sm:$0xff]  ;;  %v4363_v5 = vld [vmem:[%s8305_s2 + $0x8] sm:$0xf0] }
 0x152   : > { %v882_v41 = vpop.f32.mrf.mxu2  ;;  %v951_v7 = vpop.f32.mrf.mxu0  ;;  %v6130_v6 = vmul.f32 %v5956_v55, %v8455_v8  ;;  %v6134_v50 = vmul.f32 %v5969_v34, %v5682_v26  ;;  %v1823_v30 = vmul.f32 3.8918573e-05, %v5739_v16  ;;  %v2060_v18 = vmul.f32 %v2059_v60, %v5868_v2  ;;  %v4556_v34 = vld [vmem:[%s8305_s2 + $0x4] sm:$0xf]  ;;  %v8457_v60 = vld [vmem:[#allocation6_spill] sm:$0xff] }
 0x153   : > { %v940_v4 = vpop.f32.mrf.mxu3  ;;  %v952_v62 = vadd.f32 %v951_v7, %v6094_v12  ;;  %v1009_v57 = vpop.f32.mrf.mxu1  ;;  %v6121_v41 = vadd.f32 1.0, %v1671_v37  ;;  %v4557_v37 = vld [vmem:[%s8305_s2 + $0x4] sm:$0xf0]  ;;  %v2294_v55 = vmul.f32 %v2293_v9, %v6017_v52  ;;  %v4327_v63 = vclamps-f32 %v1527_v39, 1.0  ;;  %v8458_v9 = vld [vmem:[#allocation7_spill] sm:$0xff] }
 0x154   : > { %3186 = vmatpush.bf16.msra.mxu2 %v4374_v54  ;;  %v4362_v26 = vor.u32 %v4557_v37, %v4361_v32  ;;  %v2138_v4 = vmul.f32 %v2137_v49, %v5948_v10  ;;  %v6153_v7 = vmin.f32 %v2370_v51, 16.0  ;;  %v4366_v61 = vor.u32 %v4556_v34, %v4363_v5  ;;  %v8460_v37 = vld [vmem:[#allocation8_spill] sm:$0xff] }
 0x155   : > { %990 = vmatmul.bf16.gmra.mxu0 %v8456_v45  ;;  %v1010_v54 = vadd.f32 %v1009_v57, %v952_v62  ;;  %v6159_v8 = vmul.f32 %v6004_v47, %v5721_v17  ;;  %v2215_v32 = vadd.f32 0.0036580483, %v2214_v1  ;;  %v8461_v45 = vld [vmem:[#allocation29_spill] sm:$0xff]  ;;  %v1748_v49 = vadd.f32 0.112945676, %v1747_v14 }
 0x156   : > { %1048 = vmatmul.bf16.gmra.mxu1 %v8457_v60  ;;  %v6164_v39 = vmul.f32 %v6002_v28, %v8461_v45  ;;  %v6167_v51 = vmul.f32 0.5, %v5762_v42  ;;  %3071 = vmatpush.bf16.msra.mxu0 %v4362_v26  ;;  %v1596_v62 = vmul.f32 %v6067_v40, %v1595_v44  ;;  %4644 = vrcp.f32 %v6121_v41 }
 0x157   : > { %1106 = vmatmul.bf16.gmra.mxu2 %v8458_v9  ;;  %8459 = vst [vmem:[#allocation21_spill] sm:$0xff] %v6159_v8  ;;  %v1824_v57 = vadd.f32 0.001143296, %v1823_v30  ;;  %v6173_v17 = vmul.f32 %v6088_v21, %v5766_v38  ;;  %v2061_v47 = vadd.f32 1.1283791, %v2060_v18  ;;  %v2776_v28 = vadd.f32 1.0, %v4327_v63 }
 0x158   : > { %1164 = vmatmul.bf16.gmra.mxu3 %v8460_v37  ;;  %8462 = vst [vmem:[#allocation23_spill] sm:$0xff] %v6167_v51  ;;  %3187 = vmatpush.bf16.msra.mxu2 %v4366_v61  ;;  %v2295_v1 = vadd.f32 0.0036580483, %v2294_v55  ;;  %v2139_v5 = vadd.f32 0.18741608, %v2138_v4  ;;  %v2216_v44 = vmul.f32 %v2215_v32, %v6009_v27  ;;  %vm1599_vm0 = vweird.f32 %v6067_v40  ;;  %v8467_v32 = vld [vmem:[#allocation31_spill] sm:$0xff] }
 0x159   : > { %8463 = vst [vmem:[#allocation27_spill] sm:$0xff] %v6173_v17  ;;  %v2372_v14 = vmul.f32 2.1237322e-06, %v6153_v7  ;;  %v1825_v61 = vmul.f32 %v1824_v57, %v5739_v16  ;;  %v6179_v30 = vmul.f32 0.70710677, %v5909_v58  ;;  %v1749_v38 = vmul.f32 %v1748_v49, %v5704_v0  ;;  %vm6205_vm2 = vmor %vm1598_vm1, %vm1599_vm0 }
 0x15a   : > { %v1067_v34 = vpop.f32.mrf.mxu2  ;;  %v953_v26 = vpop.f32.mrf.mxu0  ;;  %v1597_v55 = vadd.f32 %v6067_v40, %v1596_v62  ;;  %v6188_v4 = vmul.f32 0.5, %v5819_v53  ;;  %v6192_v45 = vmul.f32 %v2776_v28, %v8467_v32  ;;  %v1604_v57 = vand.u32 2147483648, %v5991_v56 }
 0x15b   : > { %v1068_v60 = vadd.f32 %v1067_v34, %v1010_v54  ;;  %v1125_v9 = vpop.f32.mrf.mxu3  ;;  %8464 = vst [vmem:[#allocation28_spill] sm:$0xff] %v6179_v30  ;;  %v1011_v37 = vpop.f32.mrf.mxu1  ;;  %v954_v18 = vadd.f32 %v953_v26, %v6094_v12  ;;  %v1826_v63 = vadd.f32 0.014752088, %v1825_v61  ;;  %v2296_v54 = vmul.f32 %v2295_v1, %v6017_v52 }
 0x15c   : > { %8466 = vst [vmem:[#allocation6_spill] sm:$0xff] %v6188_v4  ;;  %v6195_v34 = vpop.eup %4644  ;;  %v2373_v49 = vadd.f32 0.00028619796, %v2372_v14  ;;  %v1602_v62 = vand.u32 2147483647, %v5991_v56  ;;  %v2450_v14 = vmul.f32 %v6179_v30, %v6179_v30  ;;  %v1601_v56 = vsel %vm6205_vm2, %v6067_v40, %v1597_v55 }
 0x15d   : > { %v6183_v21 = vadd.f32 %v1125_v9, %v1068_v60  ;;  %v2140_v9 = vmul.f32 %v2139_v5, %v5948_v10  ;;  %v2217_v26 = vadd.f32 0.05243302, %v2216_v44  ;;  %v1750_v28 = vadd.f32 0.4994258, %v1749_v38  ;;  %v8476_v10 = vld [vmem:[#allocation11_spill] sm:$0xff] }
 0x15e   : > { %v1827_v61 = vmul.f32 %v1826_v63, %v5739_v16  ;;  %v1012_v53 = vadd.f32 %v1011_v37, %v954_v18  ;;  %v2297_v5 = vadd.f32 0.05243302, %v2296_v54  ;;  %v6218_v44 = vmul.f32 0.70710677, %v5958_v48 }
 0x15f   : > { %8465 = vst [vmem:[#allocation5_spill] sm:$0xff] %v6183_v21  ;;  %v6198_v60 = vmul.f32 0.70710677, %v6183_v21  ;;  %v1605_v4 = vor.u32 1.1754944e-38, %v1604_v57  ;;  %v1674_v38 = vmul.f32 %v6195_v34, %v6121_v41  ;;  %v2374_v63 = vmul.f32 %v2373_v49, %v6153_v7 }
 0x160   : > { %8470 = vst [vmem:[#allocation7_spill] sm:$0xff] %v6218_v44  ;;  %vm1603_vm3 = vcmp.eq.f32.partialorder %v1602_v62, 8.507059e+37  ;;  %v2218_v40 = vmul.f32 %v2217_v26, %v6009_v27  ;;  %v1751_v54 = vmul.f32 %v1750_v28, %v5704_v0  ;;  %v1828_v57 = vadd.f32 0.112945676, %v1827_v61  ;;  %v8472_v26 = vld [vmem:[#allocation10_spill] sm:$0xff] }
 0x161   : > { %v1290_v32 = vmul.f32 %v6198_v60, %v6198_v60  ;;  %v1606_v55 = vsel %vm1603_vm3, %v1605_v4, %v1601_v56  ;;  %v6231_v1 = vmin.f32 %v2450_v14, 16.0  ;;  %v2530_v62 = vmul.f32 %v6218_v44, %v6218_v44  ;;  %v8473_v56 = vld [vmem:[#allocation37_spill] sm:$0xff] }
 0x162   : > { %v1069_v42 = vpop.f32.mrf.mxu2  ;;  %v6225_v37 = vpop.f32.mrf.mxu0  ;;  %v1675_v4 = vsub.f32 1.0, %v1674_v38  ;;  %v6242_v0 = vmul.f32 %v2061_v47, %v8473_v56  ;;  %v2375_v28 = vadd.f32 0.0036580483, %v2374_v63  ;;  %v1829_v47 = vmul.f32 %v1828_v57, %v5739_v16 }
 0x163   : > { %v6223_v30 = vmin.f32 %v1290_v32, 16.0  ;;  %v1070_v51 = vadd.f32 %v1069_v42, %v1012_v53  ;;  %v1127_v11 = vpop.f32.mrf.mxu3  ;;  %v6228_v18 = vpop.f32.mrf.mxu1  ;;  %v2141_v42 = vadd.f32 1.1283791, %v2140_v9  ;;  %v2298_v53 = vmul.f32 %v2297_v5, %v6017_v52 }
 0x164   : > { %8474 = vst [vmem:[#allocation29_spill] sm:$0xff] %v6242_v0  ;;  %v6251_v9 = vmul.f32 %v1606_v55, %v6103_v20  ;;  %v6253_v5 = vadd.f32 1.0, %v1751_v54  ;;  %v6256_v38 = vadd.f32 0.18741608, %v2218_v40  ;;  %v1676_v54 = vmul.f32 %v6195_v34, %v1675_v4 }
 0x165   : > { %v1292_v48 = vmul.f32 2.1237322e-06, %v6223_v30  ;;  %v1303_v49 = vmul.f32 3.8918573e-05, %v6223_v30  ;;  %v6235_v32 = vadd.f32 %v1127_v11, %v1070_v51  ;;  %995 = vmatmul.bf16.gmra.mxu0 %v8472_v26  ;;  %v8477_v51 = vld [vmem:[#allocation13_spill] sm:$0xff]  ;;  %v2376_v40 = vmul.f32 %v2375_v28, %v6153_v7 }
 0x166   : > { %1053 = vmatmul.bf16.gmra.mxu1 %v8476_v10  ;;  %v6263_v63 = vadd.f32 0.18741608, %v2298_v53  ;;  %v1682_v53 = vand.u32 2147483647, %v6121_v41  ;;  %4646 = vrcp.f32 %v6253_v5  ;;  %v1830_v4 = vadd.f32 0.4994258, %v1829_v47 }
 0x167   : > { %8471 = vst [vmem:[#allocation8_spill] sm:$0xff] %v6235_v32  ;;  %v1293_v61 = vadd.f32 0.00028619796, %v1292_v48  ;;  %v1304_v14 = vadd.f32 0.001143296, %v1303_v49  ;;  %1111 = vmatmul.bf16.gmra.mxu2 %v8475_v25  ;;  %v6259_v48 = vmul.f32 0.5, %v5863_v59  ;;  %vm1679_vm4 = vweird.f32 %v6195_v34 }
 0x168   : > { %v6247_v11 = vmul.f32 0.70710677, %v6235_v32  ;;  %1169 = vmatmul.bf16.gmra.mxu3 %v8477_v51  ;;  %v2452_v25 = vmul.f32 2.1237322e-06, %v6231_v1  ;;  %v6265_v49 = vmin.f32 %v2530_v62, 16.0  ;;  %v1677_v0 = vadd.f32 %v6195_v34, %v1676_v54 }
 0x169   : > { %8478 = vst [vmem:[#allocation31_spill] sm:$0xff] %v6259_v48  ;;  %v1305_v10 = vmul.f32 %v1304_v14, %v6223_v30  ;;  %v1294_v57 = vmul.f32 %v1293_v61, %v6223_v30  ;;  %v1684_v61 = vand.u32 2147483648, %v6121_v41  ;;  %v2377_v13 = vadd.f32 0.05243302, %v2376_v40 }
 0x16a   : > { %v1370_v20 = vmul.f32 %v6247_v11, %v6247_v11  ;;  %v6269_v55 = vpop.f32.mrf.mxu2  ;;  %v6276_v51 = vpop.f32.mrf.mxu0  ;;  %v2453_v44 = vadd.f32 0.00028619796, %v2452_v25  ;;  %v6294_v59 = vadd.f32 %v5989_v36, %v5987_v3  ;;  %v6304_v8 = vpack.c.bf16 %v6192_v45, %v6164_v39  ;;  %v4441_v45 = vld [vmem:[%s8305_s2 + $0xa0] sm:$0xf] }
 0x16b   : > { %v1306_v26 = vadd.f32 0.014752088, %v1305_v10  ;;  %v6274_v56 = vpop.f32.mrf.mxu3  ;;  %v6281_v14 = vpop.f32.mrf.mxu1  ;;  %v2532_v10 = vmul.f32 2.1237322e-06, %v6265_v49  ;;  %v1295_v47 = vadd.f32 0.0036580483, %v1294_v57  ;;  %vm1678_vm5 = vweird.f32 %v6121_v41 }
 0x16c   : > { %v6279_v62 = vmin.f32 %v1370_v20, 16.0  ;;  %8479 = vst [vmem:[#allocation10_spill] sm:$0xff] %v6294_v59  ;;  %v1831_v3 = vmul.f32 %v1830_v4, %v5739_v16  ;;  %v2454_v36 = vmul.f32 %v2453_v44, %v6231_v1  ;;  %vm6312_vm6 = vmor %vm1678_vm5, %vm1679_vm4  ;;  %v6319_v39 = vmul.f32 %v2141_v42, %v5896_v19 }
 0x16d   : > { %v1307_v28 = vmul.f32 %v1306_v26, %v6223_v30  ;;  %v4576_v26 = vld [vmem:[%s8305_s2 + $0xa4] sm:$0xf]  ;;  %v2533_v41 = vadd.f32 0.00028619796, %v2532_v10  ;;  %v1681_v4 = vsel %vm6312_vm6, %v6195_v34, %v1677_v0  ;;  %v6334_v19 = vmul.f32 0.70710677, %v6294_v59 }
 0x16e   : > { %v1372_v48 = vmul.f32 2.1237322e-06, %v6279_v62  ;;  %v1383_v20 = vmul.f32 3.8918573e-05, %v6279_v62  ;;  %v4446_v40 = vor.u32 %v4576_v26, %v4443_v33  ;;  %8482 = vst [vmem:[#allocation37_spill] sm:$0xff] %v6319_v39  ;;  %v1296_v26 = vmul.f32 %v1295_v47, %v6223_v30 }
 0x16f   : > { %v1308_v25 = vadd.f32 0.112945676, %v1307_v28  ;;  %v4577_v33 = vld [vmem:[%s8305_s2 + $0xa4] sm:$0xf0]  ;;  %8483 = vst [vmem:[#allocation12_spill] sm:$0xff] %v6334_v19  ;;  %vm1683_vm7 = vcmp.eq.f32.partialorder %v1682_v53, 8.507059e+37  ;;  %v2534_v47 = vmul.f32 %v2533_v41, %v6265_v49  ;;  %vm1758_vm9 = vweird.f32 %v6253_v5 }
 0x170   : > { %v1373_v17 = vadd.f32 0.00028619796, %v1372_v48  ;;  %v1384_v57 = vadd.f32 0.001143296, %v1383_v20  ;;  %v6316_v48 = vpop.eup %4646  ;;  %3243 = vmatpush.bf16.msra.mxu3 %v4446_v40  ;;  %v4442_v10 = vor.u32 %v4577_v33, %v4441_v45  ;;  %v1685_v2 = vor.u32 1.1754944e-38, %v1684_v61 }
 0x171   : > { %v1309_v54 = vmul.f32 %v1308_v25, %v6223_v30  ;;  %v6344_v28 = vadd.f32 1.0, %v1831_v3  ;;  %v2455_v34 = vadd.f32 0.0036580483, %v2454_v36  ;;  %v1754_v40 = vmul.f32 %v6316_v48, %v6253_v5  ;;  %v4574_v53 = vld [vmem:[%s8305_s2 + $0x94] sm:$0xf] }
 0x172   : > { %v1374_v16 = vmul.f32 %v1373_v17, %v6279_v62  ;;  %v6328_v44 = vpop.f32.mrf.mxu2  ;;  %v1385_v17 = vmul.f32 %v1384_v57, %v6279_v62  ;;  %v6339_v25 = vpop.f32.mrf.mxu0  ;;  %3127 = vmatpush.bf16.msra.mxu1 %v4442_v10  ;;  %v6351_v57 = vmul.f32 %v6256_v38, %v6009_v27  ;;  %v4435_v61 = vld [vmem:[%s8305_s2 + $0x98] sm:$0xf0]  ;;  %v1686_v3 = vsel %vm1683_vm7, %v1685_v2, %v1681_v4  ;;  %v4433_v2 = vld [vmem:[%s8305_s2 + $0x90] sm:$0xf]  ;;  %v4575_v4 = vld [vmem:[%s8305_s2 + $0x94] sm:$0xf0] }
 0x173   : > { %v1310_v42 = vadd.f32 0.4994258, %v1309_v54  ;;  %v6337_v20 = vpop.f32.mrf.mxu3  ;;  %v6342_v39 = vpop.f32.mrf.mxu1  ;;  %v2610_v36 = vmul.f32 %v6334_v19, %v6334_v19  ;;  %v4438_v41 = vor.u32 %v4574_v53, %v4435_v61  ;;  %4648 = vrcp.f32 %v6344_v28 }
 0x174   : > { %v1386_v54 = vadd.f32 0.014752088, %v1385_v17  ;;  %v1375_v45 = vadd.f32 0.0036580483, %v1374_v16  ;;  %v2378_v16 = vmul.f32 %v2377_v13, %v6153_v7  ;;  %v957_v17 = vadd.f32 %v6225_v37, %v6094_v12 }
 0x175   : > { %v1311_v0 = vmul.f32 %v1310_v42, %v6223_v30  ;;  %3072 = vmatmul.bf16.vlgmr.msra.gmra.mxu0 %v6099_v22  ;;  %v1297_v42 = vadd.f32 0.05243302, %v1296_v26  ;;  %3244 = vmatpush.bf16.msra.mxu3 %v4438_v41  ;;  %v8484_v13 = vclamps-f32 %v6251_v9, 1.0  ;;  %v1755_v26 = vsub.f32 1.0, %v1754_v40 }
 0x176   : > { %v1387_v38 = vmul.f32 %v1386_v54, %v6279_v62  ;;  %v2456_v37 = vmul.f32 %v2455_v34, %v6231_v1  ;;  %v1376_v54 = vmul.f32 %v1375_v45, %v6279_v62  ;;  %v6386_v41 = vmul.f32 0.5, %v5909_v58  ;;  %v8487_v58 = vld [vmem:[#allocation33_spill] sm:$0xff] }
 0x177   : > { %v6363_v33 = vadd.f32 1.0, %v1311_v0  ;;  %3188 = vmatmul.bf16.vlgmr.msra.gmra.mxu2 %v6099_v22  ;;  %v1687_v22 = vmul.f32 %v1686_v3, %v6126_v31  ;;  %v2778_v10 = vadd.f32 1.0, %v8484_v13  ;;  %v2535_v0 = vadd.f32 0.0036580483, %v2534_v47 }
 0x178   : > { %v1388_v53 = vadd.f32 0.112945676, %v1387_v38  ;;  %8485 = vst [vmem:[#allocation11_spill] sm:$0xff] %v6386_v41  ;;  %v6388_v59 = vmin.f32 %v2610_v36, 16.0  ;;  %v959_v31 = vadd.f32 %v6276_v51, %v6094_v12  ;;  %v4434_v9 = vor.u32 %v4575_v4, %v4433_v2 }
 0x179   : > { %4650 = vrcp.f32 %v6363_v33  ;;  %v6398_v34 = vmul.f32 %v6263_v63, %v6017_v52  ;;  %v1298_v47 = vmul.f32 %v1297_v42, %v6223_v30  ;;  %v1015_v38 = vadd.f32 %v6228_v18, %v957_v17  ;;  %v6411_v19 = vpop.eup %4648 }
 0x17a   : > { %v6383_v61 = vpop.f32.mrf.mxu2  ;;  %8486 = vst [vmem:[#allocation13_spill] sm:$0xff] %v6388_v59  ;;  %v6394_v40 = vpop.f32.mrf.mxu0  ;;  %v1389_v45 = vmul.f32 %v1388_v53, %v6279_v62  ;;  %v6405_v13 = vadd.f32 0.18741608, %v2378_v16  ;;  %3128 = vmatpush.bf16.msra.mxu1 %v4434_v9  ;;  %v4331_v51 = vclamps-f32 %v1687_v22, 1.0  ;;  %v6408_v2 = vmul.f32 %v2778_v10, %v8487_v58 }
 0x17b   : > { %v6392_v3 = vpop.f32.mrf.mxu3  ;;  %v6403_v36 = vpop.f32.mrf.mxu1  ;;  %v1756_v4 = vmul.f32 %v6316_v48, %v1755_v26  ;;  %v6413_v63 = vadd.f32 0.05243302, %v2456_v37  ;;  %v6416_v42 = vmul.f32 %v2535_v0, %v6265_v49  ;;  %v1377_v53 = vadd.f32 0.05243302, %v1376_v54 }
 0x17c   : > { %v1390_v18 = vadd.f32 0.4994258, %v1389_v45  ;;  %v6421_v16 = vmul.f32 2.1237322e-06, %v6388_v59  ;;  %v6424_v22 = vmul.f32 0.70710677, %v6073_v43  ;;  %v1017_v58 = vadd.f32 %v6281_v14, %v959_v31 }
 0x17d   : > { %v1903_v10 = vmul.f32 3.8918573e-05, %v5760_v15  ;;  %v1299_v26 = vadd.f32 0.18741608, %v1298_v47  ;;  %v1073_v54 = vadd.f32 %v6269_v55, %v1015_v38  ;;  %v2780_v45 = vadd.f32 1.0, %v4331_v51 }
 0x17e   : > { %8488 = vst [vmem:[#allocation33_spill] sm:$0xff] %v6424_v22  ;;  %v1391_v0 = vmul.f32 %v1390_v18, %v6279_v62  ;;  %v1075_v9 = vadd.f32 %v6328_v44, %v1017_v58  ;;  %v1757_v41 = vadd.f32 %v6316_v48, %v1756_v4  ;;  %vm1759_vm8 = vweird.f32 %v6316_v48 }
 0x17f   : > { %v6418_v17 = vpop.eup %4650  ;;  %v1378_v14 = vmul.f32 %v1377_v53, %v6279_v62  ;;  %v1834_v52 = vmul.f32 %v6411_v19, %v6344_v28  ;;  %v1762_v44 = vand.u32 2147483647, %v6253_v5  ;;  %v1764_v38 = vand.u32 2147483648, %v6253_v5  ;;  %v4427_v5 = vld [vmem:[%s8305_s2 + $0x88] sm:$0xf0]  ;;  %vm6465_vm10 = vmor %vm1758_vm9, %vm1759_vm8 }
 0x180   : > { %v1314_v37 = vmul.f32 %v6418_v17, %v6363_v33  ;;  %v6436_v31 = vadd.f32 1.0, %v1391_v0  ;;  %v1904_v51 = vadd.f32 0.001143296, %v1903_v10  ;;  %v1300_v4 = vmul.f32 %v1299_v26, %v6223_v30  ;;  %v4572_v0 = vld [vmem:[%s8305_s2 + $0x84] sm:$0xf] }
 0x181   : > { %v6453_v58 = vadd.f32 %v6274_v56, %v1073_v54  ;;  %vm1319_vm11 = vweird.f32 %v6418_v17  ;;  %v962_v56 = vadd.f32 %v6339_v25, %v6094_v12  ;;  %v1761_v10 = vsel %vm6465_vm10, %v6316_v48, %v1757_v41 }
 0x182   : > { %v1315_v43 = vsub.f32 1.0, %v1314_v37  ;;  %v6438_v47 = vpop.f32.mrf.mxu2  ;;  %v6444_v55 = vpop.f32.mrf.mxu0  ;;  %4652 = vrcp.f32 %v6436_v31  ;;  %v1324_v54 = vand.u32 2147483648, %v6363_v33  ;;  %v1379_v27 = vadd.f32 0.18741608, %v1378_v14 }
 0x183   : > { %v6442_v18 = vpop.f32.mrf.mxu3  ;;  %8489 = vst [vmem:[#allocation51_spill] sm:$0xff] %v6453_v58  ;;  %v6455_v37 = vpop.f32.mrf.mxu1  ;;  %v1835_v46 = vsub.f32 1.0, %v1834_v52  ;;  %vm1318_vm12 = vweird.f32 %v6363_v33  ;;  %v1905_v25 = vmul.f32 %v1904_v51, %v5760_v15  ;;  %v1301_v24 = vadd.f32 1.1283791, %v1300_v4  ;;  %v8495_v52 = vld [vmem:[#allocation35_spill] sm:$0xff] }
 0x184   : > { %v1316_v53 = vmul.f32 %v6418_v17, %v1315_v43  ;;  %v6471_v43 = vadd.f32 %v6337_v20, %v1075_v9  ;;  %v1322_v20 = vand.u32 2147483647, %v6363_v33  ;;  %v4430_v9 = vor.u32 %v4572_v0, %v4427_v5  ;;  %vm6487_vm13 = vmor %vm1318_vm12, %vm1319_vm11 }
 0x185   : > { %3077 = vmatmul.bf16.gmra.mxu0 %v6304_v8  ;;  %v6492_v41 = vmul.f32 0.70710677, %v6453_v58  ;;  %v6495_v14 = vmul.f32 %v2780_v45, %v8495_v52  ;;  %v1020_v51 = vadd.f32 %v6342_v39, %v962_v56  ;;  %vm1763_vm14 = vcmp.eq.f32.partialorder %v1762_v44, 8.507059e+37 }
 0x186   : > { %8492 = vst [vmem:[#allocation52_spill] sm:$0xff] %v6471_v43  ;;  %v1317_v26 = vadd.f32 %v6418_v17, %v1316_v53  ;;  %v1765_v53 = vor.u32 1.1754944e-38, %v1764_v38  ;;  %v6501_v33 = vmul.f32 0.70710677, %v6471_v43  ;;  %3245 = vmatpush.bf16.msra.mxu3 %v4430_v9  ;;  %v1325_v0 = vor.u32 1.1754944e-38, %v1324_v54 }
 0x187   : > { %3193 = vmatmul.bf16.gmra.mxu2 %v6304_v8  ;;  %v1380_v5 = vmul.f32 %v1379_v27, %v6279_v62  ;;  %v1836_v38 = vmul.f32 %v6411_v19, %v1835_v46  ;;  %vm1323_vm15 = vcmp.eq.f32.partialorder %v1322_v20, 8.507059e+37  ;;  %vm1838_vm0 = vweird.f32 %v6344_v28  ;;  %v4573_v54 = vld [vmem:[%s8305_s2 + $0x84] sm:$0xf0] }
 0x188   : > { %v1321_v8 = vsel %vm6487_vm13, %v6418_v17, %v1317_v26  ;;  %8496 = vst [vmem:[#allocation35_spill] sm:$0xff] %v6501_v33  ;;  %v4653_v4 = vpop.eup %4652  ;;  %v1766_v45 = vsel %vm1763_vm14, %v1765_v53, %v1761_v10  ;;  %v1906_v39 = vadd.f32 0.014752088, %v1905_v25  ;;  %v1302_v44 = vmul.f32 %v1301_v24, %v6198_v60  ;;  %v4425_v10 = vld [vmem:[%s8305_s2 + $0x80] sm:$0xf] }
 0x189   : > { %v1394_v48 = vmul.f32 %v4653_v4, %v6436_v31  ;;  %v1326_v56 = vsel %vm1323_vm15, %v1325_v0, %v1321_v8  ;;  %v1450_v27 = vmul.f32 %v6492_v41, %v6492_v41  ;;  %v964_v62 = vadd.f32 %v6394_v40, %v6094_v12 }
 0x18a   : > { %v6505_v30 = vpop.f32.mrf.mxu2  ;;  %v6511_v26 = vpop.f32.mrf.mxu0  ;;  %v1530_v24 = vmul.f32 %v6501_v33, %v6501_v33  ;;  %v1078_v60 = vadd.f32 %v6383_v61, %v1020_v51  ;;  %vm1839_vm1 = vweird.f32 %v6411_v19  ;;  %v1381_v9 = vadd.f32 1.1283791, %v1380_v5 }
 0x18b   : > { %v6509_v17 = vpop.f32.mrf.mxu3  ;;  %v6519_v46 = vpop.f32.mrf.mxu1  ;;  %v1395_v20 = vsub.f32 1.0, %v1394_v48  ;;  %v1402_v40 = vand.u32 2147483647, %v6436_v31  ;;  %v1404_v25 = vand.u32 2147483648, %v6436_v31  ;;  %v1837_v52 = vadd.f32 %v6411_v19, %v1836_v38  ;;  %vm6548_vm4 = vmor %vm1838_vm0, %vm1839_vm1 }
 0x18c   : > { %v1327_v53 = vmul.f32 %v1326_v56, %v1302_v44  ;;  %vm1399_vm2 = vweird.f32 %v4653_v4  ;;  %v4426_v0 = vor.u32 %v4573_v54, %v4425_v10  ;;  %v1022_v48 = vadd.f32 %v6403_v36, %v964_v62 }
 0x18d   : > { %v1396_v8 = vmul.f32 %v4653_v4, %v1395_v20  ;;  %v1842_v43 = vand.u32 2147483647, %v6344_v28  ;;  %v1844_v58 = vand.u32 2147483648, %v6344_v28  ;;  %v1907_v61 = vmul.f32 %v1906_v39, %v5760_v15 }
 0x18e   : > { %vm1398_vm3 = vweird.f32 %v6436_v31  ;;  %v6539_v5 = vmin.f32 %v1450_v27, 16.0  ;;  %v6542_v33 = vadd.f32 %v6392_v3, %v1078_v60  ;;  %3129 = vmatpush.bf16.msra.mxu1 %v4426_v0  ;;  %v1382_v38 = vmul.f32 %v1381_v9, %v6247_v11 }
 0x18f   : > { %v1397_v51 = vadd.f32 %v4653_v4, %v1396_v8  ;;  %vm1400_vm5 = vmor %vm1398_vm3, %vm1399_vm2  ;;  %v1405_v39 = vor.u32 1.1754944e-38, %v1404_v25  ;;  %v6553_v44 = vmin.f32 %v1530_v24, 16.0  ;;  %v1080_v31 = vadd.f32 %v6438_v47, %v1022_v48 }
 0x190   : > { %8497 = vst [vmem:[#allocation53_spill] sm:$0xff] %v6542_v33  ;;  %v4322_v3 = vclamps-f32 %v1327_v53, 1.0  ;;  %vm1403_vm6 = vcmp.eq.f32.partialorder %v1402_v40, 8.507059e+37  ;;  %v1841_v10 = vsel %vm6548_vm4, %v6411_v19, %v1837_v52  ;;  %v2613_v11 = vadd.f32 0.00028619796, %v6421_v16 }
 0x191   : > { %v1401_v27 = vsel %vm1400_vm5, %v4653_v4, %v1397_v51  ;;  %v2850_v47 = vpack.c.bf16 %v6495_v14, %v6408_v2  ;;  %v1845_v24 = vor.u32 1.1754944e-38, %v1844_v58  ;;  %v1767_v4 = vmul.f32 %v1766_v45, %v6130_v6 }
 0x192   : > { %v6556_v56 = vpop.f32.mrf.mxu2  ;;  %v6560_v28 = vpop.f32.mrf.mxu0  ;;  %v1406_v54 = vsel %vm1403_vm6, %v1405_v39, %v1401_v27  ;;  %vm1843_vm7 = vcmp.eq.f32.partialorder %v1842_v43, 8.507059e+37  ;;  %v1908_v9 = vadd.f32 0.112945676, %v1907_v61  ;;  %v1452_v40 = vmul.f32 2.1237322e-06, %v6539_v5 }
 0x193   : > { %v6558_v62 = vpop.f32.mrf.mxu3  ;;  %v6566_v20 = vpop.f32.mrf.mxu1  ;;  %v1407_v60 = vmul.f32 %v1406_v54, %v1382_v38  ;;  %v1532_v25 = vmul.f32 2.1237322e-06, %v6553_v44  ;;  %v6574_v19 = vmul.f32 0.70710677, %v6542_v33  ;;  %v1846_v16 = vsel %vm1843_vm7, %v1845_v24, %v1841_v10 }
 0x194   : > { %v2771_v52 = vadd.f32 1.0, %v4322_v3  ;;  %v6577_v8 = vadd.f32 %v6442_v18, %v1080_v31  ;;  %v967_v2 = vadd.f32 %v6444_v55, %v6094_v12  ;;  %v2614_v6 = vmul.f32 %v2613_v11, %v6388_v59 }
 0x195   : > { %3082 = vmatmul.bf16.gmra.mxu0 %v2850_v47  ;;  %v4324_v53 = vclamps-f32 %v1407_v60, 1.0  ;;  %v2690_v58 = vmul.f32 %v6424_v22, %v6424_v22  ;;  %v1175_v43 = vmul.f32 0.5, %v6183_v21  ;;  %v1847_v14 = vmul.f32 %v1846_v16, %v6134_v50 }
 0x196   : > { %8500 = vst [vmem:[#allocation54_spill] sm:$0xff] %v6577_v8  ;;  %v1177_v45 = vmul.f32 0.5, %v6235_v32  ;;  %v4333_v48 = vclamps-f32 %v1767_v4, 1.0  ;;  %v1909_v18 = vmul.f32 %v1908_v9, %v5760_v15  ;;  %v1453_v61 = vadd.f32 0.00028619796, %v1452_v40 }
 0x197   : > { %3198 = vmatmul.bf16.gmra.mxu2 %v2850_v47  ;;  %v2773_v0 = vadd.f32 1.0, %v4324_v53  ;;  %v1533_v51 = vadd.f32 0.00028619796, %v1532_v25  ;;  %v1610_v55 = vmul.f32 %v6574_v19, %v6574_v19  ;;  %v4335_v38 = vclamps-f32 %v1847_v14, 1.0 }
 0x198   : > { %v2809_v39 = vmul.f32 %v2771_v52, %v1175_v43  ;;  %v6593_v3 = vmul.f32 0.70710677, %v6577_v8  ;;  %v1025_v50 = vadd.f32 %v6455_v37, %v967_v2  ;;  %v2380_v11 = vmul.f32 %v6405_v13, %v6153_v7 }
 0x199   : > { %v2811_v31 = vmul.f32 %v2773_v0, %v1177_v45  ;;  %v2784_v47 = vadd.f32 1.0, %v4335_v38  ;;  %v1910_v24 = vadd.f32 0.4994258, %v1909_v18  ;;  %v1983_v60 = vmul.f32 3.8918573e-05, %v5824_v23 }
 0x19a   : > { %v6590_v36 = vpop.f32.mrf.mxu2  ;;  %v6598_v10 = vpop.f32.mrf.mxu0  ;;  %v2537_v4 = vadd.f32 0.05243302, %v6416_v42  ;;  %v2615_v9 = vadd.f32 0.0036580483, %v2614_v6  ;;  %v6606_v40 = vmin.f32 %v2690_v58, 16.0  ;;  %v1454_v37 = vmul.f32 %v1453_v61, %v6539_v5 }
 0x19b   : > { %v6596_v27 = vpop.f32.mrf.mxu3  ;;  %v6602_v54 = vpop.f32.mrf.mxu1  ;;  %v2847_v25 = vpack.c.bf16 %v2811_v31, %v2809_v39  ;;  %v6609_v16 = vmin.f32 %v1610_v55, 16.0  ;;  %v2782_v52 = vadd.f32 1.0, %v4333_v48  ;;  %v1911_v53 = vmul.f32 %v1910_v24, %v5760_v15 }
 0x19c   : > { %8501 = vst [vmem:[#allocation55_spill] sm:$0xff] %v6606_v40  ;;  %v2221_v13 = vadd.f32 1.1283791, %v6351_v57  ;;  %v2301_v2 = vadd.f32 1.1283791, %v6398_v34  ;;  %v1534_v43 = vmul.f32 %v1533_v51, %v6553_v44  ;;  %v1083_v14 = vadd.f32 %v6505_v30, %v1025_v50  ;;  %v8502_v51 = vld [vmem:[#allocation38_spill] sm:$0xff] }
 0x19d   : > { %3130 = vmatmul.bf16.vlgmr.msra.gmra.mxu1 %v2847_v25  ;;  %3246 = vmatmul.bf16.vlgmr.msra.gmra.mxu3 %v2847_v25  ;;  %v1690_v42 = vmul.f32 %v6593_v3, %v6593_v3  ;;  %v2822_v6 = vmul.f32 %v2784_v47, %v5923_v29  ;;  %v6619_v58 = vadd.f32 1.0, %v1911_v53  ;;  %v1984_v45 = vadd.f32 0.001143296, %v1983_v60 }
 0x19e   : > { %v2381_v0 = vadd.f32 1.1283791, %v2380_v11  ;;  %v2458_v15 = vmul.f32 %v6413_v63, %v6231_v1  ;;  %v2538_v57 = vmul.f32 %v2537_v4, %v6265_v49  ;;  %v2692_v34 = vmul.f32 2.1237322e-06, %v6606_v40 }
 0x19f   : > { %v2616_v30 = vmul.f32 %v2615_v9, %v6388_v59  ;;  %v1455_v48 = vadd.f32 0.0036580483, %v1454_v37  ;;  %v1612_v18 = vmul.f32 2.1237322e-06, %v6609_v16  ;;  %v2820_v29 = vmul.f32 %v2782_v52, %v8502_v51 }
 0x1a0   : > { %v1535_v55 = vadd.f32 0.0036580483, %v1534_v43  ;;  %v6631_v38 = vadd.f32 %v6509_v17, %v1083_v14  ;;  %v969_v63 = vadd.f32 %v6511_v26, %v6094_v12  ;;  %4654 = vrcp.f32 %v6619_v58  ;;  %v8504_v17 = vld [vmem:[#allocation47_spill] sm:$0xff] }
 0x1a1   : > { %v6638_v50 = vmin.f32 %v1690_v42, 16.0  ;;  %v2852_v47 = vpack.c.bf16 %v2822_v6, %v2820_v29  ;;  %v1985_v24 = vmul.f32 %v1984_v45, %v5824_v23  ;;  %v6643_v60 = vmul.f32 %v2221_v13, %v5966_v35  ;;  %v8505_v13 = vld [vmem:[#allocation26_spill] sm:$0xff]  ;;  %v8507_v29 = vld [vmem:[#allocation40_spill] sm:$0xff] }
 0x1a2   : > { %v6627_v61 = vpop.f32.mrf.mxu2  ;;  %8503 = vst [vmem:[#allocation38_spill] sm:$0xff] %v6631_v38  ;;  %v976_v31 = vpop.f32.mrf.mxu0  ;;  %v6646_v4 = vmul.f32 %v2301_v2, %v8504_v17  ;;  %v2459_v9 = vadd.f32 0.18741608, %v2458_v15  ;;  %v2539_v26 = vadd.f32 0.18741608, %v2538_v57  ;;  %v1456_v37 = vmul.f32 %v1455_v48, %v6539_v5 }
 0x1a3   : > { %v6635_v39 = vpop.f32.mrf.mxu3  ;;  %v977_v11 = vadd.f32 %v976_v31, %v6094_v12  ;;  %v1034_v25 = vpop.f32.mrf.mxu1  ;;  %v1613_v52 = vadd.f32 0.00028619796, %v1612_v18  ;;  %v1986_v43 = vadd.f32 0.014752088, %v1985_v24  ;;  %v2693_v14 = vadd.f32 0.00028619796, %v2692_v34 }
 0x1a4   : > { %v1536_v42 = vmul.f32 %v1535_v55, %v6553_v44  ;;  %v6651_v6 = vmul.f32 0.70710677, %v6631_v38  ;;  %v1027_v35 = vadd.f32 %v6519_v46, %v969_v63  ;;  %v6655_v2 = vmul.f32 %v2381_v0, %v8505_v13 }
 0x1a5   : > { %v1035_v53 = vadd.f32 %v1034_v25, %v977_v11  ;;  %3087 = vmatmul.bf16.gmra.mxu0 %v2852_v47  ;;  %v2617_v45 = vadd.f32 0.05243302, %v2616_v30  ;;  %v1692_v15 = vmul.f32 2.1237322e-06, %v6638_v50  ;;  %v1987_v57 = vmul.f32 %v1986_v43, %v5824_v23 }
 0x1a6   : > { %8506 = vst [vmem:[#allocation47_spill] sm:$0xff] %v6655_v2  ;;  %v6659_v48 = vpop.eup %4654  ;;  %v2460_v34 = vmul.f32 %v2459_v9, %v6231_v1  ;;  %v2540_v18 = vmul.f32 %v2539_v26, %v6265_v49  ;;  %v1085_v51 = vadd.f32 %v6556_v56, %v1027_v35  ;;  %v2063_v55 = vmul.f32 3.8918573e-05, %v8507_v29 }
 0x1a7   : > { %3203 = vmatmul.bf16.gmra.mxu2 %v2852_v47  ;;  %v1457_v46 = vadd.f32 0.05243302, %v1456_v37  ;;  %v1614_v63 = vmul.f32 %v1613_v52, %v6609_v16  ;;  %v1463_v30 = vmul.f32 3.8918573e-05, %v6539_v5  ;;  %v1988_v31 = vadd.f32 0.112945676, %v1987_v57 }
 0x1a8   : > { %v2694_v11 = vmul.f32 %v2693_v14, %v6606_v40  ;;  %v1537_v47 = vadd.f32 0.05243302, %v1536_v42  ;;  %v1770_v24 = vmul.f32 %v6651_v6, %v6651_v6  ;;  %v2618_v9 = vmul.f32 %v2617_v45, %v6388_v59 }
 0x1a9   : > { %v1693_v26 = vadd.f32 0.00028619796, %v1692_v15  ;;  %v1464_v25 = vadd.f32 0.001143296, %v1463_v30  ;;  %v1914_v37 = vmul.f32 %v6659_v48, %v6619_v58  ;;  %v6674_v52 = vadd.f32 %v6558_v62, %v1085_v51 }
 0x1aa   : > { %v1092_v0 = vpop.f32.mrf.mxu2  ;;  %v1989_v14 = vmul.f32 %v1988_v31, %v5824_v23  ;;  %v2064_v42 = vadd.f32 0.001143296, %v2063_v55  ;;  %v6679_v35 = vadd.f32 1.1283791, %v2460_v34  ;;  %v1615_v13 = vadd.f32 0.0036580483, %v1614_v63 }
 0x1ab   : > { %v1093_v17 = vadd.f32 %v1092_v0, %v1035_v53  ;;  %v1150_v56 = vpop.f32.mrf.mxu3  ;;  %8508 = vst [vmem:[#allocation26_spill] sm:$0xff] %v6674_v52  ;;  %v1458_v53 = vmul.f32 %v1457_v46, %v6539_v5  ;;  %v1465_v45 = vmul.f32 %v1464_v25, %v6539_v5  ;;  %v6683_v15 = vadd.f32 1.1283791, %v2540_v18 }
 0x1ac   : > { %v2695_v57 = vadd.f32 0.0036580483, %v2694_v11  ;;  %v1538_v0 = vmul.f32 %v1537_v47, %v6553_v44  ;;  %v6686_v30 = vmin.f32 %v1770_v24, 16.0  ;;  %v2619_v62 = vadd.f32 0.18741608, %v2618_v9 }
 0x1ad   : > { %v6676_v43 = vadd.f32 %v1150_v56, %v1093_v17  ;;  %8510 = vst [vmem:[#allocation56_spill] sm:$0xff] %v6683_v15  ;;  %v1694_v51 = vmul.f32 %v1693_v26, %v6638_v50  ;;  %v1466_v17 = vadd.f32 0.014752088, %v1465_v45  ;;  %v1915_v31 = vsub.f32 1.0, %v1914_v37 }
 0x1ae   : > { %v6690_v34 = vmul.f32 0.70710677, %v6674_v52  ;;  %v1543_v55 = vmul.f32 3.8918573e-05, %v6553_v44  ;;  %v1990_v46 = vadd.f32 0.4994258, %v1989_v14  ;;  %v2065_v63 = vmul.f32 %v2064_v42, %v8507_v29 }
 0x1af   : > { %8509 = vst [vmem:[#allocation40_spill] sm:$0xff] %v6676_v43  ;;  %v1459_v18 = vadd.f32 0.18741608, %v1458_v53  ;;  %v1616_v11 = vmul.f32 %v1615_v13, %v6609_v16  ;;  %v972_v47 = vadd.f32 %v6560_v28, %v6094_v12  ;;  %v1467_v24 = vmul.f32 %v1466_v17, %v6539_v5 }
 0x1b0   : > { %v1539_v9 = vadd.f32 0.18741608, %v1538_v0  ;;  %v1772_v26 = vmul.f32 2.1237322e-06, %v6686_v30  ;;  %v1544_v56 = vadd.f32 0.001143296, %v1543_v55  ;;  %v1991_v25 = vmul.f32 %v1990_v46, %v5824_v23 }
 0x1b1   : > { %v6701_v37 = vmul.f32 %v2695_v57, %v6606_v40  ;;  %v1695_v14 = vadd.f32 0.0036580483, %v1694_v51  ;;  %v1468_v45 = vadd.f32 0.112945676, %v1467_v24  ;;  %v1916_v42 = vmul.f32 %v6659_v48, %v1915_v31  ;;  %v6713_v24 = vpop.f32.mrf.mxu0 }
 0x1b2   : > { %v1850_v53 = vmul.f32 %v6690_v34, %v6690_v34  ;;  %v1545_v28 = vmul.f32 %v1544_v56, %v6553_v44  ;;  %v6707_v13 = vadd.f32 1.0, %v1991_v25  ;;  %v2066_v0 = vadd.f32 0.014752088, %v2065_v63 }
 0x1b3   : > { %v1460_v17 = vmul.f32 %v1459_v18, %v6539_v5  ;;  %v1617_v55 = vadd.f32 0.05243302, %v1616_v11  ;;  %v1030_v23 = vadd.f32 %v6566_v20, %v972_v47  ;;  %v1469_v57 = vmul.f32 %v1468_v45, %v6539_v5  ;;  %v6722_v11 = vpop.f32.mrf.mxu1 }
 0x1b4   : > { %v1540_v51 = vmul.f32 %v1539_v9, %v6553_v44  ;;  %v1773_v46 = vadd.f32 0.00028619796, %v1772_v26  ;;  %v1546_v31 = vadd.f32 0.014752088, %v1545_v28  ;;  %4656 = vrcp.f32 %v6707_v13 }
 0x1b5   : > { %v1470_v32 = vadd.f32 0.4994258, %v1469_v57  ;;  %v1917_v56 = vadd.f32 %v6659_v48, %v1916_v42  ;;  %vm1919_vm8 = vweird.f32 %v6659_v48  ;;  %v2067_v63 = vmul.f32 %v2066_v0, %v8507_v29 }
 0x1b6   : > { %v1696_v18 = vmul.f32 %v1695_v14, %v6638_v50  ;;  %v6720_v20 = vmin.f32 %v1850_v53, 16.0  ;;  %v1547_v47 = vmul.f32 %v1546_v31, %v6553_v44  ;;  %v1924_v9 = vand.u32 2147483648, %v6619_v58 }
 0x1b7   : > { %v1088_v26 = vadd.f32 %v6590_v36, %v1030_v23  ;;  %v1471_v25 = vmul.f32 %v1470_v32, %v6539_v5  ;;  %vm1918_vm9 = vweird.f32 %v6619_v58  ;;  %v1922_v45 = vand.u32 2147483647, %v6619_v58 }
 0x1b8   : > { %v1461_v42 = vadd.f32 1.1283791, %v1460_v17  ;;  %v1541_v28 = vadd.f32 1.1283791, %v1540_v51  ;;  %v1618_v14 = vmul.f32 %v1617_v55, %v6609_v16  ;;  %v1548_v53 = vadd.f32 0.112945676, %v1547_v47  ;;  %vm6733_vm10 = vmor %vm1918_vm9, %vm1919_vm8 }
 0x1b9   : > { %v1774_v57 = vmul.f32 %v1773_v46, %v6686_v30  ;;  %v6738_v36 = vadd.f32 1.0, %v1471_v25  ;;  %v1921_v32 = vsel %vm6733_vm10, %v6659_v48, %v1917_v56  ;;  %v2068_v5 = vadd.f32 0.112945676, %v2067_v63  ;;  %v6763_v25 = vpop.f32.mrf.mxu2 }
 0x1ba   : > { %v6743_v58 = vpop.eup %4656  ;;  %v1697_v17 = vadd.f32 0.05243302, %v1696_v18  ;;  %v1852_v55 = vmul.f32 2.1237322e-06, %v6720_v20  ;;  %v1549_v23 = vmul.f32 %v1548_v53, %v6553_v44  ;;  %v1925_v51 = vor.u32 1.1754944e-38, %v1924_v9 }
 0x1bb   : > { %v6748_v31 = vmul.f32 %v2619_v62, %v6388_v59  ;;  %v6751_v46 = vadd.f32 %v6596_v27, %v1088_v26  ;;  %4658 = vrcp.f32 %v6738_v36  ;;  %vm1923_vm11 = vcmp.eq.f32.partialorder %v1922_v45, 8.507059e+37  ;;  %v6765_v27 = vpop.f32.mrf.mxu3  ;;  %v8514_v45 = vld [vmem:[#allocation35_spill] sm:$0xff] }
 0x1bc   : > { %v974_v48 = vadd.f32 %v6598_v10, %v6094_v12  ;;  %v1550_v56 = vadd.f32 0.4994258, %v1549_v23  ;;  %v1926_v63 = vsel %vm1923_vm11, %v1925_v51, %v1921_v32  ;;  %v1994_v18 = vmul.f32 %v6743_v58, %v6707_v13  ;;  %v8517_v59 = vld [vmem:[#allocation27_spill] sm:$0xff] }
 0x1bd   : > { %8513 = vst [vmem:[#allocation57_spill] sm:$0xff] %v6751_v46  ;;  %v6759_v47 = vmul.f32 %v1461_v42, %v6492_v41  ;;  %v6761_v9 = vadd.f32 0.18741608, %v1618_v14  ;;  %v1775_v62 = vadd.f32 0.0036580483, %v1774_v57  ;;  %v2069_v26 = vmul.f32 %v2068_v5, %v8507_v29  ;;  %v981_v41 = vpop.f32.mrf.mxu0  ;;  %v8516_v57 = vld [vmem:[#allocation21_spill] sm:$0xff] }
 0x1be   : > { %v6769_v53 = vmul.f32 %v1541_v28, %v8514_v45  ;;  %v6772_v10 = vmul.f32 %v1697_v17, %v6638_v50  ;;  %v1853_v0 = vadd.f32 0.00028619796, %v1852_v55  ;;  %v1551_v32 = vmul.f32 %v1550_v56, %v6553_v44  ;;  %v1039_v28 = vpop.f32.mrf.mxu1 }
 0x1bf   : > { %v6776_v42 = vmul.f32 0.70710677, %v6751_v46  ;;  %v982_v14 = vadd.f32 %v981_v41, %v6094_v12  ;;  %v1927_v23 = vmul.f32 %v1926_v63, %v8516_v57  ;;  %v1995_v51 = vsub.f32 1.0, %v1994_v18 }
 0x1c0   : > { %v1032_v5 = vadd.f32 %v6602_v54, %v974_v48  ;;  %v6781_v21 = vadd.f32 1.0, %v1551_v32  ;;  %v2002_v17 = vand.u32 2147483647, %v6707_v13  ;;  %v2004_v55 = vand.u32 2147483648, %v6707_v13 }
 0x1c1   : > { %8515 = vst [vmem:[#allocation35_spill] sm:$0xff] %v6776_v42  ;;  %v4659_v45 = vpop.eup %4658  ;;  %v6786_v44 = vmul.f32 %v1775_v62, %v6686_v30  ;;  %v1040_v56 = vadd.f32 %v1039_v28, %v982_v14  ;;  %v1996_v22 = vmul.f32 %v6743_v58, %v1995_v51  ;;  %v2070_v41 = vadd.f32 0.4994258, %v2069_v26  ;;  %v1097_v51 = vpop.f32.mrf.mxu2 }
 0x1c2   : > { %v1854_v63 = vmul.f32 %v1853_v0, %v6720_v20  ;;  %v1474_v18 = vmul.f32 %v4659_v45, %v6738_v36  ;;  %4660 = vrcp.f32 %v6781_v21  ;;  %vm1999_vm12 = vweird.f32 %v6743_v58 }
 0x1c3   : > { %v1930_v54 = vmul.f32 %v6776_v42, %v6776_v42  ;;  %v1090_v48 = vadd.f32 %v6627_v61, %v1032_v5  ;;  %v4337_v32 = vclamps-f32 %v1927_v23, 1.0  ;;  %vm1998_vm13 = vweird.f32 %v6707_v13 }
 0x1c4   : > { %v1475_v62 = vsub.f32 1.0, %v1474_v18  ;;  %v1997_v14 = vadd.f32 %v6743_v58, %v1996_v22  ;;  %vm2003_vm14 = vcmp.eq.f32.partialorder %v2002_v17, 8.507059e+37  ;;  %v2005_v26 = vor.u32 1.1754944e-38, %v2004_v55  ;;  %vm2000_vm15 = vmor %vm1998_vm13, %vm1999_vm12  ;;  %v1155_v17 = vpop.f32.mrf.mxu3 }
 0x1c5   : > { %v1482_v0 = vand.u32 2147483647, %v6738_v36  ;;  %v1484_v57 = vand.u32 2147483648, %v6738_v36  ;;  %v1623_v28 = vmul.f32 3.8918573e-05, %v6609_v16  ;;  %v2071_v15 = vmul.f32 %v2070_v41, %v8507_v29 }
 0x1c6   : > { %v1476_v40 = vmul.f32 %v4659_v45, %v1475_v62  ;;  %vm1479_vm0 = vweird.f32 %v4659_v45  ;;  %v2001_v61 = vsel %vm2000_vm15, %v6743_v58, %v1997_v14  ;;  %v1098_v13 = vadd.f32 %v1097_v51, %v1040_v56  ;;  %v8518_v14 = vld [vmem:[#allocation42_spill] sm:$0xff] }
 0x1c7   : > { %v1855_v23 = vadd.f32 0.0036580483, %v1854_v63  ;;  %v2006_v5 = vsel %vm2003_vm14, %v2005_v26, %v2001_v61  ;;  %v2786_v22 = vadd.f32 1.0, %v4337_v32  ;;  %v1624_v55 = vadd.f32 0.001143296, %v1623_v28 }
 0x1c8   : > { %v4661_v18 = vpop.eup %4660  ;;  %v1477_v2 = vadd.f32 %v4659_v45, %v1476_v40  ;;  %vm1478_vm1 = vweird.f32 %v6738_v36  ;;  %v2007_v42 = vmul.f32 %v2006_v5, %v8517_v59  ;;  %v6805_v46 = vadd.f32 %v1155_v17, %v1098_v13 }
 0x1c9   : > { %v6808_v29 = vadd.f32 %v6635_v39, %v1090_v48  ;;  %vm1480_vm2 = vmor %vm1478_vm1, %vm1479_vm0  ;;  %v1485_v41 = vor.u32 1.1754944e-38, %v1484_v57  ;;  %v1554_v58 = vmul.f32 %v4661_v18, %v6781_v21  ;;  %v1625_v56 = vmul.f32 %v1624_v55, %v6609_v16 }
 0x1ca   : > { %v1481_v63 = vsel %vm1480_vm2, %v4659_v45, %v1477_v2  ;;  %vm1483_vm3 = vcmp.eq.f32.partialorder %v1482_v0, 8.507059e+37  ;;  %v4339_v32 = vclamps-f32 %v2007_v42, 1.0  ;;  %v6812_v62 = vadd.f32 1.0, %v2071_v15  ;;  %v8519_v15 = vld [vmem:[#allocation45_spill] sm:$0xff]  ;;  %v8520_v0 = vld [vmem:[#allocation43_spill] sm:$0xff] }
 0x1cb   : > { %v1486_v40 = vsel %vm1483_vm3, %v1485_v41, %v1481_v63  ;;  %v1555_v36 = vsub.f32 1.0, %v1554_v58  ;;  %v2824_v59 = vmul.f32 %v2786_v22, %v8518_v14  ;;  %v1626_v26 = vadd.f32 0.014752088, %v1625_v56  ;;  %v8522_v14 = vld [vmem:[#allocation51_spill] sm:$0xff] }
 0x1cc   : > { %v1562_v51 = vand.u32 2147483647, %v6781_v21  ;;  %v1564_v39 = vand.u32 2147483648, %v6781_v21  ;;  %v2788_v48 = vadd.f32 1.0, %v4339_v32  ;;  %v1703_v57 = vmul.f32 3.8918573e-05, %v6638_v50 }
 0x1cd   : > { %v1487_v28 = vmul.f32 %v1486_v40, %v6759_v47  ;;  %v1556_v61 = vmul.f32 %v4661_v18, %v1555_v36  ;;  %vm1559_vm4 = vweird.f32 %v4661_v18  ;;  %v1627_v2 = vmul.f32 %v1626_v26, %v6609_v16 }
 0x1ce   : > { %v2826_v42 = vmul.f32 %v2788_v48, %v8519_v15  ;;  %v1704_v45 = vadd.f32 0.001143296, %v1703_v57  ;;  %4662 = vrcp.f32 %v6812_v62  ;;  %v2143_v13 = vmul.f32 3.8918573e-05, %v8520_v0  ;;  %v8523_v48 = vld [vmem:[#allocation52_spill] sm:$0xff] }
 0x1cf   : > { %v6823_v5 = vmin.f32 %v1930_v54, 16.0  ;;  %v1557_v22 = vadd.f32 %v4661_v18, %v1556_v61  ;;  %vm1558_vm5 = vweird.f32 %v6781_v21  ;;  %v1628_v17 = vadd.f32 0.112945676, %v1627_v2  ;;  %v6832_v21 = vpop.f32.mrf.mxu0  ;;  %v6842_v2 = vpop.f32.mrf.mxu1 }
 0x1d0   : > { %v1856_v55 = vmul.f32 %v1855_v23, %v6720_v20  ;;  %vm1560_vm6 = vmor %vm1558_vm5, %vm1559_vm4  ;;  %v1565_v47 = vor.u32 1.1754944e-38, %v1564_v39  ;;  %v2854_v41 = vpack.c.bf16 %v2826_v42, %v2824_v59  ;;  %v1705_v58 = vmul.f32 %v1704_v45, %v6638_v50 }
 0x1d1   : > { %v4326_v56 = vclamps-f32 %v1487_v28, 1.0  ;;  %v1561_v63 = vsel %vm1560_vm6, %v4661_v18, %v1557_v22  ;;  %vm1563_vm7 = vcmp.eq.f32.partialorder %v1562_v51, 8.507059e+37  ;;  %v1629_v32 = vmul.f32 %v1628_v17, %v6609_v16 }
 0x1d2   : > { %v6830_v40 = vmul.f32 0.70710677, %v6808_v29  ;;  %v1566_v54 = vsel %vm1563_vm7, %v1565_v47, %v1561_v63  ;;  %3092 = vmatmul.bf16.gmra.mxu0 %v2854_v41  ;;  %3208 = vmatmul.bf16.gmra.mxu2 %v2854_v41  ;;  %v1706_v36 = vadd.f32 0.014752088, %v1705_v58  ;;  %v2144_v23 = vadd.f32 0.001143296, %v2143_v13 }
 0x1d3   : > { %v1179_v26 = vmul.f32 0.5, %v8522_v14  ;;  %v1699_v59 = vadd.f32 0.18741608, %v6772_v10  ;;  %v1567_v39 = vmul.f32 %v1566_v54, %v6769_v53  ;;  %v1630_v18 = vadd.f32 0.4994258, %v1629_v32 }
 0x1d4   : > { %8521 = vst [vmem:[#allocation21_spill] sm:$0xff] %v6830_v40  ;;  %v6837_v51 = vpop.eup %4662  ;;  %v1181_v57 = vmul.f32 0.5, %v8523_v48  ;;  %v1777_v28 = vadd.f32 0.05243302, %v6786_v44  ;;  %v1932_v61 = vmul.f32 2.1237322e-06, %v6823_v5  ;;  %v1707_v15 = vmul.f32 %v1706_v36, %v6638_v50 }
 0x1d5   : > { %v1857_v42 = vadd.f32 0.05243302, %v1856_v55  ;;  %v4328_v45 = vclamps-f32 %v1567_v39, 1.0  ;;  %v2775_v13 = vadd.f32 1.0, %v4326_v56  ;;  %v1631_v10 = vmul.f32 %v1630_v18, %v6609_v16 }
 0x1d6   : > { %v1620_v53 = vmul.f32 %v6761_v9, %v6609_v16  ;;  %v2010_v22 = vmul.f32 %v6830_v40, %v6830_v40  ;;  %v1708_v17 = vadd.f32 0.112945676, %v1707_v15  ;;  %v2145_v44 = vmul.f32 %v2144_v23, %v8520_v0  ;;  %v6868_v15 = vpop.f32.mrf.mxu2 }
 0x1d7   : > { %v1700_v47 = vmul.f32 %v1699_v59, %v6638_v50  ;;  %v2777_v41 = vadd.f32 1.0, %v4328_v45  ;;  %v6852_v58 = vadd.f32 1.0, %v1631_v10  ;;  %v2074_v55 = vmul.f32 %v6837_v51, %v6812_v62 }
 0x1d8   : > { %v1778_v56 = vmul.f32 %v1777_v28, %v6686_v30  ;;  %v1933_v63 = vadd.f32 0.00028619796, %v1932_v61  ;;  %v1709_v32 = vmul.f32 %v1708_v17, %v6638_v50  ;;  %v2146_v16 = vadd.f32 0.014752088, %v2145_v44  ;;  %v986_v17 = vpop.f32.mrf.mxu0 }
 0x1d9   : > { %v1858_v9 = vmul.f32 %v1857_v42, %v6720_v20  ;;  %v2813_v54 = vmul.f32 %v2775_v13, %v1179_v26  ;;  %v2815_v36 = vmul.f32 %v2777_v41, %v1181_v57  ;;  %4664 = vrcp.f32 %v6852_v58  ;;  %v8524_v41 = vld [vmem:[#allocation48_spill] sm:$0xff] }
 0x1da   : > { %v6861_v23 = vmul.f32 0.5, %v6542_v33  ;;  %v6864_v59 = vmul.f32 0.5, %v6577_v8  ;;  %v6866_v39 = vmin.f32 %v2010_v22, 16.0  ;;  %v1710_v18 = vadd.f32 0.4994258, %v1709_v32 }
 0x1db   : > { %v1621_v28 = vadd.f32 1.1283791, %v1620_v53  ;;  %v2849_v61 = vpack.c.bf16 %v2815_v36, %v2813_v54  ;;  %v2075_v45 = vsub.f32 1.0, %v2074_v55  ;;  %v2147_v42 = vmul.f32 %v2146_v16, %v8520_v0 }
 0x1dc   : > { %v1701_v26 = vadd.f32 1.1283791, %v1700_v47  ;;  %v1779_v57 = vadd.f32 0.18741608, %v1778_v56  ;;  %v1934_v13 = vmul.f32 %v1933_v63, %v6823_v5  ;;  %v1711_v10 = vmul.f32 %v1710_v18, %v6638_v50  ;;  %v6883_v63 = vpop.f32.mrf.mxu3  ;;  %v1044_v50 = vpop.f32.mrf.mxu1 }
 0x1dd   : > { %v1859_v44 = vadd.f32 0.18741608, %v1858_v9  ;;  %v979_v22 = vadd.f32 %v6713_v24, %v6094_v12  ;;  %3135 = vmatmul.bf16.gmra.mxu1 %v2849_v61  ;;  %3251 = vmatmul.bf16.gmra.mxu3 %v2849_v61  ;;  %v987_v53 = vadd.f32 %v986_v17, %v6094_v12  ;;  %v2223_v32 = vmul.f32 3.8918573e-05, %v8524_v41 }
 0x1de   : > { %v6878_v55 = vmul.f32 0.5, %v6631_v38  ;;  %v2012_v47 = vmul.f32 2.1237322e-06, %v6866_v39  ;;  %v6881_v56 = vadd.f32 1.0, %v1711_v10  ;;  %v2148_v16 = vadd.f32 0.112945676, %v2147_v42 }
 0x1df   : > { %v4665_v9 = vpop.eup %4664  ;;  %v1622_v24 = vmul.f32 %v1621_v28, %v6574_v19  ;;  %v6887_v54 = vmul.f32 0.5, %v6674_v52  ;;  %v1045_v36 = vadd.f32 %v1044_v50, %v987_v53  ;;  %v2076_v18 = vmul.f32 %v6837_v51, %v2075_v45 }
 0x1e0   : > { %v6891_v61 = vmul.f32 %v1701_v26, %v6593_v3  ;;  %v6894_v17 = vmul.f32 %v1779_v57, %v6686_v30  ;;  %v1634_v10 = vmul.f32 %v4665_v9, %v6852_v58  ;;  %4666 = vrcp.f32 %v6881_v56 }
 0x1e1   : > { %v6899_v42 = vmul.f32 %v1859_v44, %v6720_v20  ;;  %v1935_v19 = vadd.f32 0.0036580483, %v1934_v13  ;;  %v1037_v28 = vadd.f32 %v6722_v11, %v979_v22  ;;  %v2224_v52 = vadd.f32 0.001143296, %v2223_v32 }
 0x1e2   : > { %v2013_v53 = vadd.f32 0.00028619796, %v2012_v47  ;;  %v1635_v50 = vsub.f32 1.0, %v1634_v10  ;;  %v2082_v45 = vand.u32 2147483647, %v6812_v62  ;;  %v2149_v3 = vmul.f32 %v2148_v16, %v8520_v0  ;;  %v1102_v47 = vpop.f32.mrf.mxu2 }
 0x1e3   : > { %v1644_v26 = vand.u32 2147483648, %v6852_v58  ;;  %v2077_v57 = vadd.f32 %v6837_v51, %v2076_v18  ;;  %vm2079_vm8 = vweird.f32 %v6837_v51  ;;  %v2084_v38 = vand.u32 2147483648, %v6812_v62 }
 0x1e4   : > { %v1636_v44 = vmul.f32 %v4665_v9, %v1635_v50  ;;  %vm1639_vm9 = vweird.f32 %v4665_v9  ;;  %v1642_v13 = vand.u32 2147483647, %v6852_v58  ;;  %v2150_v11 = vadd.f32 0.4994258, %v2149_v3 }
 0x1e5   : > { %v6910_v22 = vmul.f32 0.70710677, %v6676_v43  ;;  %v1095_v32 = vadd.f32 %v6763_v25, %v1037_v28  ;;  %vm2078_vm10 = vweird.f32 %v6812_v62  ;;  %v2225_v16 = vmul.f32 %v2224_v52, %v8524_v41 }
 0x1e6   : > { %v4667_v18 = vpop.eup %4666  ;;  %v1637_v10 = vadd.f32 %v4665_v9, %v1636_v44  ;;  %vm1638_vm11 = vweird.f32 %v6852_v58  ;;  %vm6916_vm12 = vmor %vm2078_vm10, %vm2079_vm8  ;;  %vm6920_vm13 = vcmp.eq.f32.partialorder %v2082_v45, 8.507059e+37  ;;  %v2151_v8 = vmul.f32 %v2150_v11, %v8520_v0  ;;  %v1160_v45 = vpop.f32.mrf.mxu3 }
 0x1e7   : > { %vm1640_vm14 = vmor %vm1638_vm11, %vm1639_vm9  ;;  %v1645_v25 = vor.u32 1.1754944e-38, %v1644_v26  ;;  %v1714_v62 = vmul.f32 %v4667_v18, %v6881_v56  ;;  %v2081_v52 = vsel %vm6916_vm12, %v6837_v51, %v2077_v57  ;;  %v1103_v28 = vadd.f32 %v1102_v47, %v1045_v36  ;;  %v8530_v47 = vld [vmem:[#allocation29_spill] sm:$0xff] }
 0x1e8   : > { %v1641_v58 = vsel %vm1640_vm14, %v4665_v9, %v1637_v10  ;;  %vm1643_vm15 = vcmp.eq.f32.partialorder %v1642_v13, 8.507059e+37  ;;  %v2085_v44 = vor.u32 1.1754944e-38, %v2084_v38  ;;  %v6929_v33 = vadd.f32 1.0, %v2151_v8  ;;  %v8529_v8 = vld [vmem:[#allocation50_spill] sm:$0xff] }
 0x1e9   : > { %v1646_v48 = vsel %vm1643_vm15, %v1645_v25, %v1641_v58  ;;  %v1715_v14 = vsub.f32 1.0, %v1714_v62  ;;  %v6931_v43 = vadd.f32 %v1160_v45, %v1103_v28  ;;  %v2226_v0 = vadd.f32 0.014752088, %v2225_v16 }
 0x1ea   : > { %v1647_v11 = vmul.f32 %v1646_v48, %v1622_v24  ;;  %v1724_v26 = vand.u32 2147483648, %v6881_v56  ;;  %v2086_v40 = vsel %vm6920_vm13, %v2085_v44, %v2081_v52  ;;  %4668 = vrcp.f32 %v6929_v33 }
 0x1eb   : > { %v1716_v51 = vmul.f32 %v4667_v18, %v1715_v14  ;;  %vm1719_vm0 = vweird.f32 %v4667_v18  ;;  %v1722_v38 = vand.u32 2147483647, %v6881_v56  ;;  %v2303_v9 = vmul.f32 3.8918573e-05, %v8529_v8 }
 0x1ec   : > { %v2014_v36 = vmul.f32 %v2013_v53, %v6866_v39  ;;  %v2090_v57 = vmul.f32 %v6910_v22, %v6910_v22  ;;  %v6943_v48 = vadd.f32 %v6765_v27, %v1095_v32  ;;  %v1783_v24 = vmul.f32 3.8918573e-05, %v6686_v30 }
 0x1ed   : > { %v1717_v13 = vadd.f32 %v4667_v18, %v1716_v51  ;;  %vm1718_vm1 = vweird.f32 %v6881_v56  ;;  %v6948_v14 = vmul.f32 %v2086_v40, %v8530_v47  ;;  %v2227_v16 = vmul.f32 %v2226_v0, %v8524_v41 }
 0x1ee   : > { %v1936_v10 = vmul.f32 %v1935_v19, %v6823_v5  ;;  %v4330_v50 = vclamps-f32 %v1647_v11, 1.0  ;;  %vm1720_vm2 = vmor %vm1718_vm1, %vm1719_vm0  ;;  %v1725_v53 = vor.u32 1.1754944e-38, %v1724_v26  ;;  %v1784_v3 = vadd.f32 0.001143296, %v1783_v24 }
 0x1ef   : > { %v1721_v25 = vsel %vm1720_vm2, %v4667_v18, %v1717_v13  ;;  %vm1723_vm3 = vcmp.eq.f32.partialorder %v1722_v38, 8.507059e+37  ;;  %v2228_v27 = vadd.f32 0.112945676, %v2227_v16  ;;  %v2304_v32 = vadd.f32 0.001143296, %v2303_v9 }
 0x1f0   : > { %v4669_v62 = vpop.eup %4668  ;;  %v2015_v52 = vadd.f32 0.0036580483, %v2014_v36  ;;  %v6952_v28 = vmin.f32 %v2090_v57, 16.0  ;;  %v6955_v56 = vmul.f32 0.70710677, %v6943_v48  ;;  %v1726_v40 = vsel %vm1723_vm3, %v1725_v53, %v1721_v25 }
 0x1f1   : > { %v1727_v58 = vmul.f32 %v1726_v40, %v6891_v61  ;;  %v4341_v19 = vclamps-f32 %v6948_v14, 1.0  ;;  %v2154_v44 = vmul.f32 %v4669_v62, %v6929_v33  ;;  %v1785_v45 = vmul.f32 %v1784_v3, %v6686_v30 }
 0x1f2   : > { %v2779_v18 = vadd.f32 1.0, %v4330_v50  ;;  %v2229_v0 = vmul.f32 %v2228_v27, %v8524_v41  ;;  %v2305_v11 = vmul.f32 %v2304_v32, %v8529_v8  ;;  %v2383_v26 = vmul.f32 3.8918573e-05, %v6153_v7 }
 0x1f3   : > { %v4332_v51 = vclamps-f32 %v1727_v58, 1.0  ;;  %v2155_v38 = vsub.f32 1.0, %v2154_v44  ;;  %v2162_v9 = vand.u32 2147483647, %v6929_v33  ;;  %v1786_v36 = vadd.f32 0.014752088, %v1785_v45 }
 0x1f4   : > { %vm2159_vm4 = vweird.f32 %v4669_v62  ;;  %v2164_v61 = vand.u32 2147483648, %v6929_v33  ;;  %v1863_v57 = vmul.f32 3.8918573e-05, %v6720_v20  ;;  %v2230_v24 = vadd.f32 0.4994258, %v2229_v0 }
 0x1f5   : > { %v2781_v13 = vadd.f32 1.0, %v4332_v51  ;;  %v2156_v47 = vmul.f32 %v4669_v62, %v2155_v38  ;;  %v1787_v14 = vmul.f32 %v1786_v36, %v6686_v30  ;;  %v2306_v16 = vadd.f32 0.014752088, %v2305_v11  ;;  %v6979_v51 = vpop.f32.mrf.mxu0 }
 0x1f6   : > { %v2817_v50 = vmul.f32 %v2779_v18, %v6861_v23  ;;  %vm2158_vm5 = vweird.f32 %v6929_v33  ;;  %v1864_v53 = vadd.f32 0.001143296, %v1863_v57  ;;  %v2231_v3 = vmul.f32 %v2230_v24, %v8524_v41 }
 0x1f7   : > { %v2819_v25 = vmul.f32 %v2781_v13, %v6864_v59  ;;  %v2157_v27 = vadd.f32 %v4669_v62, %v2156_v47  ;;  %v1788_v32 = vadd.f32 0.112945676, %v1787_v14  ;;  %v2307_v40 = vmul.f32 %v2306_v16, %v8529_v8  ;;  %vm2160_vm6 = vmor %vm2158_vm5, %vm2159_vm4 }
 0x1f8   : > { %vm2163_vm7 = vcmp.eq.f32.partialorder %v2162_v9, 8.507059e+37  ;;  %v2165_v58 = vor.u32 1.1754944e-38, %v2164_v61  ;;  %v1865_v44 = vmul.f32 %v1864_v53, %v6720_v20  ;;  %v6975_v45 = vadd.f32 1.0, %v2231_v3  ;;  %v8531_v9 = vld [vmem:[#allocation37_spill] sm:$0xff]  ;;  %v6982_v61 = vpop.f32.mrf.mxu1 }
 0x1f9   : > { %v2851_v23 = vpack.c.bf16 %v2819_v25, %v2817_v50  ;;  %v2161_v18 = vsel %vm2160_vm6, %v4669_v62, %v2157_v27  ;;  %v1789_v33 = vmul.f32 %v1788_v32, %v6686_v30  ;;  %v2308_v0 = vadd.f32 0.112945676, %v2307_v40 }
 0x1fa   : > { %v1937_v41 = vadd.f32 0.05243302, %v1936_v10  ;;  %v2016_v59 = vmul.f32 %v2015_v52, %v6866_v39  ;;  %v2166_v11 = vsel %vm2163_vm7, %v2165_v58, %v2161_v18  ;;  %v1866_v38 = vadd.f32 0.014752088, %v1865_v44  ;;  %v8532_v18 = vld [vmem:[#allocation46_spill] sm:$0xff] }
 0x1fb   : > { %3140 = vmatmul.bf16.gmra.mxu1 %v2851_v23  ;;  %3256 = vmatmul.bf16.gmra.mxu3 %v2851_v23  ;;  %v2167_v36 = vmul.f32 %v2166_v11, %v8531_v9  ;;  %v1790_v57 = vadd.f32 0.4994258, %v1789_v33  ;;  %4670 = vrcp.f32 %v6975_v45  ;;  %v2384_v62 = vadd.f32 0.001143296, %v2383_v26 }
 0x1fc   : > { %v1781_v24 = vadd.f32 1.1283791, %v6894_v17  ;;  %v2092_v10 = vmul.f32 2.1237322e-06, %v6952_v28  ;;  %v2170_v52 = vmul.f32 %v6955_v56, %v6955_v56  ;;  %v1867_v13 = vmul.f32 %v1866_v38, %v6720_v20 }
 0x1fd   : > { %v4343_v47 = vclamps-f32 %v2167_v36, 1.0  ;;  %v2790_v14 = vadd.f32 1.0, %v4341_v19  ;;  %v1791_v16 = vmul.f32 %v1790_v57, %v6686_v30  ;;  %v2309_v50 = vmul.f32 %v2308_v0, %v8529_v8  ;;  %v8533_v0 = vld [vmem:[#allocation49_spill] sm:$0xff] }
 0x1fe   : > { %v1861_v53 = vadd.f32 1.1283791, %v6899_v42  ;;  %v1938_v3 = vmul.f32 %v1937_v41, %v6823_v5  ;;  %v2017_v26 = vadd.f32 0.05243302, %v2016_v59  ;;  %v1868_v25 = vadd.f32 0.112945676, %v1867_v13  ;;  %v7025_v13 = vpop.f32.mrf.mxu3 }
 0x1ff   : > { %v2792_v17 = vadd.f32 1.0, %v4343_v47  ;;  %v6994_v27 = vadd.f32 1.0, %v1791_v16  ;;  %v2310_v32 = vadd.f32 0.4994258, %v2309_v50  ;;  %v2385_v40 = vmul.f32 %v2384_v62, %v6153_v7  ;;  %v991_v47 = vpop.f32.mrf.mxu0 }
 0x200   : > { %v2093_v58 = vadd.f32 0.00028619796, %v2092_v10  ;;  %v6997_v44 = vmin.f32 %v2170_v52, 16.0  ;;  %v984_v30 = vadd.f32 %v6832_v21, %v6094_v12  ;;  %v1869_v19 = vmul.f32 %v1868_v25, %v6720_v20 }
 0x201   : > { %v7002_v23 = vpop.eup %4670  ;;  %v7005_v42 = vmul.f32 %v1781_v24, %v6651_v6  ;;  %v2828_v33 = vmul.f32 %v2790_v14, %v8532_v18  ;;  %v2830_v41 = vmul.f32 %v2792_v17, %v8533_v0  ;;  %4672 = vrcp.f32 %v6994_v27  ;;  %v7018_v6 = vpop.f32.mrf.mxu2 }
 0x202   : > { %v7011_v59 = vmul.f32 %v1861_v53, %v6690_v34  ;;  %v7013_v11 = vadd.f32 0.18741608, %v1938_v3  ;;  %v1870_v38 = vadd.f32 0.4994258, %v1869_v19  ;;  %v2234_v21 = vmul.f32 %v7002_v23, %v6975_v45 }
 0x203   : > { %v2018_v9 = vmul.f32 %v2017_v26, %v6866_v39  ;;  %v2856_v36 = vpack.c.bf16 %v2830_v41, %v2828_v33  ;;  %v2311_v57 = vmul.f32 %v2310_v32, %v8529_v8  ;;  %v2386_v62 = vadd.f32 0.014752088, %v2385_v40  ;;  %v1049_v8 = vpop.f32.mrf.mxu1 }
 0x204   : > { %v2094_v24 = vmul.f32 %v2093_v58, %v6952_v28  ;;  %v2172_v10 = vmul.f32 2.1237322e-06, %v6997_v44  ;;  %v1042_v34 = vadd.f32 %v6842_v2, %v984_v30  ;;  %v1871_v52 = vmul.f32 %v1870_v38, %v6720_v20 }
 0x205   : > { %v7028_v14 = vmul.f32 0.70710677, %v6805_v46  ;;  %3097 = vmatmul.bf16.gmra.mxu0 %v2856_v36  ;;  %3213 = vmatmul.bf16.gmra.mxu2 %v2856_v36  ;;  %v992_v16 = vadd.f32 %v991_v47, %v6094_v12  ;;  %v2235_v50 = vsub.f32 1.0, %v2234_v21  ;;  %v7031_v53 = vadd.f32 1.0, %v2311_v57 }
 0x206   : > { %v1100_v3 = vadd.f32 %v6868_v15, %v1042_v34  ;;  %v7034_v26 = vadd.f32 1.0, %v1871_v52  ;;  %v2242_v20 = vand.u32 2147483647, %v6975_v45  ;;  %v2244_v2 = vand.u32 2147483648, %v6975_v45 }
 0x207   : > { %v4673_v25 = vpop.eup %4672  ;;  %v1050_v17 = vadd.f32 %v1049_v8, %v992_v16  ;;  %v2236_v32 = vmul.f32 %v7002_v23, %v2235_v50  ;;  %4674 = vrcp.f32 %v7031_v53  ;;  %v2387_v40 = vmul.f32 %v2386_v62, %v6153_v7  ;;  %v993_v34 = vpop.f32.mrf.mxu0 }
 0x208   : > { %v7041_v58 = vadd.f32 0.18741608, %v2018_v9  ;;  %v1794_v30 = vmul.f32 %v4673_v25, %v6994_v27  ;;  %4676 = vrcp.f32 %v7034_v26  ;;  %vm2239_vm8 = vweird.f32 %v7002_v23 }
 0x209   : > { %v7046_v15 = vadd.f32 0.0036580483, %v2094_v24  ;;  %v7048_v19 = vadd.f32 0.00028619796, %v2172_v10  ;;  %v7052_v18 = vmul.f32 %v7028_v14, %v7028_v14  ;;  %v1802_v33 = vand.u32 2147483647, %v6994_v27  ;;  %v1107_v62 = vpop.f32.mrf.mxu2 }
 0x20a   : > { %v1795_v0 = vsub.f32 1.0, %v1794_v30  ;;  %v1804_v41 = vand.u32 2147483648, %v6994_v27  ;;  %v2237_v38 = vadd.f32 %v7002_v23, %v2236_v32  ;;  %vm2238_vm9 = vweird.f32 %v6975_v45  ;;  %v1165_v32 = vpop.f32.mrf.mxu3 }
 0x20b   : > { %v7059_v21 = vadd.f32 %v6883_v63, %v1100_v3  ;;  %vm7061_vm10 = vmor %vm2238_vm9, %vm2239_vm8  ;;  %vm7065_vm11 = vcmp.eq.f32.partialorder %v2242_v20, 8.507059e+37  ;;  %v2245_v57 = vor.u32 1.1754944e-38, %v2244_v2  ;;  %v2388_v24 = vadd.f32 0.112945676, %v2387_v40 }
 0x20c   : > { %v1796_v10 = vmul.f32 %v4673_v25, %v1795_v0  ;;  %vm1799_vm12 = vweird.f32 %v4673_v25  ;;  %v2241_v45 = vsel %vm7061_vm10, %v7002_v23, %v2237_v38  ;;  %v2463_v63 = vmul.f32 3.8918573e-05, %v6231_v1 }
 0x20d   : > { %v4675_v52 = vpop.eup %4674  ;;  %vm1798_vm13 = vweird.f32 %v6994_v27  ;;  %vm7074_vm14 = vcmp.eq.f32.partialorder %v1802_v33, 8.507059e+37  ;;  %v1108_v16 = vadd.f32 %v1107_v62, %v1050_v17  ;;  %v994_v8 = vadd.f32 %v993_v34, %v6094_v12  ;;  %v1051_v17 = vpop.f32.mrf.mxu1 }
 0x20e   : > { %v4677_v50 = vpop.eup %4676  ;;  %v1797_v3 = vadd.f32 %v4673_v25, %v1796_v10  ;;  %v1805_v20 = vor.u32 1.1754944e-38, %v1804_v41  ;;  %v1882_v2 = vand.u32 2147483647, %v7034_v26  ;;  %v2314_v23 = vmul.f32 %v4675_v52, %v7031_v53  ;;  %vm1800_vm15 = vmor %vm1798_vm13, %vm1799_vm12 }
 0x20f   : > { %v1874_v40 = vmul.f32 %v4677_v50, %v7034_v26  ;;  %v2246_v27 = vsel %vm7065_vm11, %v2245_v57, %v2241_v45  ;;  %v7085_v30 = vadd.f32 %v1165_v32, %v1108_v16  ;;  %v2389_v33 = vmul.f32 %v2388_v24, %v6153_v7 }
 0x210   : > { %v1801_v0 = vsel %vm1800_vm15, %v4673_v25, %v1797_v3  ;;  %v1884_v41 = vand.u32 2147483648, %v7034_v26  ;;  %v2315_v38 = vsub.f32 1.0, %v2314_v23  ;;  %v7089_v9 = vadd.f32 %v1051_v17, %v994_v8 }
 0x211   : > { %v1806_v62 = vsel %vm7074_vm14, %v1805_v20, %v1801_v0  ;;  %v1875_v10 = vsub.f32 1.0, %v1874_v40  ;;  %v2322_v34 = vand.u32 2147483647, %v7031_v53  ;;  %v2324_v36 = vand.u32 2147483648, %v7031_v53 }
 0x212   : > { %vm1879_vm0 = vweird.f32 %v4677_v50  ;;  %v2247_v57 = vmul.f32 %v2246_v27, %v6643_v60  ;;  %v2316_v45 = vmul.f32 %v4675_v52, %v2315_v38  ;;  %vm2319_vm1 = vweird.f32 %v4675_v52 }
 0x213   : > { %v1807_v25 = vmul.f32 %v1806_v62, %v7005_v42  ;;  %v1876_v24 = vmul.f32 %v4677_v50, %v1875_v10  ;;  %v1943_v16 = vmul.f32 3.8918573e-05, %v6823_v5  ;;  %v2390_v8 = vadd.f32 0.4994258, %v2389_v33 }
 0x214   : > { %vm1878_vm2 = vweird.f32 %v7034_v26  ;;  %vm7099_vm3 = vcmp.eq.f32.partialorder %v1882_v2, 8.507059e+37  ;;  %v2317_v3 = vadd.f32 %v4675_v52, %v2316_v45  ;;  %vm2318_vm4 = vweird.f32 %v7031_v53 }
 0x215   : > { %v1877_v20 = vadd.f32 %v4677_v50, %v1876_v24  ;;  %vm2320_vm5 = vmor %vm2318_vm4, %vm2319_vm1  ;;  %v2325_v60 = vor.u32 1.1754944e-38, %v2324_v36  ;;  %v1944_v23 = vadd.f32 0.001143296, %v1943_v16  ;;  %v2391_v32 = vmul.f32 %v2390_v8, %v6153_v7 }
 0x216   : > { %vm1880_vm6 = vmor %vm1878_vm2, %vm1879_vm0  ;;  %v1885_v42 = vor.u32 1.1754944e-38, %v1884_v41  ;;  %v4345_v40 = vclamps-f32 %v2247_v57, 1.0  ;;  %v2321_v27 = vsel %vm2320_vm5, %v4675_v52, %v2317_v3  ;;  %vm2323_vm7 = vcmp.eq.f32.partialorder %v2322_v34, 8.507059e+37 }
 0x217   : > { %v4334_v26 = vclamps-f32 %v1807_v25, 1.0  ;;  %v1881_v2 = vsel %vm1880_vm6, %v4677_v50, %v1877_v20  ;;  %v2326_v17 = vsel %vm2323_vm7, %v2325_v60, %v2321_v27  ;;  %v1945_v33 = vmul.f32 %v1944_v23, %v6823_v5  ;;  %v8542_v20 = vld [vmem:[#allocation23_spill] sm:$0xff]  ;;  %v8543_v23 = vld [vmem:[#allocation6_spill] sm:$0xff] }
 0x218   : > { %v2174_v53 = vmul.f32 %v7048_v19, %v6997_v44  ;;  %v7110_v0 = vmin.f32 %v7052_v18, 16.0  ;;  %v1886_v7 = vsel %vm7099_vm3, %v1885_v42, %v1881_v2  ;;  %v2327_v38 = vmul.f32 %v2326_v17, %v6646_v4 }
 0x219   : > { %v1887_v41 = vmul.f32 %v1886_v7, %v7011_v59  ;;  %v1946_v52 = vadd.f32 0.014752088, %v1945_v33  ;;  %v7116_v62 = vadd.f32 1.0, %v2391_v32  ;;  %v2464_v50 = vadd.f32 0.001143296, %v2463_v63 }
 0x21a   : > { %v7119_v10 = vmul.f32 0.70710677, %v7059_v21  ;;  %v4347_v34 = vclamps-f32 %v2327_v38, 1.0  ;;  %v2794_v36 = vadd.f32 1.0, %v4345_v40  ;;  %v2023_v19 = vmul.f32 3.8918573e-05, %v6866_v39 }
 0x21b   : > { %v4336_v18 = vclamps-f32 %v1887_v41, 1.0  ;;  %v2783_v57 = vadd.f32 1.0, %v4334_v26  ;;  %v1947_v45 = vmul.f32 %v1946_v52, %v6823_v5  ;;  %4678 = vrcp.f32 %v7116_v62 }
 0x21c   : > { %v1940_v4 = vmul.f32 %v7013_v11, %v6823_v5  ;;  %v2175_v59 = vadd.f32 0.0036580483, %v2174_v53  ;;  %v2796_v25 = vadd.f32 1.0, %v4347_v34  ;;  %v2024_v24 = vadd.f32 0.001143296, %v2023_v19 }
 0x21d   : > { %v2252_v63 = vmul.f32 2.1237322e-06, %v7110_v0  ;;  %v2785_v16 = vadd.f32 1.0, %v4336_v18  ;;  %v1948_v8 = vadd.f32 0.112945676, %v1947_v45  ;;  %v2465_v47 = vmul.f32 %v2464_v50, %v6231_v1 }
 0x21e   : > { %v2096_v3 = vmul.f32 %v7046_v15, %v6952_v28  ;;  %v2832_v60 = vmul.f32 %v2794_v36, %v8542_v20  ;;  %v2834_v32 = vmul.f32 %v2796_v25, %v8543_v23  ;;  %v2025_v42 = vmul.f32 %v2024_v24, %v6866_v39 }
 0x21f   : > { %v2330_v11 = vmul.f32 %v7119_v10, %v7119_v10  ;;  %v2821_v40 = vmul.f32 %v2783_v57, %v6878_v55  ;;  %v2823_v27 = vmul.f32 %v2785_v16, %v6887_v54  ;;  %v1949_v26 = vmul.f32 %v1948_v8, %v6823_v5  ;;  %v8544_v57 = vld [vmem:[#allocation28_spill] sm:$0xff] }
 0x220   : > { %v2020_v2 = vmul.f32 %v7041_v58, %v6866_v39  ;;  %v2176_v15 = vmul.f32 %v2175_v59, %v6997_v44  ;;  %v2858_v17 = vpack.c.bf16 %v2834_v32, %v2832_v60  ;;  %v2026_v33 = vadd.f32 0.014752088, %v2025_v42  ;;  %v8545_v60 = vld [vmem:[#allocation57_spill] sm:$0xff] }
 0x221   : > { %v7141_v53 = vpop.eup %4678  ;;  %v2253_v7 = vadd.f32 0.00028619796, %v2252_v63  ;;  %v2853_v38 = vpack.c.bf16 %v2823_v27, %v2821_v40  ;;  %v1950_v41 = vadd.f32 0.4994258, %v1949_v26  ;;  %v2466_v52 = vadd.f32 0.014752088, %v2465_v47 }
 0x222   : > { %v1941_v50 = vadd.f32 1.1283791, %v1940_v4  ;;  %v2097_v34 = vadd.f32 0.05243302, %v2096_v3  ;;  %3102 = vmatmul.bf16.gmra.mxu0 %v2858_v17  ;;  %3218 = vmatmul.bf16.gmra.mxu2 %v2858_v17  ;;  %v2027_v55 = vmul.f32 %v2026_v33, %v6866_v39  ;;  %v2394_v54 = vmul.f32 %v7141_v53, %v7116_v62  ;;  %v8546_v27 = vld [vmem:[#allocation35_spill] sm:$0xff]  ;;  %v1109_v17 = vpop.f32.mrf.mxu2  ;;  %v1167_v33 = vpop.f32.mrf.mxu3 }
 0x223   : > { %v7146_v58 = vmin.f32 %v2330_v11, 16.0  ;;  %3145 = vmatmul.bf16.gmra.mxu1 %v2853_v38  ;;  %3261 = vmatmul.bf16.gmra.mxu3 %v2853_v38  ;;  %v1951_v36 = vmul.f32 %v1950_v41, %v6823_v5  ;;  %v2467_v19 = vmul.f32 %v2466_v52, %v6231_v1  ;;  %v2543_v18 = vmul.f32 3.8918573e-05, %v6265_v49 }
 0x224   : > { %v7153_v45 = vmul.f32 %v6679_v35, %v8544_v57  ;;  %v2021_v4 = vadd.f32 1.1283791, %v2020_v2  ;;  %v2177_v59 = vadd.f32 0.05243302, %v2176_v15  ;;  %v2028_v25 = vadd.f32 0.112945676, %v2027_v55 }
 0x225   : > { %v2254_v24 = vmul.f32 %v2253_v7, %v7110_v0  ;;  %v7156_v63 = vadd.f32 1.0, %v1951_v36  ;;  %v2468_v16 = vadd.f32 0.112945676, %v2467_v19  ;;  %v2544_v8 = vadd.f32 0.001143296, %v2543_v18 }
 0x226   : > { %v7159_v47 = vadd.f32 0.05243302, %v6701_v37  ;;  %v2098_v5 = vmul.f32 %v2097_v34, %v6952_v28  ;;  %v2029_v3 = vmul.f32 %v2028_v25, %v6866_v39  ;;  %v2395_v20 = vsub.f32 1.0, %v2394_v54  ;;  %v996_v34 = vpop.f32.mrf.mxu0 }
 0x227   : > { %v7164_v35 = vadd.f32 1.1283791, %v6748_v31  ;;  %v7167_v23 = vmul.f32 0.5, %v8545_v60  ;;  %v2332_v32 = vmul.f32 2.1237322e-06, %v7146_v58  ;;  %4680 = vrcp.f32 %v7156_v63  ;;  %v8547_v31 = vld [vmem:[#allocation21_spill] sm:$0xff] }
 0x228   : > { %v7172_v42 = vmul.f32 0.5, %v6808_v29  ;;  %v2178_v37 = vmul.f32 %v2177_v59, %v6997_v44  ;;  %v2030_v11 = vadd.f32 0.4994258, %v2029_v3  ;;  %v2469_v40 = vmul.f32 %v2468_v16, %v6231_v1  ;;  %v1054_v16 = vpop.f32.mrf.mxu1 }
 0x229   : > { %v7177_v26 = vmul.f32 %v1941_v50, %v8546_v27  ;;  %v7180_v2 = vmul.f32 %v2021_v4, %v8547_v31  ;;  %v2255_v15 = vadd.f32 0.0036580483, %v2254_v24  ;;  %v2545_v7 = vmul.f32 %v2544_v8, %v6265_v49 }
 0x22a   : > { %v7183_v38 = vadd.f32 0.18741608, %v2098_v5  ;;  %v2031_v41 = vmul.f32 %v2030_v11, %v6866_v39  ;;  %v1110_v52 = vadd.f32 %v1109_v17, %v7089_v9  ;;  %v2396_v55 = vmul.f32 %v7141_v53, %v2395_v20  ;;  %v1170_v17 = vpop.f32.mrf.mxu3 }
 0x22b   : > { %v2333_v54 = vadd.f32 0.00028619796, %v2332_v32  ;;  %v989_v50 = vadd.f32 %v6979_v51, %v6094_v12  ;;  %v2470_v36 = vadd.f32 0.4994258, %v2469_v40  ;;  %v2546_v19 = vadd.f32 0.014752088, %v2545_v7 }
 0x22c   : > { %v7190_v18 = vadd.f32 0.18741608, %v2178_v37  ;;  %v7192_v57 = vadd.f32 1.0, %v2031_v41  ;;  %v7194_v4 = vadd.f32 %v1167_v33, %v1110_v52  ;;  %v997_v59 = vadd.f32 %v996_v34, %v6094_v12  ;;  %v8550_v34 = vld [vmem:[#allocation13_spill] sm:$0xff] }
 0x22d   : > { %v4681_v39 = vpop.eup %4680  ;;  %v7198_v9 = vmul.f32 %v2255_v15, %v7110_v0  ;;  %v2404_v25 = vand.u32 2147483648, %v7116_v62  ;;  %v2471_v24 = vmul.f32 %v2470_v36, %v6231_v1  ;;  %v2547_v51 = vmul.f32 %v2546_v19, %v6265_v49  ;;  %v1112_v15 = vpop.f32.mrf.mxu2 }
 0x22e   : > { %v1954_v8 = vmul.f32 %v4681_v39, %v7156_v63  ;;  %4682 = vrcp.f32 %v7192_v57  ;;  %v2397_v5 = vadd.f32 %v7141_v53, %v2396_v55  ;;  %vm2399_vm8 = vweird.f32 %v7141_v53  ;;  %v998_v41 = vpop.f32.mrf.mxu0 }
 0x22f   : > { %v2334_v12 = vmul.f32 %v2333_v54, %v7146_v58  ;;  %v7209_v3 = vadd.f32 %v6982_v61, %v989_v50  ;;  %vm2398_vm9 = vweird.f32 %v7116_v62  ;;  %v2402_v1 = vand.u32 2147483647, %v7116_v62 }
 0x230   : > { %v1955_v20 = vsub.f32 1.0, %v1954_v8  ;;  %v1962_v32 = vand.u32 2147483647, %v7156_v63  ;;  %v7214_v37 = vadd.f32 1.0, %v2471_v24  ;;  %v1055_v11 = vadd.f32 %v1054_v16, %v997_v59  ;;  %vm7220_vm10 = vmor %vm2398_vm9, %vm2399_vm8  ;;  %v1056_v16 = vpop.f32.mrf.mxu1 }
 0x231   : > { %v7217_v40 = vmul.f32 0.70710677, %v6931_v43  ;;  %v1964_v27 = vand.u32 2147483648, %v7156_v63  ;;  %v2405_v61 = vor.u32 1.1754944e-38, %v2404_v25  ;;  %v2548_v33 = vadd.f32 0.112945676, %v2547_v51 }
 0x232   : > { %v1956_v62 = vmul.f32 %v4681_v39, %v1955_v20  ;;  %vm1959_vm11 = vweird.f32 %v4681_v39  ;;  %v2401_v7 = vsel %vm7220_vm10, %v7141_v53, %v2397_v5  ;;  %4684 = vrcp.f32 %v7214_v37 }
 0x233   : > { %vm1958_vm12 = vweird.f32 %v7156_v63  ;;  %vm2403_vm13 = vcmp.eq.f32.partialorder %v2402_v1, 8.507059e+37  ;;  %v1113_v52 = vadd.f32 %v1112_v15, %v1055_v11  ;;  %v2623_v55 = vmul.f32 3.8918573e-05, %v8550_v34 }
 0x234   : > { %v4683_v54 = vpop.eup %4682  ;;  %v1957_v50 = vadd.f32 %v4681_v39, %v1956_v62  ;;  %vm1963_vm14 = vcmp.eq.f32.partialorder %v1962_v32, 8.507059e+37  ;;  %v2103_v36 = vmul.f32 3.8918573e-05, %v6952_v28  ;;  %v2549_v19 = vmul.f32 %v2548_v33, %v6265_v49  ;;  %vm1960_vm15 = vmor %vm1958_vm12, %vm1959_vm11 }
 0x235   : > { %v1965_v59 = vor.u32 1.1754944e-38, %v1964_v27  ;;  %v2034_v53 = vmul.f32 %v4683_v54, %v7192_v57  ;;  %v2042_v25 = vand.u32 2147483647, %v7192_v57  ;;  %v2406_v24 = vsel %vm2403_vm13, %v2405_v61, %v2401_v7  ;;  %v8551_v27 = vld [vmem:[#allocation47_spill] sm:$0xff]  ;;  %v1172_v7 = vpop.f32.mrf.mxu3 }
 0x236   : > { %v1961_v63 = vsel %vm1960_vm15, %v4681_v39, %v1957_v50  ;;  %v2044_v51 = vand.u32 2147483648, %v7192_v57  ;;  %v7235_v8 = vadd.f32 %v1170_v17, %v1113_v52  ;;  %v2104_v5 = vadd.f32 0.001143296, %v2103_v36  ;;  %v1114_v17 = vpop.f32.mrf.mxu2 }
 0x237   : > { %v2335_v1 = vadd.f32 0.0036580483, %v2334_v12  ;;  %v1966_v20 = vsel %vm1963_vm14, %v1965_v59, %v1961_v63  ;;  %v2035_v32 = vsub.f32 1.0, %v2034_v53  ;;  %v2550_v11 = vadd.f32 0.4994258, %v2549_v19 }
 0x238   : > { %v4685_v31 = vpop.eup %4684  ;;  %v1967_v15 = vmul.f32 %v1966_v20, %v7177_v26  ;;  %v2407_v33 = vmul.f32 %v2406_v24, %v8551_v27  ;;  %v2105_v62 = vmul.f32 %v2104_v5, %v6952_v28  ;;  %v2624_v41 = vadd.f32 0.001143296, %v2623_v55 }
 0x239   : > { %v2036_v61 = vmul.f32 %v4683_v54, %v2035_v32  ;;  %vm2038_vm0 = vweird.f32 %v7192_v57  ;;  %vm2039_vm1 = vweird.f32 %v4683_v54  ;;  %v2474_v39 = vmul.f32 %v4685_v31, %v7214_v37 }
 0x23a   : > { %vm7242_vm2 = vcmp.eq.f32.partialorder %v2042_v25, 8.507059e+37  ;;  %v2045_v52 = vor.u32 1.1754944e-38, %v2044_v51  ;;  %v2106_v50 = vadd.f32 0.014752088, %v2105_v62  ;;  %v2551_v26 = vmul.f32 %v2550_v11, %v6265_v49  ;;  %vm2040_vm3 = vmor %vm2038_vm0, %vm2039_vm1 }
 0x23b   : > { %v2037_v36 = vadd.f32 %v4683_v54, %v2036_v61  ;;  %v2475_v19 = vsub.f32 1.0, %v2474_v39  ;;  %v2482_v55 = vand.u32 2147483647, %v7214_v37  ;;  %v2183_v59 = vmul.f32 3.8918573e-05, %v6997_v44 }
 0x23c   : > { %v4338_v57 = vclamps-f32 %v1967_v15, 1.0  ;;  %vm2479_vm4 = vweird.f32 %v4685_v31  ;;  %v2484_v53 = vand.u32 2147483648, %v7214_v37  ;;  %v2107_v25 = vmul.f32 %v2106_v50, %v6952_v28 }
 0x23d   : > { %v2041_v24 = vsel %vm2040_vm3, %v4683_v54, %v2037_v36  ;;  %v2476_v16 = vmul.f32 %v4685_v31, %v2475_v19  ;;  %v2184_v63 = vadd.f32 0.001143296, %v2183_v59  ;;  %v7251_v51 = vadd.f32 1.0, %v2551_v26 }
 0x23e   : > { %v2046_v49 = vsel %vm7242_vm2, %v2045_v52, %v2041_v24  ;;  %v4349_v5 = vclamps-f32 %v2407_v33, 1.0  ;;  %v2108_v20 = vadd.f32 0.112945676, %v2107_v25  ;;  %v2625_v32 = vmul.f32 %v2624_v41, %v8550_v34 }
 0x23f   : > { %v2047_v11 = vmul.f32 %v2046_v49, %v7180_v2  ;;  %v2477_v15 = vadd.f32 %v4685_v31, %v2476_v16  ;;  %vm2478_vm5 = vweird.f32 %v7214_v37  ;;  %v2185_v27 = vmul.f32 %v2184_v63, %v6997_v44 }
 0x240   : > { %v2787_v62 = vadd.f32 1.0, %v4338_v57  ;;  %vm2480_vm6 = vmor %vm2478_vm5, %vm2479_vm4  ;;  %vm2483_vm7 = vcmp.eq.f32.partialorder %v2482_v55, 8.507059e+37  ;;  %v2485_v54 = vor.u32 1.1754944e-38, %v2484_v53  ;;  %v2109_v61 = vmul.f32 %v2108_v20, %v6952_v28  ;;  %v8554_v53 = vld [vmem:[#allocation55_spill] sm:$0xff] }
 0x241   : > { %v4340_v39 = vclamps-f32 %v2047_v11, 1.0  ;;  %v2481_v17 = vsel %vm2480_vm6, %v4685_v31, %v2477_v15  ;;  %v2186_v33 = vadd.f32 0.014752088, %v2185_v27  ;;  %4686 = vrcp.f32 %v7251_v51  ;;  %v8555_v20 = vld [vmem:[#allocation31_spill] sm:$0xff] }
 0x242   : > { %v2410_v2 = vmul.f32 %v7217_v40, %v7217_v40  ;;  %v1105_v37 = vadd.f32 %v7018_v6, %v7209_v3  ;;  %v2486_v41 = vsel %vm2483_vm7, %v2485_v54, %v2481_v17  ;;  %v2110_v7 = vadd.f32 0.4994258, %v2109_v61  ;;  %v8556_v11 = vld [vmem:[#allocation11_spill] sm:$0xff] }
 0x243   : > { %v2257_v12 = vadd.f32 0.05243302, %v7198_v9  ;;  %v2789_v52 = vadd.f32 1.0, %v4340_v39  ;;  %v2487_v50 = vmul.f32 %v2486_v41, %v7153_v45  ;;  %v2187_v26 = vmul.f32 %v2186_v33, %v6997_v44  ;;  %v8557_v33 = vld [vmem:[#allocation7_spill] sm:$0xff] }
 0x244   : > { %v2336_v31 = vmul.f32 %v2335_v1, %v7146_v58  ;;  %v2798_v36 = vadd.f32 1.0, %v4349_v5  ;;  %v2111_v19 = vmul.f32 %v2110_v7, %v6952_v28  ;;  %v2626_v55 = vadd.f32 0.014752088, %v2625_v32 }
 0x245   : > { %v2825_v59 = vmul.f32 %v2787_v62, %v7167_v23  ;;  %v2827_v57 = vmul.f32 %v2789_v52, %v7172_v42  ;;  %v4351_v6 = vclamps-f32 %v2487_v50, 1.0  ;;  %v2188_v3 = vadd.f32 0.112945676, %v2187_v26  ;;  %v8559_v52 = vld [vmem:[#allocation12_spill] sm:$0xff] }
 0x246   : > { %v2698_v9 = vmul.f32 %v7159_v47, %v8554_v53  ;;  %v7275_v25 = vmin.f32 %v2410_v2, 16.0  ;;  %v7278_v45 = vadd.f32 %v7025_v13, %v1105_v37  ;;  %v7280_v24 = vadd.f32 1.0, %v2111_v19  ;;  %v8558_v2 = vld [vmem:[#allocation56_spill] sm:$0xff] }
 0x247   : > { %v7282_v1 = vpop.eup %4686  ;;  %v2100_v16 = vmul.f32 %v7183_v38, %v6952_v28  ;;  %v2855_v23 = vpack.c.bf16 %v2827_v57, %v2825_v59  ;;  %v2800_v63 = vadd.f32 1.0, %v4351_v6  ;;  %v2189_v42 = vmul.f32 %v2188_v3, %v6997_v44 }
 0x248   : > { %v2180_v49 = vmul.f32 %v7190_v18, %v6997_v44  ;;  %v2258_v47 = vmul.f32 %v2257_v12, %v7110_v0  ;;  %4688 = vrcp.f32 %v7280_v24  ;;  %v2627_v13 = vmul.f32 %v2626_v55, %v8550_v34 }
 0x249   : > { %v2337_v5 = vadd.f32 0.05243302, %v2336_v31  ;;  %3150 = vmatmul.bf16.gmra.mxu1 %v2855_v23  ;;  %3266 = vmatmul.bf16.gmra.mxu3 %v2855_v23  ;;  %v2836_v32 = vmul.f32 %v2798_v36, %v8555_v20  ;;  %v2838_v28 = vmul.f32 %v2800_v63, %v8556_v11  ;;  %v2190_v38 = vadd.f32 0.4994258, %v2189_v42 }
 0x24a   : > { %v2412_v15 = vmul.f32 2.1237322e-06, %v7275_v25  ;;  %v7296_v27 = vmul.f32 0.70710677, %v7278_v45  ;;  %v2554_v18 = vmul.f32 %v7282_v1, %v7251_v51  ;;  %v2703_v62 = vmul.f32 3.8918573e-05, %v8554_v53 }
 0x24b   : > { %v2699_v54 = vadd.f32 0.18741608, %v2698_v9  ;;  %v2101_v61 = vadd.f32 1.1283791, %v2100_v16  ;;  %v2860_v39 = vpack.c.bf16 %v2838_v28, %v2836_v32  ;;  %v2191_v17 = vmul.f32 %v2190_v38, %v6997_v44 }
 0x24c   : > { %v7304_v37 = vmul.f32 %v8558_v2, %v8557_v33  ;;  %v2181_v41 = vadd.f32 1.1283791, %v2180_v49  ;;  %v2259_v7 = vadd.f32 0.18741608, %v2258_v47  ;;  %v2628_v12 = vadd.f32 0.112945676, %v2627_v13 }
 0x24d   : > { %v7308_v50 = vmul.f32 %v7164_v35, %v8559_v52  ;;  %v2338_v26 = vmul.f32 %v2337_v5, %v7146_v58  ;;  %3107 = vmatmul.bf16.gmra.mxu0 %v2860_v39  ;;  %3223 = vmatmul.bf16.gmra.mxu2 %v2860_v39  ;;  %v7311_v31 = vadd.f32 1.0, %v2191_v17  ;;  %v2555_v36 = vsub.f32 1.0, %v2554_v18  ;;  %v8560_v35 = vld [vmem:[#allocation40_spill] sm:$0xff] }
 0x24e   : > { %v4689_v19 = vpop.eup %4688  ;;  %v2413_v44 = vadd.f32 0.00028619796, %v2412_v15  ;;  %v2490_v55 = vmul.f32 %v7296_v27, %v7296_v27  ;;  %v2629_v59 = vmul.f32 %v2628_v12, %v8550_v34  ;;  %v2704_v57 = vadd.f32 0.001143296, %v2703_v62 }
 0x24f   : > { %v7317_v6 = vmul.f32 %v2699_v54, %v8554_v53  ;;  %v7320_v3 = vmul.f32 0.5, %v8560_v35  ;;  %v2114_v9 = vmul.f32 %v4689_v19, %v7280_v24  ;;  %4690 = vrcp.f32 %v7311_v31 }
 0x250   : > { %v2102_v16 = vmul.f32 %v2101_v61, %v6910_v22  ;;  %v7326_v23 = vmul.f32 0.5, %v6943_v48  ;;  %v7329_v63 = vmul.f32 %v2181_v41, %v6955_v56  ;;  %v7332_v42 = vmul.f32 %v2259_v7, %v7110_v0 }
 0x251   : > { %v2339_v49 = vadd.f32 0.18741608, %v2338_v26  ;;  %v2115_v47 = vsub.f32 1.0, %v2114_v9  ;;  %v2556_v13 = vmul.f32 %v7282_v1, %v2555_v36  ;;  %v2630_v5 = vadd.f32 0.4994258, %v2629_v59 }
 0x252   : > { %v7336_v20 = vmul.f32 %v2413_v44, %v7275_v25  ;;  %v7338_v32 = vmin.f32 %v2490_v55, 16.0  ;;  %v2124_v22 = vand.u32 2147483648, %v7280_v24  ;;  %v2705_v11 = vmul.f32 %v2704_v57, %v8554_v53 }
 0x253   : > { %v2116_v28 = vmul.f32 %v4689_v19, %v2115_v47  ;;  %vm2119_vm8 = vweird.f32 %v4689_v19  ;;  %v2122_v56 = vand.u32 2147483647, %v7280_v24  ;;  %v2631_v38 = vmul.f32 %v2630_v5, %v8550_v34 }
 0x254   : > { %vm2118_vm9 = vweird.f32 %v7280_v24  ;;  %vm2558_vm10 = vweird.f32 %v7251_v51  ;;  %v2564_v15 = vand.u32 2147483648, %v7251_v51  ;;  %v2263_v18 = vmul.f32 3.8918573e-05, %v7110_v0 }
 0x255   : > { %v4691_v62 = vpop.eup %4690  ;;  %v2117_v54 = vadd.f32 %v4689_v19, %v2116_v28  ;;  %v2557_v61 = vadd.f32 %v7282_v1, %v2556_v13  ;;  %vm2559_vm11 = vweird.f32 %v7282_v1  ;;  %v7350_v39 = vadd.f32 1.0, %v2631_v38  ;;  %vm2120_vm12 = vmor %vm2118_vm9, %vm2119_vm8 }
 0x256   : > { %v2125_v17 = vor.u32 1.1754944e-38, %v2124_v22  ;;  %v2194_v34 = vmul.f32 %v4691_v62, %v7311_v31  ;;  %v2264_v33 = vadd.f32 0.001143296, %v2263_v18  ;;  %v2706_v24 = vadd.f32 0.014752088, %v2705_v11  ;;  %vm7358_vm14 = vmor %vm2558_vm10, %vm2559_vm11 }
 0x257   : > { %v2121_v2 = vsel %vm2120_vm12, %v4689_v19, %v2117_v54  ;;  %vm2123_vm13 = vcmp.eq.f32.partialorder %v2122_v56, 8.507059e+37  ;;  %v2562_v41 = vand.u32 2147483647, %v7251_v51  ;;  %4692 = vrcp.f32 %v7350_v39 }
 0x258   : > { %v2492_v7 = vmul.f32 2.1237322e-06, %v7338_v32  ;;  %v2126_v12 = vsel %vm2123_vm13, %v2125_v17, %v2121_v2  ;;  %v2195_v52 = vsub.f32 1.0, %v2194_v34  ;;  %v2565_v36 = vor.u32 1.1754944e-38, %v2564_v15 }
 0x259   : > { %v2127_v44 = vmul.f32 %v2126_v12, %v2102_v16  ;;  %v2204_v55 = vand.u32 2147483648, %v7311_v31  ;;  %v2561_v19 = vsel %vm7358_vm14, %v7282_v1, %v2557_v61  ;;  %v2265_v59 = vmul.f32 %v2264_v33, %v7110_v0 }
 0x25a   : > { %v2196_v57 = vmul.f32 %v4691_v62, %v2195_v52  ;;  %vm2199_vm15 = vweird.f32 %v4691_v62  ;;  %v2202_v9 = vand.u32 2147483647, %v7311_v31  ;;  %v2707_v51 = vmul.f32 %v2706_v24, %v8554_v53  ;;  %v7379_v24 = vpop.f32.mrf.mxu0 }
 0x25b   : > { %v7370_v47 = vmul.f32 %v2339_v49, %v7146_v58  ;;  %vm2198_vm0 = vweird.f32 %v7311_v31  ;;  %vm2563_vm1 = vcmp.eq.f32.partialorder %v2562_v41, 8.507059e+37  ;;  %v2266_v16 = vadd.f32 0.014752088, %v2265_v59 }
 0x25c   : > { %v2197_v13 = vadd.f32 %v4691_v62, %v2196_v57  ;;  %v2566_v5 = vsel %vm2563_vm1, %v2565_v36, %v2561_v19  ;;  %v2343_v22 = vmul.f32 3.8918573e-05, %v7146_v58  ;;  %v2708_v1 = vadd.f32 0.112945676, %v2707_v51  ;;  %vm2200_vm2 = vmor %vm2198_vm0, %vm2199_vm15 }
 0x25d   : > { %v4693_v11 = vpop.eup %4692  ;;  %v2493_v28 = vadd.f32 0.00028619796, %v2492_v7  ;;  %v4342_v56 = vclamps-f32 %v2127_v44, 1.0  ;;  %v2205_v38 = vor.u32 1.1754944e-38, %v2204_v55  ;;  %v2267_v15 = vmul.f32 %v2266_v16, %v7110_v0 }
 0x25e   : > { %v2201_v18 = vsel %vm2200_vm2, %v4691_v62, %v2197_v13  ;;  %vm2203_vm3 = vcmp.eq.f32.partialorder %v2202_v9, 8.507059e+37  ;;  %v2634_v49 = vmul.f32 %v4693_v11, %v7350_v39  ;;  %v2344_v54 = vadd.f32 0.001143296, %v2343_v22 }
 0x25f   : > { %v2206_v31 = vsel %vm2203_vm3, %v2205_v38, %v2201_v18  ;;  %v2567_v61 = vmul.f32 %v2566_v5, %v7304_v37  ;;  %v2268_v17 = vadd.f32 0.112945676, %v2267_v15  ;;  %v2709_v34 = vmul.f32 %v2708_v1, %v8554_v53 }
 0x260   : > { %v2207_v33 = vmul.f32 %v2206_v31, %v7329_v63  ;;  %v2635_v2 = vsub.f32 1.0, %v2634_v49  ;;  %v2642_v41 = vand.u32 2147483647, %v7350_v39  ;;  %v2345_v7 = vmul.f32 %v2344_v54, %v7146_v58  ;;  %v8563_v31 = vld [vmem:[#allocation44_spill] sm:$0xff] }
 0x261   : > { %v2791_v62 = vadd.f32 1.0, %v4342_v56  ;;  %v2644_v12 = vand.u32 2147483648, %v7350_v39  ;;  %v2269_v52 = vmul.f32 %v2268_v17, %v7110_v0  ;;  %v2710_v26 = vadd.f32 0.4994258, %v2709_v34  ;;  %v7409_v34 = vpop.f32.mrf.mxu2 }
 0x262   : > { %v4344_v36 = vclamps-f32 %v2207_v33, 1.0  ;;  %v2636_v37 = vmul.f32 %v4693_v11, %v2635_v2  ;;  %vm2639_vm4 = vweird.f32 %v4693_v11  ;;  %v2346_v44 = vadd.f32 0.014752088, %v2345_v7 }
 0x263   : > { %v7386_v55 = vmul.f32 0.70710677, %v7085_v30  ;;  %v4353_v63 = vclamps-f32 %v2567_v61, 1.0  ;;  %v2270_v19 = vadd.f32 0.4994258, %v2269_v52  ;;  %v2711_v59 = vmul.f32 %v2710_v26, %v8554_v53  ;;  %v8564_v61 = vld [vmem:[#allocation10_spill] sm:$0xff] }
 0x264   : > { %v2793_v57 = vadd.f32 1.0, %v4344_v36  ;;  %v2637_v9 = vadd.f32 %v4693_v11, %v2636_v37  ;;  %vm2638_vm5 = vweird.f32 %v7350_v39  ;;  %v2347_v51 = vmul.f32 %v2346_v44, %v7146_v58  ;;  %v8565_v36 = vld [vmem:[#allocation24_spill] sm:$0xff] }
 0x265   : > { %vm2640_vm6 = vmor %vm2638_vm5, %vm2639_vm4  ;;  %vm2643_vm7 = vcmp.eq.f32.partialorder %v2642_v41, 8.507059e+37  ;;  %v2645_v16 = vor.u32 1.1754944e-38, %v2644_v12  ;;  %v2271_v13 = vmul.f32 %v2270_v19, %v7110_v0  ;;  %v7392_v5 = vadd.f32 1.0, %v2711_v59 }
 0x266   : > { %v2829_v22 = vmul.f32 %v2791_v62, %v7320_v3  ;;  %v2831_v1 = vmul.f32 %v2793_v57, %v7326_v23  ;;  %v2641_v56 = vsel %vm2640_vm6, %v4693_v11, %v2637_v9  ;;  %v2348_v38 = vadd.f32 0.112945676, %v2347_v51  ;;  %v8566_v51 = vld [vmem:[#allocation33_spill] sm:$0xff] }
 0x267   : > { %v2415_v53 = vadd.f32 0.0036580483, %v7336_v20  ;;  %v2646_v15 = vsel %vm2643_vm7, %v2645_v16, %v2641_v56  ;;  %v7397_v18 = vadd.f32 1.0, %v2271_v13  ;;  %4694 = vrcp.f32 %v7392_v5 }
 0x268   : > { %v2494_v39 = vmul.f32 %v2493_v28, %v7338_v32  ;;  %v2857_v49 = vpack.c.bf16 %v2831_v1, %v2829_v22  ;;  %v2647_v0 = vmul.f32 %v2646_v15, %v7308_v50  ;;  %v2349_v54 = vmul.f32 %v2348_v38, %v7146_v58  ;;  %v7411_v50 = vpop.f32.mrf.mxu0 }
 0x269   : > { %v1206_v3 = vmul.f32 0.5, %v8563_v31  ;;  %v1208_v23 = vmul.f32 0.5, %v8564_v61  ;;  %v2570_v11 = vmul.f32 %v7386_v55, %v7386_v55  ;;  %4696 = vrcp.f32 %v7397_v18 }
 0x26a   : > { %v2701_v20 = vadd.f32 1.1283791, %v7317_v6  ;;  %3155 = vmatmul.bf16.gmra.mxu1 %v2857_v49  ;;  %3271 = vmatmul.bf16.gmra.mxu3 %v2857_v49  ;;  %v4355_v17 = vclamps-f32 %v2647_v0, 1.0  ;;  %v2802_v28 = vadd.f32 1.0, %v4353_v63  ;;  %v2350_v33 = vadd.f32 0.4994258, %v2349_v54 }
 0x26b   : > { %v2261_v2 = vadd.f32 1.1283791, %v7332_v42  ;;  %v2341_v41 = vadd.f32 1.1283791, %v7370_v47  ;;  %v2423_v7 = vmul.f32 3.8918573e-05, %v7275_v25  ;;  %v2416_v62 = vmul.f32 %v2415_v53, %v7275_v25 }
 0x26c   : > { %v2495_v12 = vadd.f32 0.0036580483, %v2494_v39  ;;  %v2804_v52 = vadd.f32 1.0, %v4355_v17  ;;  %v2351_v6 = vmul.f32 %v2350_v33, %v7146_v58  ;;  %v7419_v37 = vmul.f32 0.5, %v8565_v36 }
 0x26d   : > { %v4695_v26 = vpop.eup %4694  ;;  %v7421_v44 = vmin.f32 %v2570_v11, 16.0  ;;  %v7424_v63 = vmul.f32 0.70710677, %v7194_v4  ;;  %v2424_v42 = vadd.f32 0.001143296, %v2423_v7  ;;  %v2840_v19 = vmul.f32 %v2802_v28, %v1206_v3  ;;  %v7446_v28 = vpop.f32.mrf.mxu2 }
 0x26e   : > { %v2842_v47 = vmul.f32 %v2804_v52, %v1208_v23  ;;  %v7426_v59 = vadd.f32 1.0, %v2351_v6  ;;  %v2714_v57 = vmul.f32 %v4695_v26, %v7392_v5  ;;  %v2702_v16 = vmul.f32 %v2701_v20, %v8566_v51 }
 0x26f   : > { %v4697_v9 = vpop.eup %4696  ;;  %v2262_v58 = vmul.f32 %v2261_v2, %v7028_v14  ;;  %v7432_v13 = vmul.f32 %v2341_v41, %v7119_v10  ;;  %v2425_v22 = vmul.f32 %v2424_v42, %v7275_v25  ;;  %v2417_v1 = vadd.f32 0.05243302, %v2416_v62 }
 0x270   : > { %v2862_v56 = vpack.c.bf16 %v2842_v47, %v2840_v19  ;;  %v2274_v38 = vmul.f32 %v4697_v9, %v7397_v18  ;;  %4698 = vrcp.f32 %v7426_v59  ;;  %v2496_v53 = vmul.f32 %v2495_v12, %v7338_v32  ;;  %v7448_v33 = vpop.f32.mrf.mxu0 }
 0x271   : > { %v2572_v15 = vmul.f32 2.1237322e-06, %v7421_v44  ;;  %v2650_v39 = vmul.f32 %v7424_v63, %v7424_v63  ;;  %v2715_v49 = vsub.f32 1.0, %v2714_v57  ;;  %v2722_v10 = vand.u32 2147483647, %v7392_v5 }
 0x272   : > { %3112 = vmatmul.bf16.gmra.mxu0 %v2862_v56  ;;  %3228 = vmatmul.bf16.gmra.mxu2 %v2862_v56  ;;  %v2275_v14 = vsub.f32 1.0, %v2274_v38  ;;  %v2724_v0 = vand.u32 2147483648, %v7392_v5  ;;  %v2426_v54 = vadd.f32 0.014752088, %v2425_v22  ;;  %v2284_v3 = vand.u32 2147483648, %v7397_v18 }
 0x273   : > { %v2716_v23 = vmul.f32 %v4695_v26, %v2715_v49  ;;  %vm2719_vm8 = vweird.f32 %v4695_v26  ;;  %v2503_v11 = vmul.f32 3.8918573e-05, %v7338_v32  ;;  %vm2279_vm9 = vweird.f32 %v4697_v9 }
 0x274   : > { %v2276_v20 = vmul.f32 %v4697_v9, %v2275_v14  ;;  %v2282_v17 = vand.u32 2147483647, %v7397_v18  ;;  %v2427_v2 = vmul.f32 %v2426_v54, %v7275_v25  ;;  %vm2278_vm10 = vweird.f32 %v7397_v18 }
 0x275   : > { %v2717_v41 = vadd.f32 %v4695_v26, %v2716_v23  ;;  %vm2718_vm11 = vweird.f32 %v7392_v5  ;;  %v2504_v7 = vadd.f32 0.001143296, %v2503_v11  ;;  %vm2723_vm13 = vcmp.eq.f32.partialorder %v2722_v10, 8.507059e+37  ;;  %vm2280_vm14 = vmor %vm2278_vm10, %vm2279_vm9 }
 0x276   : > { %v4699_v62 = vpop.eup %4698  ;;  %v2277_v12 = vadd.f32 %v4697_v9, %v2276_v20  ;;  %vm2720_vm12 = vmor %vm2718_vm11, %vm2719_vm8  ;;  %v2725_v52 = vor.u32 1.1754944e-38, %v2724_v0  ;;  %v2428_v6 = vadd.f32 0.112945676, %v2427_v2  ;;  %v2285_v42 = vor.u32 1.1754944e-38, %v2284_v3 }
 0x277   : > { %v2354_v19 = vmul.f32 %v4699_v62, %v7426_v59  ;;  %v2721_v47 = vsel %vm2720_vm12, %v4695_v26, %v2717_v41  ;;  %v2505_v57 = vmul.f32 %v2504_v7, %v7338_v32  ;;  %vm2283_vm15 = vcmp.eq.f32.partialorder %v2282_v17, 8.507059e+37 }
 0x278   : > { %v2281_v51 = vsel %vm2280_vm14, %v4697_v9, %v2277_v12  ;;  %v2726_v18 = vsel %vm2723_vm13, %v2725_v52, %v2721_v47  ;;  %v2429_v5 = vmul.f32 %v2428_v6, %v7275_v25  ;;  %vm2359_vm0 = vweird.f32 %v4699_v62  ;;  %v7466_v12 = vpop.f32.mrf.mxu2  ;;  %v7468_v52 = vpop.f32.mrf.mxu0 }
 0x279   : > { %v2286_v22 = vsel %vm2283_vm15, %v2285_v42, %v2281_v51  ;;  %v2355_v56 = vsub.f32 1.0, %v2354_v19  ;;  %v2727_v38 = vmul.f32 %v2726_v18, %v2702_v16  ;;  %v2506_v49 = vadd.f32 0.014752088, %v2505_v57 }
 0x27a   : > { %v2362_v14 = vand.u32 2147483647, %v7426_v59  ;;  %v2364_v10 = vand.u32 2147483648, %v7426_v59  ;;  %v2430_v0 = vadd.f32 0.4994258, %v2429_v5  ;;  %v2287_v54 = vmul.f32 %v2286_v22, %v2262_v58 }
 0x27b   : > { %v2356_v3 = vmul.f32 %v4699_v62, %v2355_v56  ;;  %v4357_v26 = vclamps-f32 %v2727_v38, 1.0  ;;  %v2507_v23 = vmul.f32 %v2506_v49, %v7338_v32  ;;  %v2418_v9 = vmul.f32 %v2417_v1, %v7275_v25 }
 0x27c   : > { %v2573_v11 = vadd.f32 0.00028619796, %v2572_v15  ;;  %v7461_v20 = vmin.f32 %v2650_v39, 16.0  ;;  %v2431_v17 = vmul.f32 %v2430_v0, %v7275_v25  ;;  %vm2358_vm1 = vweird.f32 %v7426_v59 }
 0x27d   : > { %v2357_v16 = vadd.f32 %v4699_v62, %v2356_v3  ;;  %v2806_v2 = vadd.f32 1.0, %v4357_v26  ;;  %v2508_v41 = vadd.f32 0.112945676, %v2507_v23  ;;  %v2497_v7 = vadd.f32 0.05243302, %v2496_v53  ;;  %vm2360_vm2 = vmor %vm2358_vm1, %vm2359_vm0 }
 0x27e   : > { %vm2363_vm3 = vcmp.eq.f32.partialorder %v2362_v14, 8.507059e+37  ;;  %v2365_v58 = vor.u32 1.1754944e-38, %v2364_v10  ;;  %v7470_v1 = vadd.f32 1.0, %v2431_v17  ;;  %v4346_v15 = vclamps-f32 %v2287_v54, 1.0 }
 0x27f   : > { %v2361_v39 = vsel %vm2360_vm2, %v4699_v62, %v2357_v16  ;;  %v2844_v6 = vmul.f32 %v2806_v2, %v7419_v37  ;;  %v2509_v42 = vmul.f32 %v2508_v41, %v7338_v32  ;;  %v2574_v59 = vmul.f32 %v2573_v11, %v7421_v44 }
 0x280   : > { %v2652_v53 = vmul.f32 2.1237322e-06, %v7461_v20  ;;  %v2366_v19 = vsel %vm2363_vm3, %v2365_v58, %v2361_v39  ;;  %4700 = vrcp.f32 %v7470_v1  ;;  %v2419_v51 = vadd.f32 0.18741608, %v2418_v9  ;;  %v7495_v58 = vpop.f32.mrf.mxu0 }
 0x281   : > { %v2367_v47 = vmul.f32 %v2366_v19, %v7432_v13  ;;  %v2864_v57 = vpack.c.bf16 %v2844_v6, %v2844_v6  ;;  %v2498_v18 = vmul.f32 %v2497_v7, %v7338_v32  ;;  %v2510_v5 = vadd.f32 0.4994258, %v2509_v42  ;;  %v7493_v7 = vpop.f32.mrf.mxu2 }
 0x282   : > { %v2795_v62 = vadd.f32 1.0, %v4346_v15  ;;  %v2583_v37 = vmul.f32 3.8918573e-05, %v7421_v44  ;;  %v1199_v56 = vmul.f32 0.5, %v6805_v46  ;;  %v2575_v38 = vadd.f32 0.0036580483, %v2574_v59 }
 0x283   : > { %v4348_v22 = vclamps-f32 %v2367_v47, 1.0  ;;  %3117 = vmatmul.bf16.gmra.mxu0 %v2864_v57  ;;  %3233 = vmatmul.bf16.gmra.mxu2 %v2864_v57  ;;  %v2653_v49 = vadd.f32 0.00028619796, %v2652_v53  ;;  %v2511_v14 = vmul.f32 %v2510_v5, %v7338_v32  ;;  %v1201_v10 = vmul.f32 0.5, %v7059_v21 }
 0x284   : > { %v7484_v13 = vmul.f32 0.70710677, %v7235_v8  ;;  %v2584_v54 = vadd.f32 0.001143296, %v2583_v37  ;;  %v2420_v26 = vmul.f32 %v2419_v51, %v7275_v25  ;;  %v2499_v23 = vadd.f32 0.18741608, %v2498_v18 }
 0x285   : > { %v2797_v0 = vadd.f32 1.0, %v4348_v22  ;;  %v7487_v9 = vadd.f32 1.0, %v2511_v14  ;;  %v2833_v11 = vmul.f32 %v2795_v62, %v1199_v56  ;;  %v2576_v2 = vmul.f32 %v2575_v38, %v7421_v44 }
 0x286   : > { %v4701_v3 = vpop.eup %4700  ;;  %v2654_v41 = vmul.f32 %v2653_v49, %v7461_v20  ;;  %v2730_v25 = vmul.f32 %v7484_v13, %v7484_v13  ;;  %v2585_v6 = vmul.f32 %v2584_v54, %v7421_v44  ;;  %v2421_v42 = vadd.f32 1.1283791, %v2420_v26 }
 0x287   : > { %v2835_v17 = vmul.f32 %v2797_v0, %v1201_v10  ;;  %v2434_v16 = vmul.f32 %v4701_v3, %v7470_v1  ;;  %4702 = vrcp.f32 %v7487_v9  ;;  %v2500_v59 = vmul.f32 %v2499_v23, %v7338_v32 }
 0x288   : > { %v2444_v53 = vand.u32 2147483648, %v7470_v1  ;;  %vm2439_vm4 = vweird.f32 %v4701_v3  ;;  %v2442_v47 = vand.u32 2147483647, %v7470_v1  ;;  %v2586_v57 = vadd.f32 0.014752088, %v2585_v6 }
 0x289   : > { %v2859_v15 = vpack.c.bf16 %v2835_v17, %v2833_v11  ;;  %v2435_v39 = vsub.f32 1.0, %v2434_v16  ;;  %v2577_v51 = vadd.f32 0.05243302, %v2576_v2  ;;  %v2655_v18 = vadd.f32 0.0036580483, %v2654_v41  ;;  %v3131_v2 = vpop.f32.mrf.mxu1  ;;  %v7524_v6 = vpop.f32.mrf.mxu2 }
 0x28a   : > { %v2663_v5 = vmul.f32 3.8918573e-05, %v7461_v20  ;;  %v7504_v22 = vmin.f32 %v2730_v25, 16.0  ;;  %vm2438_vm5 = vweird.f32 %v7470_v1  ;;  %v2587_v32 = vmul.f32 %v2586_v57, %v7421_v44  ;;  %v7514_v1 = vld [vmem:[%s8306_s3] sm:$0xff] }
 0x28b   : > { %3160 = vmatmul.bf16.gmra.mxu1 %v2859_v15  ;;  %3276 = vmatmul.bf16.gmra.mxu3 %v2859_v15  ;;  %v2436_v19 = vmul.f32 %v4701_v3, %v2435_v39  ;;  %v2422_v56 = vmul.f32 %v2421_v42, %v7217_v40  ;;  %v2501_v38 = vadd.f32 1.1283791, %v2500_v59  ;;  %vm2440_vm6 = vmor %vm2438_vm5, %vm2439_vm4  ;;  %v2445_v49 = vor.u32 1.1754944e-38, %v2444_v53  ;;  %v7526_v42 = vpop.f32.mrf.mxu0 }
 0x28c   : > { %v2664_v14 = vadd.f32 0.001143296, %v2663_v5  ;;  %vm2443_vm7 = vcmp.eq.f32.partialorder %v2442_v47, 8.507059e+37  ;;  %v2588_v54 = vadd.f32 0.112945676, %v2587_v32  ;;  %v2656_v26 = vmul.f32 %v2655_v18, %v7461_v20 }
 0x28d   : > { %v2437_v62 = vadd.f32 %v4701_v3, %v2436_v19  ;;  %v4703_v37 = vpop.eup %4702  ;;  %v2898_v23 = vperm.slane %v7514_v1, 1  ;;  %v2578_v17 = vmul.f32 %v2577_v51, %v7421_v44  ;;  %v2899_v25 = vperm.slane %v7514_v1, 5 }
 0x28e   : > { %v2514_v0 = vmul.f32 %v4703_v37, %v7487_v9  ;;  %v2665_v40 = vmul.f32 %v2664_v14, %v7461_v20  ;;  %v2589_v41 = vmul.f32 %v2588_v54, %v7421_v44  ;;  %v2522_v15 = vand.u32 2147483647, %v7487_v9 }
 0x28f   : > { %v2441_v10 = vsel %vm2440_vm6, %v4701_v3, %v2437_v62  ;;  %v2732_v3 = vmul.f32 2.1237322e-06, %v7504_v22  ;;  %v2524_v39 = vand.u32 2147483648, %v7487_v9  ;;  %vm2519_vm8 = vweird.f32 %v4703_v37 }
 0x290   : > { %v2446_v11 = vsel %vm2443_vm7, %v2445_v49, %v2441_v10  ;;  %v2515_v16 = vsub.f32 1.0, %v2514_v0  ;;  %v2666_v59 = vadd.f32 0.014752088, %v2665_v40  ;;  %v2590_v47 = vadd.f32 0.4994258, %v2589_v41 }
 0x291   : > { %v2447_v53 = vmul.f32 %v2446_v11, %v2422_v56  ;;  %v2502_v57 = vmul.f32 %v2501_v38, %v7296_v27  ;;  %v2657_v51 = vadd.f32 0.05243302, %v2656_v26  ;;  %v7529_v18 = vperm.slane %v2898_v23, 1 }
 0x292   : > { %v2516_v19 = vmul.f32 %v4703_v37, %v2515_v16  ;;  %v2667_v5 = vmul.f32 %v2666_v59, %v7461_v20  ;;  %v2579_v62 = vadd.f32 0.18741608, %v2578_v17  ;;  %vm2518_vm9 = vweird.f32 %v7487_v9 }
 0x293   : > { %v2591_v49 = vmul.f32 %v2590_v47, %v7421_v44  ;;  %v2733_v14 = vadd.f32 0.00028619796, %v2732_v3  ;;  %v7534_v10 = vperm.slane %v2899_v25, 1  ;;  %vm2520_vm10 = vmor %vm2518_vm9, %vm2519_vm8  ;;  %v2525_v56 = vor.u32 1.1754944e-38, %v2524_v39  ;;  %v3133_v39 = vpop.f32.mrf.mxu1 }
 0x294   : > { %v2517_v32 = vadd.f32 %v4703_v37, %v2516_v19  ;;  %v2668_v0 = vadd.f32 0.112945676, %v2667_v5  ;;  %v4350_v54 = vclamps-f32 %v2447_v53, 1.0  ;;  %vm2523_vm11 = vcmp.eq.f32.partialorder %v2522_v15, 8.507059e+37  ;;  %v3247_v15 = vpop.f32.mrf.mxu3 }
 0x295   : > { %v7536_v27 = vadd.f32 1.0, %v2591_v49  ;;  %v2658_v38 = vmul.f32 %v2657_v51, %v7461_v20  ;;  %v3074_v26 = vadd.f32 %v7379_v24, %v7529_v18  ;;  %v3190_v17 = vadd.f32 %v7409_v34, %v7534_v10  ;;  %v7551_v51 = vpop.f32.mrf.mxu0 }
 0x296   : > { %v2521_v11 = vsel %vm2520_vm10, %v4703_v37, %v2517_v32  ;;  %v2669_v9 = vmul.f32 %v2668_v0, %v7461_v20  ;;  %v2580_v37 = vmul.f32 %v2579_v62, %v7421_v44  ;;  %v2799_v25 = vadd.f32 1.0, %v4350_v54  ;;  %v8567_v62 = vld [vmem:[#allocation9_spill] sm:$0xff] }
 0x297   : > { %v2526_v23 = vsel %vm2523_vm11, %v2525_v56, %v2521_v11  ;;  %4704 = vrcp.f32 %v7536_v27  ;;  %v3132_v3 = vadd.f32 %v3131_v2, %v3074_v26  ;;  %v2743_v59 = vmul.f32 3.8918573e-05, %v7504_v22  ;;  %v8568_v56 = vld [vmem:[#allocation5_spill] sm:$0xff] }
 0x298   : > { %v2527_v40 = vmul.f32 %v2526_v23, %v2502_v57  ;;  %v2670_v16 = vadd.f32 0.4994258, %v2669_v9  ;;  %v2659_v24 = vadd.f32 0.18741608, %v2658_v38  ;;  %v2734_v53 = vmul.f32 %v2733_v14, %v7504_v22  ;;  %v7549_v57 = vpop.f32.mrf.mxu2 }
 0x299   : > { %v3248_v47 = vadd.f32 %v3247_v15, %v3190_v17  ;;  %v1203_v34 = vmul.f32 0.5, %v6931_v43  ;;  %v1205_v44 = vmul.f32 0.5, %v7278_v45  ;;  %v2744_v5 = vadd.f32 0.001143296, %v2743_v59 }
 0x29a   : > { %v4352_v41 = vclamps-f32 %v2527_v40, 1.0  ;;  %v2671_v19 = vmul.f32 %v2670_v16, %v7461_v20  ;;  %v7556_v32 = vadd.f32 %v3132_v3, %v8567_v62  ;;  %v2581_v54 = vadd.f32 1.1283791, %v2580_v37 }
 0x29b   : > { %v7561_v14 = vadd.f32 %v3248_v47, %v8568_v56  ;;  %v2837_v11 = vmul.f32 %v2799_v25, %v1203_v34  ;;  %v2745_v26 = vmul.f32 %v2744_v5, %v7504_v22  ;;  %v2660_v23 = vmul.f32 %v2659_v24, %v7461_v20 }
 0x29c   : > { %v2801_v2 = vadd.f32 1.0, %v4352_v41  ;;  %v7558_v49 = vadd.f32 1.0, %v2671_v19  ;;  %v2735_v9 = vadd.f32 0.0036580483, %v2734_v53  ;;  %v3076_v17 = vadd.f32 %v7411_v50, %v7529_v18  ;;  %v3136_v53 = vpop.f32.mrf.mxu1 }
 0x29d   : > { %v4705_v0 = vpop.eup %4704  ;;  %v3192_v3 = vadd.f32 %v7446_v28, %v7534_v10  ;;  %v3334_v37 = vadd.f32 %v7561_v14, %v7556_v32  ;;  %v3417_v25 = vmul.f32 %v7556_v32, %v7556_v32  ;;  %v3418_v20 = vmul.f32 %v7561_v14, %v7561_v14  ;;  %v3249_v28 = vpop.f32.mrf.mxu3 }
 0x29e   : > { %v2839_v38 = vmul.f32 %v2801_v2, %v1205_v44  ;;  %v2594_v40 = vmul.f32 %v4705_v0, %v7536_v27  ;;  %4706 = vrcp.f32 %v7558_v49  ;;  %v2746_v15 = vadd.f32 0.014752088, %v2745_v26  ;;  %v7581_v2 = vpop.f32.mrf.mxu0 }
 0x29f   : > { %v2602_v59 = vand.u32 2147483647, %v7536_v27  ;;  %v2604_v50 = vand.u32 2147483648, %v7536_v27  ;;  %v3134_v24 = vadd.f32 %v3133_v39, %v3076_v17  ;;  %vm2599_vm12 = vweird.f32 %v4705_v0  ;;  %3335 = vadd.xlane.f32.xlu0 %v3334_v37 }
 0x2a0   : > { %v2861_v16 = vpack.c.bf16 %v2839_v38, %v2837_v11  ;;  %v2595_v41 = vsub.f32 1.0, %v2594_v40  ;;  %v3250_v47 = vadd.f32 %v3249_v28, %v3192_v3  ;;  %v3455_v34 = vadd.f32 %v3418_v20, %v3417_v25  ;;  %v7579_v44 = vpop.f32.mrf.mxu2 }
 0x2a1   : > { %v2736_v5 = vmul.f32 %v2735_v9, %v7504_v22  ;;  %v2747_v62 = vmul.f32 %v2746_v15, %v7504_v22  ;;  %v2582_v11 = vmul.f32 %v2581_v54, %v7386_v55  ;;  %v2661_v38 = vadd.f32 1.1283791, %v2660_v23  ;;  %v8570_v55 = vld [vmem:[#allocation8_spill] sm:$0xff] }
 0x2a2   : > { %3165 = vmatmul.bf16.gmra.mxu1 %v2861_v16  ;;  %3281 = vmatmul.bf16.gmra.mxu3 %v2861_v16  ;;  %v2596_v19 = vmul.f32 %v4705_v0, %v2595_v41  ;;  %vm2598_vm13 = vweird.f32 %v7536_v27  ;;  %v3079_v26 = vadd.f32 %v7448_v33, %v7529_v18  ;;  %v2605_v40 = vor.u32 1.1754944e-38, %v2604_v50  ;;  %v8569_v16 = vld [vmem:[#allocation14_spill] sm:$0xff] }
 0x2a3   : > { %3456 = vadd.xlane.f32.xlu1 %v3455_v34  ;;  %vm2600_vm14 = vmor %vm2598_vm13, %vm2599_vm12  ;;  %v2748_v3 = vadd.f32 0.112945676, %v2747_v62  ;;  %vm2603_vm15 = vcmp.eq.f32.partialorder %v2602_v59, 8.507059e+37  ;;  %v7592_v37 = vadd.f32 %v3134_v24, %v8569_v16  ;;  %v7595_v54 = vadd.f32 %v3250_v47, %v8570_v55 }
 0x2a4   : > { %v4707_v56 = vpop.eup %4706  ;;  %v2597_v39 = vadd.f32 %v4705_v0, %v2596_v19  ;;  %v2737_v23 = vadd.f32 0.05243302, %v2736_v5  ;;  %v3195_v33 = vadd.f32 %v7466_v12, %v7534_v10  ;;  %v2682_v20 = vand.u32 2147483647, %v7558_v49  ;;  %v3138_v5 = vpop.f32.mrf.mxu1 }
 0x2a5   : > { %v2674_v17 = vmul.f32 %v4707_v56, %v7558_v49  ;;  %v2749_v25 = vmul.f32 %v2748_v3, %v7504_v22  ;;  %v2684_v15 = vand.u32 2147483648, %v7558_v49  ;;  %vm2679_vm0 = vweird.f32 %v4707_v56  ;;  %v3252_v47 = vpop.f32.mrf.mxu3 }
 0x2a6   : > { %v2601_v9 = vsel %vm2600_vm14, %v4705_v0, %v2597_v39  ;;  %v3137_v0 = vadd.f32 %v3136_v53, %v3079_v26  ;;  %v2662_v28 = vmul.f32 %v2661_v38, %v7424_v63  ;;  %v3337_v19 = vadd.f32 %v7595_v54, %v7592_v37  ;;  %v7613_v63 = vpop.f32.mrf.mxu0  ;;  %v8571_v26 = vld [vmem:[#allocation15_spill] sm:$0xff] }
 0x2a7   : > { %v2606_v27 = vsel %vm2603_vm15, %v2605_v40, %v2601_v9  ;;  %v2675_v41 = vsub.f32 1.0, %v2674_v17  ;;  %v2750_v24 = vadd.f32 0.4994258, %v2749_v25  ;;  %v3419_v34 = vmul.f32 %v7592_v37, %v7592_v37 }
 0x2a8   : > { %v2607_v59 = vmul.f32 %v2606_v27, %v2582_v11  ;;  %v3420_v12 = vmul.f32 %v7595_v54, %v7595_v54  ;;  %vm2678_vm1 = vweird.f32 %v7558_v49  ;;  %v3253_v11 = vadd.f32 %v3252_v47, %v3195_v33  ;;  %v7611_v39 = vpop.f32.mrf.mxu2  ;;  %3338 = vadd.xlane.f32.xlu0 %v3337_v19  ;;  %v8572_v49 = vld [vmem:[#allocation51_spill] sm:$0xff] }
 0x2a9   : > { %v2676_v50 = vmul.f32 %v4707_v56, %v2675_v41  ;;  %v2751_v53 = vmul.f32 %v2750_v24, %v7504_v22  ;;  %vm2680_vm2 = vmor %vm2678_vm1, %vm2679_vm0  ;;  %vm2683_vm3 = vcmp.eq.f32.partialorder %v2682_v20, 8.507059e+37  ;;  %v2685_v38 = vor.u32 1.1754944e-38, %v2684_v15 }
 0x2aa   : > { %v7616_v40 = vadd.f32 %v3137_v0, %v8571_v26  ;;  %v3458_v17 = vadd.f32 %v3420_v12, %v3419_v34  ;;  %v4354_v3 = vclamps-f32 %v2607_v59, 1.0  ;;  %v7621_v55 = vadd.f32 %v3253_v11, %v8572_v49 }
 0x2ab   : > { %v2677_v62 = vadd.f32 %v4707_v56, %v2676_v50  ;;  %v7618_v16 = vadd.f32 1.0, %v2751_v53  ;;  %v2738_v27 = vmul.f32 %v2737_v23, %v7504_v22  ;;  %v3081_v25 = vadd.f32 %v7468_v52, %v7529_v18 }
 0x2ac   : > { %3459 = vadd.xlane.f32.xlu2 %v3458_v17  ;;  %v3340_v20 = vadd.f32 %v7621_v55, %v7616_v40  ;;  %v3422_v15 = vmul.f32 %v7621_v55, %v7621_v55  ;;  %v3197_v23 = vadd.f32 %v7493_v7, %v7534_v10  ;;  %v2803_v59 = vadd.f32 1.0, %v4354_v3  ;;  %v3141_v19 = vpop.f32.mrf.mxu1  ;;  %v8574_v3 = vld [vmem:[#allocation52_spill] sm:$0xff] }
 0x2ad   : > { %v2681_v9 = vsel %vm2680_vm2, %v4707_v56, %v2677_v62  ;;  %4708 = vrcp.f32 %v7618_v16  ;;  %v3421_v56 = vmul.f32 %v7616_v40, %v7616_v40  ;;  %v3139_v50 = vadd.f32 %v3138_v5, %v3081_v25  ;;  %v3254_v52 = vpop.f32.mrf.mxu3  ;;  %v8573_v5 = vld [vmem:[#allocation16_spill] sm:$0xff] }
 0x2ae   : > { %v2686_v41 = vsel %vm2683_vm3, %v2685_v38, %v2681_v9  ;;  %v2739_v24 = vadd.f32 0.18741608, %v2738_v27  ;;  %3341 = vadd.xlane.f32.xlu1 %v3340_v20  ;;  %v1207_v47 = vmul.f32 0.5, %v7085_v30  ;;  %v1209_v34 = vmul.f32 0.5, %v7194_v4  ;;  %v7639_v11 = vpop.f32.mrf.mxu0 }
 0x2af   : > { %v2687_v33 = vmul.f32 %v2686_v41, %v2662_v28  ;;  %v3461_v28 = vadd.f32 %v3422_v15, %v3421_v56  ;;  %v3255_v62 = vadd.f32 %v3254_v52, %v3197_v23  ;;  %v7642_v17 = vadd.f32 %v3139_v50, %v8573_v5 }
 0x2b0   : > { %v7637_v53 = vpop.f32.mrf.mxu2  ;;  %v2841_v38 = vmul.f32 %v2803_v59, %v1207_v47  ;;  %v2740_v49 = vmul.f32 %v2739_v24, %v7504_v22  ;;  %v3084_v41 = vadd.f32 %v7495_v58, %v7529_v18  ;;  %v3200_v56 = vadd.f32 %v7524_v6, %v7534_v10 }
 0x2b1   : > { %v4356_v0 = vclamps-f32 %v2687_v33, 1.0  ;;  %3462 = vadd.xlane.f32.xlu0 %v3461_v28  ;;  %v7645_v9 = vadd.f32 %v3255_v62, %v8574_v3  ;;  %v2764_v15 = vand.u32 2147483648, %v7618_v16  ;;  %v2762_v59 = vand.u32 2147483647, %v7618_v16 }
 0x2b2   : > { %v3142_v23 = vadd.f32 %v3141_v19, %v3084_v41  ;;  %vm2758_vm5 = vweird.f32 %v7618_v16  ;;  %v3086_v19 = vadd.f32 %v7526_v42, %v7529_v18 }
 0x2b3   : > { %v2805_v12 = vadd.f32 1.0, %v4356_v0  ;;  %v4709_v7 = vpop.eup %4708  ;;  %v3343_v33 = vadd.f32 %v7645_v9, %v7642_v17  ;;  %v2741_v0 = vadd.f32 1.1283791, %v2740_v49  ;;  %v3424_v6 = vmul.f32 %v7645_v9, %v7645_v9 }
 0x2b4   : > { %v2754_v27 = vmul.f32 %v4709_v7, %v7618_v16  ;;  %vm2759_vm4 = vweird.f32 %v4709_v7  ;;  %v3143_v50 = vpop.f32.mrf.mxu1  ;;  %vm2763_vm7 = vcmp.eq.f32.partialorder %v2762_v59, 8.507059e+37  ;;  %v3423_v16 = vmul.f32 %v7642_v17, %v7642_v17 }
 0x2b5   : > { %v2843_v26 = vmul.f32 %v2805_v12, %v1209_v34  ;;  %v3257_v58 = vpop.f32.mrf.mxu3  ;;  %vm2760_vm6 = vmor %vm2758_vm5, %vm2759_vm4  ;;  %v2765_v34 = vor.u32 1.1754944e-38, %v2764_v15  ;;  %v8575_v12 = vld [vmem:[#allocation17_spill] sm:$0xff]  ;;  %v2742_v5 = vmul.f32 %v2741_v0, %v7484_v13 }
 0x2b6   : > { %v2755_v20 = vsub.f32 1.0, %v2754_v27  ;;  %3344 = vadd.xlane.f32.xlu1 %v3343_v33  ;;  %v3258_v24 = vadd.f32 %v3257_v58, %v3200_v56  ;;  %v7659_v28 = vpop.f32.mrf.mxu0  ;;  %v7667_v62 = vadd.f32 %v3142_v23, %v8575_v12  ;;  %v3144_v27 = vadd.f32 %v3143_v50, %v3086_v19 }
 0x2b7   : > { %v2863_v25 = vpack.c.bf16 %v2843_v26, %v2841_v38  ;;  %v8576_v38 = vld [vmem:[#allocation53_spill] sm:$0xff]  ;;  %v3202_v33 = vadd.f32 %v7549_v57, %v7534_v10  ;;  %v1211_v58 = vmul.f32 0.5, %v7235_v8  ;;  %v3089_v57 = vadd.f32 %v7551_v51, %v7529_v18 }
 0x2b8   : > { %v2756_v22 = vmul.f32 %v4709_v7, %v2755_v20  ;;  %v7657_v52 = vpop.f32.mrf.mxu2  ;;  %v7670_v26 = vadd.f32 %v3258_v24, %v8576_v38  ;;  %v8578_v24 = vld [vmem:[#allocation54_spill] sm:$0xff] }
 0x2b9   : > { %3170 = vmatmul.bf16.gmra.mxu1 %v2863_v25  ;;  %3286 = vmatmul.bf16.gmra.mxu3 %v2863_v25  ;;  %v3464_v25 = vadd.f32 %v3424_v6, %v3423_v16  ;;  %v3425_v6 = vmul.f32 %v7667_v62, %v7667_v62  ;;  %v3205_v16 = vadd.f32 %v7579_v44, %v7534_v10 }
 0x2ba   : > { %v2757_v47 = vadd.f32 %v4709_v7, %v2756_v22  ;;  %v3346_v42 = vadd.f32 %v7670_v26, %v7667_v62  ;;  %v3426_v59 = vmul.f32 %v7670_v26, %v7670_v26 }
 0x2bc   : > { %v2761_v3 = vsel %vm2760_vm6, %v4709_v7, %v2757_v47  ;;  %3347 = vadd.xlane.f32.xlu2 %v3346_v42  ;;  %v3146_v13 = vpop.f32.mrf.mxu1  ;;  %v8577_v7 = vld [vmem:[#allocation18_spill] sm:$0xff]  ;;  %v3467_v12 = vadd.f32 %v3426_v59, %v3425_v6  ;;  %v8579_v42 = vld [vmem:[#allocation19_spill] sm:$0xff] }
 0x2bd   : > { %v2766_v49 = vsel %vm2763_vm7, %v2765_v34, %v2761_v3  ;;  %v3259_v56 = vpop.f32.mrf.mxu3  ;;  %v7680_v15 = vadd.f32 %v3144_v27, %v8577_v7  ;;  %v3147_v34 = vadd.f32 %v3146_v13, %v3089_v57  ;;  %v8580_v13 = vld [vmem:[#allocation38_spill] sm:$0xff] }
 0x2be   : > { %v2767_v41 = vmul.f32 %v2766_v49, %v2742_v5  ;;  %3465 = vadd.xlane.f32.xlu1 %v3464_v25  ;;  %v3260_v23 = vadd.f32 %v3259_v56, %v3202_v33  ;;  %v7684_v22 = vpop.f32.mrf.mxu0  ;;  %v3091_v56 = vadd.f32 %v7581_v2, %v7529_v18 }
 0x2bf   : > { %v3427_v38 = vmul.f32 %v7680_v15, %v7680_v15 }
 0x2c0   : > { %v4358_v20 = vclamps-f32 %v2767_v41, 1.0  ;;  %v7682_v0 = vpop.f32.mrf.mxu2  ;;  %v7692_v47 = vadd.f32 %v3260_v23, %v8578_v24  ;;  %v7703_v41 = vadd.f32 %v3147_v34, %v8579_v42  ;;  %v3210_v42 = vadd.f32 %v7637_v53, %v7534_v10 }
 0x2c2   : > { %v2807_v50 = vadd.f32 1.0, %v4358_v20  ;;  %v3428_v5 = vmul.f32 %v7692_v47, %v7692_v47  ;;  %v3349_v23 = vadd.f32 %v7692_v47, %v7680_v15  ;;  %v3429_v59 = vmul.f32 %v7703_v41, %v7703_v41 }
 0x2c4   : > { %v2845_v19 = vmul.f32 %v2807_v50, %v1211_v58  ;;  %3468 = vadd.xlane.f32.xlu2 %v3467_v12  ;;  %v3470_v51 = vadd.f32 %v3428_v5, %v3427_v38  ;;  %v3148_v27 = vpop.f32.mrf.mxu1  ;;  %v3207_v50 = vadd.f32 %v7611_v39, %v7534_v10  ;;  %v3094_v39 = vadd.f32 %v7613_v63, %v7529_v18  ;;  %v8583_v63 = vld [vmem:[#allocation22_spill] sm:$0xff] }
 0x2c5   : > { %v3262_v49 = vpop.f32.mrf.mxu3  ;;  %v3149_v7 = vadd.f32 %v3148_v27, %v3091_v56 }
 0x2c6   : > { %v2865_v3 = vpack.c.bf16 %v2845_v19, %v2845_v19  ;;  %v3263_v25 = vadd.f32 %v3262_v49, %v3205_v16  ;;  %3471 = vadd.xlane.f32.xlu0 %v3470_v51  ;;  %v7707_v20 = vpop.f32.mrf.mxu0  ;;  %v8581_v19 = vld [vmem:[#allocation20_spill] sm:$0xff] }
 0x2c7   : > { %v7725_v34 = vadd.f32 %v3149_v7, %v8581_v19  ;;  %v3212_v19 = vadd.f32 %v7657_v52, %v7534_v10  ;;  %v3099_v52 = vadd.f32 %v7659_v28, %v7529_v18  ;;  %v8585_v28 = vld [vmem:[#allocation30_spill] sm:$0xff] }
 0x2c8   : > { %v7705_v33 = vpop.f32.mrf.mxu2  ;;  %v7712_v44 = vadd.f32 %v3263_v25, %v8580_v13 }
 0x2c9   : > { %3175 = vmatmul.bf16.gmra.mxu1 %v2865_v3  ;;  %3291 = vmatmul.bf16.gmra.mxu3 %v2865_v3  ;;  %v8582_v3 = vld [vmem:[#allocation26_spill] sm:$0xff]  ;;  %v3431_v49 = vmul.f32 %v7725_v34, %v7725_v34 }
 0x2ca   : > { %v3430_v58 = vmul.f32 %v7712_v44, %v7712_v44  ;;  %v3352_v2 = vadd.f32 %v7712_v44, %v7703_v41 }
 0x2cc   : > { %3350 = vadd.xlane.f32.xlu2 %v3349_v23  ;;  %v3473_v57 = vadd.f32 %v3430_v58, %v3429_v59  ;;  %v3151_v6 = vpop.f32.mrf.mxu1 }
 0x2cd   : > { %v3264_v24 = vpop.f32.mrf.mxu3  ;;  %v3152_v51 = vadd.f32 %v3151_v6, %v3094_v39 }
 0x2ce   : > { %v3265_v12 = vadd.f32 %v3264_v24, %v3207_v50  ;;  %3474 = vadd.xlane.f32.xlu1 %v3473_v57  ;;  %3353 = vadd.xlane.f32.xlu0 %v3352_v2  ;;  %v7729_v5 = vpop.f32.mrf.mxu0  ;;  %v3096_v57 = vadd.f32 %v7639_v11, %v7529_v18 }
 0x2cf   : > { %v7745_v23 = vadd.f32 %v3152_v51, %v8583_v63  ;;  %v8584_v51 = vld [vmem:[#allocation25_spill] sm:$0xff] }
 0x2d0   : > { %v7727_v38 = vpop.f32.mrf.mxu2  ;;  %v7734_v16 = vadd.f32 %v3265_v12, %v8582_v3 }
 0x2d1   : > { %v3433_v24 = vmul.f32 %v7745_v23, %v7745_v23 }
 0x2d2   : > { %v3432_v27 = vmul.f32 %v7734_v16, %v7734_v16  ;;  %v3355_v56 = vadd.f32 %v7734_v16, %v7725_v34 }
 0x2d4   : > { %v3476_v25 = vadd.f32 %v3432_v27, %v3431_v49  ;;  %v3153_v7 = vpop.f32.mrf.mxu1 }
 0x2d5   : > { %v3267_v13 = vpop.f32.mrf.mxu3  ;;  %v3154_v2 = vadd.f32 %v3153_v7, %v3096_v57  ;;  %v3215_v57 = vadd.f32 %v7682_v0, %v7534_v10 }
 0x2d6   : > { %v3268_v59 = vadd.f32 %v3267_v13, %v3210_v42  ;;  %3477 = vadd.xlane.f32.xlu2 %v3476_v25  ;;  %3356 = vadd.xlane.f32.xlu1 %v3355_v56  ;;  %v7749_v50 = vpop.f32.mrf.mxu0 }
 0x2d7   : > { %v7765_v11 = vadd.f32 %v3154_v2, %v8584_v51 }
 0x2d8   : > { %v7747_v58 = vpop.f32.mrf.mxu2  ;;  %v7754_v53 = vadd.f32 %v3268_v59, %v8545_v60 }
 0x2d9   : > { %v3435_v56 = vmul.f32 %v7765_v11, %v7765_v11 }
 0x2da   : > { %v3434_v6 = vmul.f32 %v7754_v53, %v7754_v53  ;;  %v3358_v12 = vadd.f32 %v7754_v53, %v7745_v23 }
 0x2dc   : > { %v3479_v39 = vadd.f32 %v3434_v6, %v3433_v24 }
 0x2dd   : > { %v3269_v3 = vpop.f32.mrf.mxu3 }
 0x2de   : > { %v3270_v60 = vadd.f32 %v3269_v3, %v3212_v19  ;;  %3359 = vadd.xlane.f32.xlu2 %v3358_v12  ;;  %3480 = vadd.xlane.f32.xlu0 %v3479_v39  ;;  %v7769_v27 = vpop.f32.mrf.mxu0  ;;  %v3101_v39 = vadd.f32 %v7684_v22, %v7529_v18 }
 0x2e0   : > { %v7767_v49 = vpop.f32.mrf.mxu2  ;;  %v7772_v42 = vadd.f32 %v3270_v60, %v6808_v29 }
 0x2e2   : > { %v3436_v13 = vmul.f32 %v7772_v42, %v7772_v42  ;;  %v3361_v59 = vadd.f32 %v7772_v42, %v7765_v11 }
 0x2e4   : > { %v3482_v63 = vadd.f32 %v3436_v13, %v3435_v56 }
 0x2e6   : > { %3483 = vadd.xlane.f32.xlu1 %v3482_v63  ;;  %3362 = vadd.xlane.f32.xlu0 %v3361_v59 }
 0x2e7   : > { %v3156_v25 = vpop.f32.mrf.mxu1 }
 0x2e8   : > { %v3157_v7 = vadd.f32 %v3156_v25, %v3099_v52  ;;  %v7784_v2 = vpop.f32.mrf.mxu2  ;;  %v3217_v52 = vadd.f32 %v7705_v33, %v7534_v10 }
 0x2ea   : > { %v7787_v24 = vadd.f32 %v3157_v7, %v8585_v28 }
 0x2ec   : > { %v3437_v0 = vmul.f32 %v7787_v24, %v7787_v24 }
 0x2ed   : > { %v3272_v29 = vpop.f32.mrf.mxu3 }
 0x2ee   : > { %v3273_v6 = vadd.f32 %v3272_v29, %v3215_v57 }
 0x2ef   : > { %v3158_v19 = vpop.f32.mrf.mxu1  ;;  %v7789_v12 = vpop.f32.mrf.mxu0 }
 0x2f0   : > { %v7794_v3 = vadd.f32 %v3273_v6, %v8560_v35  ;;  %v3159_v51 = vadd.f32 %v3158_v19, %v3101_v39  ;;  %v8586_v35 = vld [vmem:[#allocation32_spill] sm:$0xff] }
 0x2f2   : > { %v3438_v60 = vmul.f32 %v7794_v3, %v7794_v3  ;;  %v3364_v25 = vadd.f32 %v7794_v3, %v7787_v24  ;;  %v7807_v7 = vadd.f32 %v3159_v51, %v8586_v35  ;;  %v8587_v35 = vld [vmem:[#allocation34_spill] sm:$0xff] }
 0x2f4   : > { %v3485_v56 = vadd.f32 %v3438_v60, %v3437_v0  ;;  %3365 = vadd.xlane.f32.xlu1 %v3364_v25  ;;  %v3439_v29 = vmul.f32 %v7807_v7, %v7807_v7  ;;  %v3104_v60 = vadd.f32 %v7707_v20, %v7529_v18 }
 0x2f5   : > { %v3274_v13 = vpop.f32.mrf.mxu3  ;;  %v7804_v22 = vpop.f32.mrf.mxu2 }
 0x2f6   : > { %v3275_v63 = vadd.f32 %v3274_v13, %v3217_v52  ;;  %3486 = vadd.xlane.f32.xlu2 %v3485_v56  ;;  %v3220_v52 = vadd.f32 %v7727_v38, %v7534_v10 }
 0x2f7   : > { %v7809_v59 = vpop.f32.mrf.mxu0 }
 0x2f8   : > { %v7812_v57 = vadd.f32 %v3275_v63, %v6943_v48 }
 0x2fa   : > { %v3440_v33 = vmul.f32 %v7812_v57, %v7812_v57  ;;  %v3367_v28 = vadd.f32 %v7812_v57, %v7807_v7 }
 0x2fc   : > { %v3488_v6 = vadd.f32 %v3440_v33, %v3439_v29 }
 0x2fd   : > { %v7820_v19 = vpop.f32.mrf.mxu2 }
 0x2fe   : > { %3368 = vadd.xlane.f32.xlu2 %v3367_v28  ;;  %3489 = vadd.xlane.f32.xlu0 %v3488_v6  ;;  %v3106_v28 = vadd.f32 %v7729_v5, %v7529_v18  ;;  %v8590_v5 = vld [vmem:[#allocation36_spill] sm:$0xff] }
 0x300   : > { %v7822_v39 = vpop.f32.mrf.mxu0 }
 0x306   : > { %v7824_v51 = vpop.f32.mrf.mxu2 }
 0x308   : > { %v3161_v48 = vpop.f32.mrf.mxu1  ;;  %v3120_v0 = vpop.f32.mrf.mxu0 }
 0x309   : > { %v3162_v25 = vadd.f32 %v3161_v48, %v3104_v60  ;;  %v3222_v60 = vadd.f32 %v7747_v58, %v7534_v10 }
 0x30b   : > { %v7831_v63 = vadd.f32 %v3162_v25, %v8587_v35 }
 0x30d   : > { %8588 = vst [vmem:[#allocation27_spill] sm:$0xff] %v7831_v63  ;;  %v3441_v20 = vmul.f32 %v7831_v63, %v7831_v63 }
 0x30e   : > { %v3277_v56 = vpop.f32.mrf.mxu3  ;;  %v3236_v13 = vpop.f32.mrf.mxu2 }
 0x30f   : > { %v3278_v29 = vadd.f32 %v3277_v56, %v3220_v52 }
 0x310   : > { %v3163_v33 = vpop.f32.mrf.mxu1 }
 0x311   : > { %v7836_v6 = vadd.f32 %v3278_v29, %v6805_v46  ;;  %v3164_v0 = vadd.f32 %v3163_v33, %v3106_v28  ;;  %v4816_v33 = vmov 256.0  }
 0x312   : > { %4710 = vrcp.f32 %v4816_v33 }
 0x313   : > { %8589 = vst [vmem:[#allocation42_spill] sm:$0xff] %v7836_v6  ;;  %v3442_v38 = vmul.f32 %v7836_v6, %v7836_v6  ;;  %v3370_v48 = vadd.f32 %v7836_v6, %v7831_v63  ;;  %v7847_v56 = vadd.f32 %v3164_v0, %v8590_v5  ;;  %v3109_v0 = vadd.f32 %v7749_v50, %v7529_v18  ;;  %v8593_v5 = vld [vmem:[#allocation39_spill] sm:$0xff] }
 0x314   : > { %v3111_v50 = vadd.f32 %v7769_v27, %v7529_v18  ;;  %v3227_v27 = vadd.f32 %v7784_v2, %v7534_v10 }
 0x315   : > { %v3491_v25 = vadd.f32 %v3442_v38, %v3441_v20  ;;  %3371 = vadd.xlane.f32.xlu0 %v3370_v48  ;;  %8591 = vst [vmem:[#allocation45_spill] sm:$0xff] %v7847_v56  ;;  %v3443_v35 = vmul.f32 %v7847_v56, %v7847_v56 }
 0x316   : > { %v3279_v52 = vpop.f32.mrf.mxu3 }
 0x317   : > { %v3280_v46 = vadd.f32 %v3279_v52, %v3222_v60  ;;  %3492 = vadd.xlane.f32.xlu1 %v3491_v25  ;;  %v3336_v60 = vpop.xlane.xlu0 %3335  ;;  %v3225_v25 = vadd.f32 %v7767_v49, %v7534_v10 }
 0x319   : > { %v7850_v13 = vadd.f32 %v3280_v46, %v7059_v21  ;;  %v4711_v21 = vpop.eup %4710 }
 0x31a   : > { %v3392_v48 = vmul.f32 256.0, %v4711_v21  ;;  %vm3396_vm8 = vweird.f32 %v4711_v21 }
 0x31b   : > { %8592 = vst [vmem:[#allocation43_spill] sm:$0xff] %v7850_v13  ;;  %v3444_v29 = vmul.f32 %v7850_v13, %v7850_v13  ;;  %v3373_v28 = vadd.f32 %v7850_v13, %v7847_v56  ;;  %v7933_v56 = vadd.f32 %v7822_v39, %v7529_v18 }
 0x31c   : > { %v3393_v52 = vsub.f32 1.0, %v3392_v48 }
 0x31d   : > { %v3494_v58 = vadd.f32 %v3444_v29, %v3443_v35 }
 0x31e   : > { %v3394_v33 = vmul.f32 %v4711_v21, %v3393_v52 }
 0x31f   : > { %3495 = vadd.xlane.f32.xlu2 %v3494_v58  ;;  %3374 = vadd.xlane.f32.xlu1 %v3373_v28  ;;  %v3166_v20 = vpop.f32.mrf.mxu1 }
 0x320   : > { %v3167_v38 = vadd.f32 %v3166_v20, %v3109_v0  ;;  %v3395_v0 = vadd.f32 %v4711_v21, %v3394_v33  ;;  %v3457_v20 = vpop.xlane.xlu1 %3456 }
 0x322   : > { %v7863_v46 = vadd.f32 %v3167_v38, %v8593_v5  ;;  %v7876_v52 = vsel %vm3396_vm8, %v4711_v21, %v3395_v0  ;;  %v3460_v0 = vpop.xlane.xlu2 %3459 }
 0x323   : > { %v7879_v5 = vmul.f32 %v7876_v52, %v3336_v60 }
 0x324   : > { %8594 = vst [vmem:[#allocation48_spill] sm:$0xff] %v7863_v46  ;;  %v3445_v49 = vmul.f32 %v7863_v46, %v7863_v46 }
 0x325   : > { %v3282_v35 = vpop.f32.mrf.mxu3  ;;  %v3531_v33 = vmul.f32 %v7879_v5, %v7879_v5 }
 0x326   : > { %v3283_v29 = vadd.f32 %v3282_v35, %v3225_v25 }
 0x327   : > { %v3168_v58 = vpop.f32.mrf.mxu1 }
 0x328   : > { %v7868_v28 = vadd.f32 %v3283_v29, %v6931_v43  ;;  %v3169_v48 = vadd.f32 %v3168_v58, %v3111_v50  ;;  %v3512_v43 = vmul.f32 %v3457_v20, %v7876_v52  ;;  %v3339_v58 = vpop.xlane.xlu0 %3338  ;;  %v8596_v50 = vld [vmem:[#allocation41_spill] sm:$0xff] }
 0x329   : > { %v7890_v60 = vmul.f32 %v7876_v52, %v3339_v58 }
 0x32a   : > { %8595 = vst [vmem:[#allocation50_spill] sm:$0xff] %v7868_v28  ;;  %v3376_v38 = vadd.f32 %v7868_v28, %v7863_v46  ;;  %v3446_v25 = vmul.f32 %v7868_v28, %v7868_v28  ;;  %v7887_v46 = vadd.f32 %v3169_v48, %v8596_v50  ;;  %v3550_v20 = vsub.f32 %v3512_v43, %v3531_v33 }
 0x32b   : > { %v3513_v28 = vmul.f32 %v3460_v0, %v7876_v52 }
 0x32c   : > { %3377 = vadd.xlane.f32.xlu2 %v3376_v38  ;;  %v3497_v35 = vadd.f32 %v3446_v25, %v3445_v49  ;;  %8597 = vst [vmem:[#allocation29_spill] sm:$0xff] %v7887_v46  ;;  %v3532_v49 = vmul.f32 %v7890_v60, %v7890_v60  ;;  %v3342_v38 = vpop.xlane.xlu1 %3341  ;;  %v7898_v25 = vadd.f32 1e-05, %v3550_v20 }
 0x32d   : > { %v3284_v29 = vpop.f32.mrf.mxu3  ;;  %v7901_v48 = vmul.f32 %v7876_v52, %v3342_v38 }
 0x32e   : > { %v3285_v21 = vadd.f32 %v3284_v29, %v3227_v27  ;;  %3498 = vadd.xlane.f32.xlu0 %v3497_v35  ;;  %v3447_v27 = vmul.f32 %v7887_v46, %v7887_v46  ;;  %v3551_v35 = vsub.f32 %v3513_v28, %v3532_v49  ;;  %4712 = vrsqrt.f32 %v7898_v25 }
 0x32f   : > { %v3533_v58 = vmul.f32 %v7901_v48, %v7901_v48  ;;  %v3348_v49 = vpop.xlane.xlu2 %3347  ;;  %vm3632_vm10 = vweird.f32 %v7898_v25 }
 0x330   : > { %v7894_v2 = vadd.f32 %v3285_v21, %v7278_v45  ;;  %v7910_v33 = vadd.f32 1e-05, %v3551_v35  ;;  %v3463_v50 = vpop.xlane.xlu0 %3462  ;;  %v3855_v35 = vperm.slane %v7514_v1, 6 }
 0x331   : > { %v3514_v21 = vmul.f32 %v3463_v50, %v7876_v52  ;;  %v3116_v50 = vadd.f32 %v7809_v59, %v7529_v18 }
 0x332   : > { %8598 = vst [vmem:[#allocation37_spill] sm:$0xff] %v7894_v2  ;;  %v3448_v43 = vmul.f32 %v7894_v2, %v7894_v2  ;;  %v3379_v29 = vadd.f32 %v7894_v2, %v7887_v46  ;;  %4714 = vrsqrt.f32 %v7910_v33  ;;  %v3898_v2 = vperm.slane %v7514_v1, 3 }
 0x333   : > { %v3552_v28 = vsub.f32 %v3514_v21, %v3533_v58  ;;  %v3230_v58 = vadd.f32 %v7804_v22, %v7534_v10  ;;  %v7942_v6 = vperm.slane %v3855_v35, 2  ;;  %v3570_v35 = vsub.f32 %v7561_v14, %v7879_v5 }
 0x334   : > { %v3500_v45 = vadd.f32 %v3448_v43, %v3447_v27  ;;  %v3345_v20 = vpop.xlane.xlu1 %3344  ;;  %v4713_v38 = vpop.eup %4712  ;;  %v3114_v27 = vadd.f32 %v7789_v12, %v7529_v18  ;;  %v3854_v43 = vperm.slane %v7514_v1, 2  ;;  %v3232_v12 = vadd.f32 %v7820_v19, %v7534_v10 }
 0x335   : > { %v7923_v46 = vadd.f32 1e-05, %v3552_v28  ;;  %vm3633_vm9 = vweird.f32 %v4713_v38  ;;  %vm3642_vm13 = vweird.f32 %v7910_v33 }
 0x336   : > { %3501 = vadd.xlane.f32.xlu1 %v3500_v45  ;;  %3380 = vadd.xlane.f32.xlu0 %v3379_v29  ;;  %v3171_v0 = vpop.f32.mrf.mxu1  ;;  %v3899_v45 = vperm.slane %v7514_v1, 7  ;;  %v3627_v29 = vmul.f32 %v4713_v38, %v7898_v25  ;;  %v7937_v1 = vadd.f32 %v7824_v51, %v7534_v10  ;;  %v7940_v22 = vperm.slane %v3854_v43, 2  ;;  %vm3634_vm11 = vmor %vm3632_vm10, %vm3633_vm9 }
 0x337   : > { %v3172_v21 = vadd.f32 %v3171_v0, %v3114_v27  ;;  %4716 = vrsqrt.f32 %v7923_v46  ;;  %v7946_v0 = vmul.f32 %v7876_v52, %v3345_v20  ;;  %v7948_v27 = vperm.slane %v3898_v2, 3 }
 0x338   : > { %v4715_v13 = vpop.eup %4714  ;;  %v3628_v28 = vmul.f32 %v4713_v38, %v3627_v29  ;;  %v7950_v18 = vperm.slane %v3899_v45, 3  ;;  %v3569_v43 = vsub.f32 %v7556_v32, %v7879_v5  ;;  %vm3652_vm0 = vweird.f32 %v7923_v46 }
 0x339   : > { %v3637_v19 = vmul.f32 %v4715_v13, %v7910_v33  ;;  %v7953_v51 = vadd.f32 %v3172_v21, %v8563_v31  ;;  %v3571_v31 = vsub.f32 %v7592_v37, %v7890_v60  ;;  %v3534_v32 = vmul.f32 %v7946_v0, %v7946_v0 }
 0x33a   : > { %v3629_v39 = vmul.f32 0.5, %v3628_v28  ;;  %vm3643_vm12 = vweird.f32 %v4715_v13 }
 0x33b   : > { %v3638_v63 = vmul.f32 %v4715_v13, %v3637_v19  ;;  %vm3644_vm14 = vmor %vm3642_vm13, %vm3643_vm12 }
 0x33c   : > { %v3287_v59 = vpop.f32.mrf.mxu3  ;;  %v3630_v20 = vsub.f32 1.5, %v3629_v39  ;;  %v3466_v28 = vpop.xlane.xlu1 %3465 }
 0x33d   : > { %v3288_v10 = vadd.f32 %v3287_v59, %v3230_v58  ;;  %v3639_v58 = vmul.f32 0.5, %v3638_v63  ;;  %v3515_v21 = vmul.f32 %v3466_v28, %v7876_v52  ;;  %v4717_v14 = vpop.eup %4716  ;;  %v3572_v59 = vsub.f32 %v7595_v54, %v7890_v60 }
 0x33e   : > { %v3173_v29 = vpop.f32.mrf.mxu1  ;;  %v3631_v5 = vmul.f32 %v4713_v38, %v3630_v20  ;;  %v3647_v63 = vmul.f32 %v4717_v14, %v7923_v46  ;;  %v7980_v54 = vmul.f32 %v7876_v52, %v3348_v49  ;;  %vm3653_vm15 = vweird.f32 %v4717_v14 }
 0x33f   : > { %v7960_v2 = vadd.f32 %v3288_v10, %v7085_v30  ;;  %v3174_v45 = vadd.f32 %v3173_v29, %v3116_v50  ;;  %v3469_v50 = vpop.xlane.xlu2 %3468  ;;  %v3640_v37 = vsub.f32 1.5, %v3639_v58  ;;  %v3553_v19 = vsub.f32 %v3515_v21, %v3534_v32  ;;  %vm3654_vm1 = vmor %vm3652_vm0, %vm3653_vm15 }
 0x340   : > { %v3635_v39 = vsel %vm3634_vm11, %v4713_v38, %v3631_v5  ;;  %v3648_v28 = vmul.f32 %v4717_v14, %v3647_v63 }
 0x341   : > { %v3382_v30 = vadd.f32 %v7960_v2, %v7953_v51  ;;  %v7976_v10 = vadd.f32 %v3174_v45, %v8564_v61  ;;  %v3816_v60 = vmul.f32 %v3635_v39, %v3569_v43  ;;  %v3817_v25 = vmul.f32 %v3635_v39, %v3570_v35 }
 0x342   : > { %v3641_v29 = vmul.f32 %v4715_v13, %v3640_v37  ;;  %v7986_v38 = vadd.f32 1e-05, %v3553_v19  ;;  %v3516_v61 = vmul.f32 %v3469_v50, %v7876_v52  ;;  %v3649_v43 = vmul.f32 0.5, %v3648_v28 }
 0x343   : > { %3383 = vadd.xlane.f32.xlu1 %v3382_v30  ;;  %v3860_v33 = vmul.f32 %v7940_v22, %v3816_v60  ;;  %v3861_v49 = vmul.f32 %v7942_v6, %v3817_v25  ;;  %v3573_v60 = vsub.f32 %v7616_v40, %v7901_v48 }
 0x344   : > { %v3289_v20 = vpop.f32.mrf.mxu3  ;;  %v3645_v45 = vsel %vm3644_vm14, %v4715_v13, %v3641_v29  ;;  %4718 = vrsqrt.f32 %v7986_v38  ;;  %v3650_v37 = vsub.f32 1.5, %v3649_v43  ;;  %vm3662_vm3 = vweird.f32 %v7986_v38 }
 0x345   : > { %v3290_v58 = vadd.f32 %v3289_v20, %v3232_v12  ;;  %v3818_v35 = vmul.f32 %v3645_v45, %v3571_v31  ;;  %v3819_v32 = vmul.f32 %v3645_v45, %v3572_v59  ;;  %v3904_v12 = vadd.f32 %v7948_v27, %v3860_v33  ;;  %v3472_v59 = vpop.xlane.xlu0 %3471 }
 0x346   : > { %v3176_v5 = vpop.f32.mrf.mxu1  ;;  %v3905_v30 = vadd.f32 %v7950_v18, %v3861_v49  ;;  %v3651_v25 = vmul.f32 %v4717_v14, %v3650_v37  ;;  %v3574_v20 = vsub.f32 %v7621_v55, %v7901_v48  ;;  %v3449_v37 = vmul.f32 %v7953_v51, %v7953_v51 }
 0x347   : > { %v7992_v21 = vadd.f32 %v3290_v58, %v7194_v4  ;;  %v3177_v50 = vadd.f32 %v3176_v5, %v7933_v56  ;;  %v3862_v63 = vmul.f32 %v7940_v22, %v3818_v35  ;;  %v3863_v13 = vmul.f32 %v7942_v6, %v3819_v32  ;;  %v3351_v19 = vpop.xlane.xlu2 %3350  ;;  %v3475_v5 = vpop.xlane.xlu1 %3474 }
 0x348   : > { %v3535_v4 = vmul.f32 %v7980_v54, %v7980_v54  ;;  %v3942_v39 = vpack.c.bf16 %v3905_v30, %v3904_v12  ;;  %v3655_v46 = vsel %vm3654_vm1, %v4717_v14, %v3651_v25  ;;  %v3450_v58 = vmul.f32 %v7960_v2, %v7960_v2 }
 0x349   : > { %v3385_v31 = vadd.f32 %v7992_v21, %v7976_v10  ;;  %v3906_v56 = vadd.f32 %v7948_v27, %v3862_v63  ;;  %v3907_v29 = vadd.f32 %v7950_v18, %v3863_v13  ;;  %v8017_v40 = vadd.f32 %v3177_v50, %v8565_v36 }
 0x34a   : > { %v3554_v28 = vsub.f32 %v3516_v61, %v3535_v4  ;;  %3961 = vst [vmem:[%s8013_s20] sm:$0xff] %v3942_v39  ;;  %v8022_v33 = vmul.f32 %v7876_v52, %v3351_v19  ;;  %v4719_v55 = vpop.eup %4718  ;;  %v3820_v49 = vmul.f32 %v3655_v46, %v3573_v60  ;;  %v3821_v45 = vmul.f32 %v3655_v46, %v3574_v20 }
 0x34b   : > { %3386 = vadd.xlane.f32.xlu2 %v3385_v31  ;;  %v3943_v48 = vpack.c.bf16 %v3907_v29, %v3906_v56  ;;  %v3657_v32 = vmul.f32 %v4719_v55, %v7986_v38  ;;  %v3517_v36 = vmul.f32 %v3472_v59, %v7876_v52  ;;  %v3503_v59 = vadd.f32 %v3450_v58, %v3449_v37 }
 0x34c   : > { %v3292_v61 = vpop.f32.mrf.mxu3  ;;  %v8024_v43 = vadd.f32 1e-05, %v3554_v28  ;;  %v3536_v14 = vmul.f32 %v8022_v33, %v8022_v33  ;;  %v3864_v12 = vmul.f32 %v7940_v22, %v3820_v49  ;;  %v3865_v30 = vmul.f32 %v7942_v6, %v3821_v45 }
 0x34d   : > { %v3293_v35 = vadd.f32 %v3292_v61, %v7937_v1  ;;  %3962 = vst [vmem:[%s8013_s20 + $0x8] sm:$0xff] %v3943_v48  ;;  %v3658_v63 = vmul.f32 %v4719_v55, %v3657_v32  ;;  %v3453_v19 = vmul.f32 %v8017_v40, %v8017_v40  ;;  %v3354_v39 = vpop.xlane.xlu0 %3353  ;;  %vm3663_vm2 = vweird.f32 %v4719_v55 }
 0x34e   : > { %v3178_v50 = vpop.f32.mrf.mxu1  ;;  %4720 = vrsqrt.f32 %v8024_v43  ;;  %v3555_v13 = vsub.f32 %v3517_v36, %v3536_v14  ;;  %v3908_v31 = vadd.f32 %v7948_v27, %v3864_v12  ;;  %v3909_v4 = vadd.f32 %v7950_v18, %v3865_v30  ;;  %vm3664_vm4 = vmor %vm3662_vm3, %vm3663_vm2 }
 0x34f   : > { %v8038_v1 = vadd.f32 %v3293_v35, %v7235_v8  ;;  %v3659_v8 = vmul.f32 0.5, %v3658_v63  ;;  %v8051_v20 = vmul.f32 %v7876_v52, %v3354_v39  ;;  %v3518_v49 = vmul.f32 %v3475_v5, %v7876_v52  ;;  %v3478_v36 = vpop.xlane.xlu2 %3477  ;;  %v3357_v14 = vpop.xlane.xlu1 %3356 }
 0x350   : > { %v8048_v56 = vadd.f32 1e-05, %v3555_v13  ;;  %v3944_v29 = vpack.c.bf16 %v3909_v4, %v3908_v31  ;;  %v3452_v35 = vmul.f32 %v7992_v21, %v7992_v21  ;;  %v3575_v12 = vsub.f32 %v7642_v17, %v7946_v0 }
 0x351   : > { %v3388_v60 = vadd.f32 %v8038_v1, %v8017_v40  ;;  %v3454_v25 = vmul.f32 %v8038_v1, %v8038_v1  ;;  %v3660_v46 = vsub.f32 1.5, %v3659_v8  ;;  %v3537_v45 = vmul.f32 %v8051_v20, %v8051_v20 }
 0x352   : > { %4722 = vrsqrt.f32 %v8048_v56  ;;  %3963 = vst [vmem:[%s8013_s20 + $0x10] sm:$0xff] %v3944_v29  ;;  %v3576_v5 = vsub.f32 %v7645_v9, %v7946_v0  ;;  %v8068_v50 = vmul.f32 %v7876_v52, %v3357_v14  ;;  %v3451_v37 = vmul.f32 %v7976_v10, %v7976_v10 }
 0x353   : > { %3504 = vadd.xlane.f32.xlu2 %v3503_v59  ;;  %3389 = vadd.xlane.f32.xlu0 %v3388_v60  ;;  %v3509_v28 = vadd.f32 %v3454_v25, %v3453_v19  ;;  %v3661_v61 = vmul.f32 %v4719_v55, %v3660_v46  ;;  %v3556_v30 = vsub.f32 %v3518_v49, %v3537_v45  ;;  %vm3672_vm6 = vweird.f32 %v8024_v43 }
 0x354   : > { %v4721_v58 = vpop.eup %4720  ;;  %v3294_v48 = vpop.f32.mrf.mxu3  ;;  %v3538_v17 = vmul.f32 %v8068_v50, %v8068_v50  ;;  %v3506_v9 = vadd.f32 %v3452_v35, %v3451_v37  ;;  %v3519_v19 = vmul.f32 %v3478_v36, %v7876_v52  ;;  %v3577_v49 = vsub.f32 %v7667_v62, %v7980_v54 }
 0x355   : > { %3510 = vadd.xlane.f32.xlu1 %v3509_v28  ;;  %v3667_v32 = vmul.f32 %v4721_v58, %v8024_v43  ;;  %v3665_v38 = vsel %vm3664_vm4, %v4719_v55, %v3661_v61  ;;  %v8072_v4 = vadd.f32 1e-05, %v3556_v30  ;;  %v3481_v39 = vpop.xlane.xlu0 %3480  ;;  %vm3673_vm5 = vweird.f32 %v4721_v58 }
 0x356   : > { %v3822_v13 = vmul.f32 %v3665_v38, %v3575_v12  ;;  %v3823_v31 = vmul.f32 %v3665_v38, %v3576_v5  ;;  %v3557_v29 = vsub.f32 %v3519_v19, %v3538_v17  ;;  %vm3674_vm7 = vmor %vm3672_vm6, %vm3673_vm5  ;;  %vm3682_vm9 = vweird.f32 %v8048_v56 }
 0x357   : > { %v3668_v63 = vmul.f32 %v4721_v58, %v3667_v32  ;;  %4724 = vrsqrt.f32 %v8072_v4  ;;  %v3360_v35 = vpop.xlane.xlu2 %3359  ;;  %v3578_v32 = vsub.f32 %v7670_v26, %v7980_v54  ;;  %v3520_v54 = vmul.f32 %v3481_v39, %v7876_v52 }
 0x358   : > { %v4723_v59 = vpop.eup %4722  ;;  %v3866_v60 = vmul.f32 %v7940_v22, %v3822_v13  ;;  %v3867_v55 = vmul.f32 %v7942_v6, %v3823_v31  ;;  %v8086_v61 = vadd.f32 1e-05, %v3557_v29  ;;  %v8091_v12 = vmul.f32 %v7876_v52, %v3360_v35 }
 0x359   : > { %v3669_v0 = vmul.f32 0.5, %v3668_v63  ;;  %v3677_v25 = vmul.f32 %v4723_v59, %v8048_v56  ;;  %vm3683_vm8 = vweird.f32 %v4723_v59  ;;  %v3484_v37 = vpop.xlane.xlu1 %3483  ;;  %v3580_v56 = vsub.f32 %v7692_v47, %v8022_v33 }
 0x35a   : > { %v3910_v28 = vadd.f32 %v7948_v27, %v3866_v60  ;;  %v3911_v46 = vadd.f32 %v7950_v18, %v3867_v55  ;;  %4726 = vrsqrt.f32 %v8086_v61  ;;  %v3539_v26 = vmul.f32 %v8091_v12, %v8091_v12  ;;  %vm3684_vm10 = vmor %vm3682_vm9, %vm3683_vm8 }
 0x35b   : > { %3507 = vadd.xlane.f32.xlu0 %v3506_v9  ;;  %v3670_v8 = vsub.f32 1.5, %v3669_v0  ;;  %v3678_v48 = vmul.f32 %v4723_v59, %v3677_v25  ;;  %v3579_v9 = vsub.f32 %v7680_v15, %v8022_v33  ;;  %vm3692_vm12 = vweird.f32 %v8072_v4 }
 0x35c   : > { %v3945_v36 = vpack.c.bf16 %v3911_v46, %v3910_v28  ;;  %v3558_v0 = vsub.f32 %v3520_v54, %v3539_v26  ;;  %vm3702_vm15 = vweird.f32 %v8086_v61 }
 0x35d   : > { %v3671_v45 = vmul.f32 %v4721_v58, %v3670_v8  ;;  %v3679_v14 = vmul.f32 0.5, %v3678_v48  ;;  %v4725_v43 = vpop.eup %4724  ;;  %v3363_v63 = vpop.xlane.xlu0 %3362 }
 0x35e   : > { %3964 = vst [vmem:[%s8013_s20 + $0x18] sm:$0xff] %v3945_v36  ;;  %v3687_v17 = vmul.f32 %v4725_v43, %v8072_v4  ;;  %v8107_v19 = vmul.f32 %v7876_v52, %v3363_v63  ;;  %v8111_v46 = vadd.f32 1e-05, %v3558_v0  ;;  %vm3693_vm11 = vweird.f32 %v4725_v43 }
 0x35f   : > { %v3675_v5 = vsel %vm3674_vm7, %v4721_v58, %v3671_v45  ;;  %v3680_v38 = vsub.f32 1.5, %v3679_v14  ;;  %vm3694_vm13 = vmor %vm3692_vm12, %vm3693_vm11 }
 0x360   : > { %v3824_v62 = vmul.f32 %v3675_v5, %v3577_v49  ;;  %v3825_v30 = vmul.f32 %v3675_v5, %v3578_v32  ;;  %v3688_v25 = vmul.f32 %v4725_v43, %v3687_v17  ;;  %v4727_v8 = vpop.eup %4726  ;;  %v3540_v15 = vmul.f32 %v8107_v19, %v8107_v19 }
 0x361   : > { %v3681_v31 = vmul.f32 %v4723_v59, %v3680_v38  ;;  %v3697_v48 = vmul.f32 %v4727_v8, %v8086_v61  ;;  %v3521_v49 = vmul.f32 %v3484_v37, %v7876_v52  ;;  %4728 = vrsqrt.f32 %v8111_v46 }
 0x362   : > { %v3868_v13 = vmul.f32 %v7940_v22, %v3824_v62  ;;  %v3869_v58 = vmul.f32 %v7942_v6, %v3825_v30  ;;  %v3689_v33 = vmul.f32 0.5, %v3688_v25  ;;  %vm3703_vm14 = vweird.f32 %v4727_v8 }
 0x363   : > { %v3685_v55 = vsel %vm3684_vm10, %v4723_v59, %v3681_v31  ;;  %v3698_v36 = vmul.f32 %v4727_v8, %v3697_v48  ;;  %v3559_v14 = vsub.f32 %v3521_v49, %v3540_v15  ;;  %v3584_v25 = vsub.f32 %v7734_v16, %v8068_v50  ;;  %vm3704_vm0 = vmor %vm3702_vm15, %vm3703_vm14 }
 0x364   : > { %v3912_v39 = vadd.f32 %v7948_v27, %v3868_v13  ;;  %v3913_v60 = vadd.f32 %v7950_v18, %v3869_v58  ;;  %v3826_v29 = vmul.f32 %v3685_v55, %v3579_v9  ;;  %v3827_v28 = vmul.f32 %v3685_v55, %v3580_v56 }
 0x365   : > { %v3690_v32 = vsub.f32 1.5, %v3689_v33  ;;  %v3699_v26 = vmul.f32 0.5, %v3698_v36  ;;  %v8124_v54 = vadd.f32 1e-05, %v3559_v14  ;;  %v3581_v13 = vsub.f32 %v7703_v41, %v8051_v20 }
 0x366   : > { %v3946_v47 = vpack.c.bf16 %v3913_v60, %v3912_v39  ;;  %v3870_v35 = vmul.f32 %v7940_v22, %v3826_v29  ;;  %v3871_v59 = vmul.f32 %v7942_v6, %v3827_v28  ;;  %v3582_v58 = vsub.f32 %v7712_v44, %v8051_v20 }
 0x367   : > { %v3366_v30 = vpop.xlane.xlu1 %3365  ;;  %v3691_v38 = vmul.f32 %v4725_v43, %v3690_v32  ;;  %v3700_v17 = vsub.f32 1.5, %v3699_v26  ;;  %4730 = vrsqrt.f32 %v8124_v54  ;;  %v4729_v4 = vpop.eup %4728  ;;  %v3583_v41 = vsub.f32 %v7725_v34, %v8068_v50 }
 0x368   : > { %3965 = vst [vmem:[%s8013_s20 + $0x20] sm:$0xff] %v3946_v47  ;;  %v3914_v5 = vadd.f32 %v7948_v27, %v3870_v35  ;;  %v3915_v62 = vadd.f32 %v7950_v18, %v3871_v59  ;;  %v8127_v37 = vmul.f32 %v7876_v52, %v3366_v30  ;;  %v3707_v44 = vmul.f32 %v4729_v4, %v8111_v46 }
 0x369   : > { %v3487_v45 = vpop.xlane.xlu2 %3486  ;;  %v3695_v31 = vsel %vm3694_vm13, %v4725_v43, %v3691_v38  ;;  %v3701_v60 = vmul.f32 %v4727_v8, %v3700_v17  ;;  %vm3713_vm1 = vweird.f32 %v4729_v4  ;;  %v3585_v26 = vsub.f32 %v7745_v23, %v8091_v12 }
 0x36a   : > { %v3947_v63 = vpack.c.bf16 %v3915_v62, %v3914_v5  ;;  %v3828_v9 = vmul.f32 %v3695_v31, %v3581_v13  ;;  %v3829_v56 = vmul.f32 %v3695_v31, %v3582_v58  ;;  %v3522_v0 = vmul.f32 %v3487_v45, %v7876_v52 }
 0x36b   : > { %v3541_v39 = vmul.f32 %v8127_v37, %v8127_v37  ;;  %v3705_v28 = vsel %vm3704_vm0, %v4727_v8, %v3701_v60  ;;  %v3708_v15 = vmul.f32 %v4729_v4, %v3707_v44  ;;  %vm3712_vm2 = vweird.f32 %v8111_v46 }
 0x36c   : > { %3966 = vst [vmem:[%s8013_s20 + $0x28] sm:$0xff] %v3947_v63  ;;  %v3872_v43 = vmul.f32 %v7940_v22, %v3828_v9  ;;  %v3873_v55 = vmul.f32 %v7942_v6, %v3829_v56  ;;  %v3830_v33 = vmul.f32 %v3705_v28, %v3583_v41  ;;  %v3831_v48 = vmul.f32 %v3705_v28, %v3584_v25  ;;  %vm3714_vm3 = vmor %vm3712_vm2, %vm3713_vm1 }
 0x36d   : > { %v3560_v29 = vsub.f32 %v3522_v0, %v3541_v39  ;;  %v4731_v45 = vpop.eup %4730  ;;  %v3709_v35 = vmul.f32 0.5, %v3708_v15  ;;  %v3586_v58 = vsub.f32 %v7754_v53, %v8091_v12  ;;  %vm3722_vm5 = vweird.f32 %v8124_v54 }
 0x36e   : > { %v3916_v61 = vadd.f32 %v7948_v27, %v3872_v43  ;;  %v3917_v47 = vadd.f32 %v7950_v18, %v3873_v55  ;;  %v3874_v50 = vmul.f32 %v7940_v22, %v3830_v33  ;;  %v3875_v8 = vmul.f32 %v7942_v6, %v3831_v48 }
 0x36f   : > { %v3617_v59 = vadd.f32 1e-05, %v3560_v29  ;;  %v3717_v32 = vmul.f32 %v4731_v45, %v8124_v54  ;;  %v3710_v36 = vsub.f32 1.5, %v3709_v35  ;;  %vm3723_vm4 = vweird.f32 %v4731_v45 }
 0x370   : > { %v3948_v16 = vpack.c.bf16 %v3917_v47, %v3916_v61  ;;  %v3918_v5 = vadd.f32 %v7948_v27, %v3874_v50  ;;  %v3919_v62 = vadd.f32 %v7950_v18, %v3875_v8  ;;  %v3587_v12 = vsub.f32 %v7765_v11, %v8107_v19  ;;  %vm3724_vm6 = vmor %vm3722_vm5, %vm3723_vm4 }
 0x371   : > { %v3369_v20 = vpop.xlane.xlu2 %3368  ;;  %v3490_v49 = vpop.xlane.xlu0 %3489  ;;  %4732 = vrsqrt.f32 %v3617_v59  ;;  %v3718_v30 = vmul.f32 %v4731_v45, %v3717_v32  ;;  %v3711_v63 = vmul.f32 %v4729_v4, %v3710_v36  ;;  %vm3732_vm8 = vweird.f32 %v3617_v59 }
 0x372   : > { %v8148_v34 = vmul.f32 %v7876_v52, %v3369_v20  ;;  %v3523_v14 = vmul.f32 %v3490_v49, %v7876_v52  ;;  %3967 = vst [vmem:[%s8013_s20 + $0x30] sm:$0xff] %v3948_v16  ;;  %v3949_v13 = vpack.c.bf16 %v3919_v62, %v3918_v5  ;;  %v3589_v35 = vsub.f32 %v7787_v24, %v8127_v37 }
 0x373   : > { %v3719_v31 = vmul.f32 0.5, %v3718_v30  ;;  %v3715_v9 = vsel %vm3714_vm3, %v4729_v4, %v3711_v63  ;;  %v3588_v4 = vsub.f32 %v7772_v42, %v8107_v19  ;;  %v3590_v16 = vsub.f32 %v7794_v3, %v8127_v37 }
 0x374   : > { %v3542_v38 = vmul.f32 %v8148_v34, %v8148_v34  ;;  %3968 = vst [vmem:[%s8013_s20 + $0x38] sm:$0xff] %v3949_v13  ;;  %v3832_v56 = vmul.f32 %v3715_v9, %v3585_v26  ;;  %v3833_v0 = vmul.f32 %v3715_v9, %v3586_v58  ;;  %v3592_v9 = vsub.f32 %v7812_v57, %v8148_v34 }
 0x375   : > { %v3720_v39 = vsub.f32 1.5, %v3719_v31 }
 0x376   : > { %v3561_v17 = vsub.f32 %v3523_v14, %v3542_v38  ;;  %v3876_v23 = vmul.f32 %v7940_v22, %v3832_v56  ;;  %v3877_v46 = vmul.f32 %v7942_v6, %v3833_v0 }
 0x377   : > { %v4733_v60 = vpop.eup %4732  ;;  %v3721_v44 = vmul.f32 %v4731_v45, %v3720_v39 }
 0x378   : > { %v3618_v41 = vadd.f32 1e-05, %v3561_v17  ;;  %v3727_v53 = vmul.f32 %v4733_v60, %v3617_v59  ;;  %v3920_v20 = vadd.f32 %v7948_v27, %v3876_v23  ;;  %v3921_v43 = vadd.f32 %v7950_v18, %v3877_v46 }
 0x379   : > { %v3725_v54 = vsel %vm3724_vm6, %v4731_v45, %v3721_v44  ;;  %vm3733_vm7 = vweird.f32 %v4733_v60  ;;  %v3591_v17 = vsub.f32 %v7807_v7, %v8148_v34 }
 0x37a   : > { %4734 = vrsqrt.f32 %v3618_v41  ;;  %v3728_v55 = vmul.f32 %v4733_v60, %v3727_v53  ;;  %v3834_v25 = vmul.f32 %v3725_v54, %v3587_v12  ;;  %v3835_v29 = vmul.f32 %v3725_v54, %v3588_v4  ;;  %vm3734_vm9 = vmor %vm3732_vm8, %vm3733_vm7 }
 0x37b   : > { %v3950_v28 = vpack.c.bf16 %v3921_v43, %v3920_v20  ;;  %vm3742_vm11 = vweird.f32 %v3618_v41 }
 0x37c   : > { %v3729_v15 = vmul.f32 0.5, %v3728_v55  ;;  %v3878_v61 = vmul.f32 %v7940_v22, %v3834_v25  ;;  %v3879_v47 = vmul.f32 %v7942_v6, %v3835_v29 }
 0x37d   : > { %3969 = vst [vmem:[%s8013_s20 + $0x40] sm:$0xff] %v3950_v28 }
 0x37e   : > { %v3730_v11 = vsub.f32 1.5, %v3729_v15  ;;  %v3922_v19 = vadd.f32 %v7948_v27, %v3878_v61  ;;  %v3923_v33 = vadd.f32 %v7950_v18, %v3879_v47 }
 0x380   : > { %v4735_v42 = vpop.eup %4734  ;;  %v3731_v48 = vmul.f32 %v4733_v60, %v3730_v11  ;;  %v3951_v45 = vpack.c.bf16 %v3923_v33, %v3922_v19  ;;  %v8599_v11 = vld [vmem:[#allocation27_spill] sm:$0xff]  ;;  %v8600_v19 = vld [vmem:[#allocation42_spill] sm:$0xff] }
 0x381   : > { %v3737_v49 = vmul.f32 %v4735_v42, %v3618_v41  ;;  %vm3743_vm10 = vweird.f32 %v4735_v42 }
 0x382   : > { %v3735_v50 = vsel %vm3734_vm9, %v4733_v60, %v3731_v48  ;;  %3970 = vst [vmem:[%s8013_s20 + $0x48] sm:$0xff] %v3951_v45  ;;  %vm3744_vm12 = vmor %vm3742_vm11, %vm3743_vm10 }
 0x383   : > { %v3738_v8 = vmul.f32 %v4735_v42, %v3737_v49  ;;  %v3836_v36 = vmul.f32 %v3735_v50, %v3589_v35  ;;  %v3837_v14 = vmul.f32 %v3735_v50, %v3590_v16 }
 0x385   : > { %v3739_v62 = vmul.f32 0.5, %v3738_v8  ;;  %v3880_v59 = vmul.f32 %v7940_v22, %v3836_v36  ;;  %v3881_v38 = vmul.f32 %v7942_v6, %v3837_v14 }
 0x387   : > { %v3740_v3 = vsub.f32 1.5, %v3739_v62  ;;  %v3924_v37 = vadd.f32 %v7948_v27, %v3880_v59  ;;  %v3925_v63 = vadd.f32 %v7950_v18, %v3881_v38 }
 0x388   : > { %v3372_v32 = vpop.xlane.xlu0 %3371 }
 0x389   : > { %v3410_v5 = vmul.f32 %v7876_v52, %v3372_v32  ;;  %v3741_v58 = vmul.f32 %v4735_v42, %v3740_v3  ;;  %v3952_v31 = vpack.c.bf16 %v3925_v63, %v3924_v37 }
 0x38a   : > { %v3493_v30 = vpop.xlane.xlu1 %3492 }
 0x38b   : > { %v3524_v24 = vmul.f32 %v3493_v30, %v7876_v52  ;;  %v3543_v26 = vmul.f32 %v3410_v5, %v3410_v5  ;;  %v3745_v0 = vsel %vm3744_vm12, %v4735_v42, %v3741_v58  ;;  %3971 = vst [vmem:[%s8013_s20 + $0x50] sm:$0xff] %v3952_v31  ;;  %v3593_v42 = vsub.f32 %v8599_v11, %v3410_v5  ;;  %v8601_v58 = vld [vmem:[#allocation45_spill] sm:$0xff] }
 0x38c   : > { %v3838_v39 = vmul.f32 %v3745_v0, %v3591_v17  ;;  %v3839_v60 = vmul.f32 %v3745_v0, %v3592_v9  ;;  %v3594_v33 = vsub.f32 %v8600_v19, %v3410_v5  ;;  %v8602_v17 = vld [vmem:[#allocation43_spill] sm:$0xff] }
 0x38d   : > { %v3562_v13 = vsub.f32 %v3524_v24, %v3543_v26 }
 0x38e   : > { %v3882_v44 = vmul.f32 %v7940_v22, %v3838_v39  ;;  %v3883_v41 = vmul.f32 %v7942_v6, %v3839_v60 }
 0x38f   : > { %v3619_v56 = vadd.f32 1e-05, %v3562_v13 }
 0x390   : > { %v3926_v7 = vadd.f32 %v7948_v27, %v3882_v44  ;;  %v3927_v57 = vadd.f32 %v7950_v18, %v3883_v41 }
 0x391   : > { %4736 = vrsqrt.f32 %v3619_v56  ;;  %vm3752_vm14 = vweird.f32 %v3619_v56 }
 0x392   : > { %v3496_v23 = vpop.xlane.xlu2 %3495  ;;  %v3375_v46 = vpop.xlane.xlu1 %3374  ;;  %v3953_v20 = vpack.c.bf16 %v3927_v57, %v3926_v7 }
 0x393   : > { %v3411_v53 = vmul.f32 %v7876_v52, %v3375_v46  ;;  %v3525_v34 = vmul.f32 %v3496_v23, %v7876_v52 }
 0x394   : > { %3972 = vst [vmem:[%s8013_s20 + $0x58] sm:$0xff] %v3953_v20 }
 0x395   : > { %v3544_v12 = vmul.f32 %v3411_v53, %v3411_v53  ;;  %v3595_v31 = vsub.f32 %v8601_v58, %v3411_v53  ;;  %v3596_v9 = vsub.f32 %v8602_v17, %v3411_v53 }
 0x397   : > { %v4737_v4 = vpop.eup %4736  ;;  %v3563_v43 = vsub.f32 %v3525_v34, %v3544_v12 }
 0x398   : > { %v3747_v54 = vmul.f32 %v4737_v4, %v3619_v56  ;;  %vm3753_vm13 = vweird.f32 %v4737_v4 }
 0x399   : > { %v3620_v55 = vadd.f32 1e-05, %v3563_v43  ;;  %vm3754_vm15 = vmor %vm3752_vm14, %vm3753_vm13 }
 0x39a   : > { %v3748_v25 = vmul.f32 %v4737_v4, %v3747_v54 }
 0x39b   : > { %4738 = vrsqrt.f32 %v3620_v55  ;;  %vm3762_vm1 = vweird.f32 %v3620_v55 }
 0x39c   : > { %v3749_v29 = vmul.f32 0.5, %v3748_v25 }
 0x39e   : > { %v3750_v28 = vsub.f32 1.5, %v3749_v29 }
 0x39f   : > { %v3378_v61 = vpop.xlane.xlu2 %3377 }
 0x3a0   : > { %v3751_v15 = vmul.f32 %v4737_v4, %v3750_v28  ;;  %v3412_v48 = vmul.f32 %v7876_v52, %v3378_v61  ;;  %v8603_v28 = vld [vmem:[#allocation48_spill] sm:$0xff]  ;;  %v8604_v61 = vld [vmem:[#allocation50_spill] sm:$0xff] }
 0x3a1   : > { %v4739_v47 = vpop.eup %4738  ;;  %v3499_v35 = vpop.xlane.xlu0 %3498 }
 0x3a2   : > { %v3755_v49 = vsel %vm3754_vm15, %v4737_v4, %v3751_v15  ;;  %v3757_v45 = vmul.f32 %v4739_v47, %v3620_v55  ;;  %v3545_v32 = vmul.f32 %v3412_v48, %v3412_v48  ;;  %v3526_v36 = vmul.f32 %v3499_v35, %v7876_v52 }
 0x3a3   : > { %v3840_v16 = vmul.f32 %v3755_v49, %v3593_v42  ;;  %v3841_v50 = vmul.f32 %v3755_v49, %v3594_v33  ;;  %vm3763_vm0 = vweird.f32 %v4739_v47  ;;  %v3597_v15 = vsub.f32 %v8603_v28, %v3412_v48 }
 0x3a4   : > { %v3758_v8 = vmul.f32 %v4739_v47, %v3757_v45  ;;  %v3564_v59 = vsub.f32 %v3526_v36, %v3545_v32  ;;  %vm3764_vm2 = vmor %vm3762_vm1, %vm3763_vm0 }
 0x3a5   : > { %v3884_v14 = vmul.f32 %v7940_v22, %v3840_v16  ;;  %v3885_v62 = vmul.f32 %v7942_v6, %v3841_v50 }
 0x3a6   : > { %v3759_v30 = vmul.f32 0.5, %v3758_v8  ;;  %v3621_v26 = vadd.f32 1e-05, %v3564_v59 }
 0x3a7   : > { %v3928_v5 = vadd.f32 %v7948_v27, %v3884_v14  ;;  %v3929_v38 = vadd.f32 %v7950_v18, %v3885_v62 }
 0x3a8   : > { %v3760_v24 = vsub.f32 1.5, %v3759_v30  ;;  %4740 = vrsqrt.f32 %v3621_v26  ;;  %vm3772_vm4 = vweird.f32 %v3621_v26  ;;  %v8605_v30 = vld [vmem:[#allocation29_spill] sm:$0xff] }
 0x3a9   : > { %v3954_v3 = vpack.c.bf16 %v3929_v38, %v3928_v5  ;;  %v3502_v63 = vpop.xlane.xlu1 %3501  ;;  %v3381_v13 = vpop.xlane.xlu0 %3380  ;;  %v8606_v5 = vld [vmem:[#allocation37_spill] sm:$0xff] }
 0x3aa   : > { %v3761_v37 = vmul.f32 %v4739_v47, %v3760_v24  ;;  %v3413_v56 = vmul.f32 %v7876_v52, %v3381_v13  ;;  %v3527_v23 = vmul.f32 %v3502_v63, %v7876_v52 }
 0x3ab   : > { %3973 = vst [vmem:[%s8013_s20 + $0x60] sm:$0xff] %v3954_v3 }
 0x3ac   : > { %v3765_v0 = vsel %vm3764_vm2, %v4739_v47, %v3761_v37  ;;  %v3546_v46 = vmul.f32 %v3413_v56, %v3413_v56  ;;  %v3598_v47 = vsub.f32 %v8604_v61, %v3412_v48  ;;  %v3599_v59 = vsub.f32 %v8605_v30, %v3413_v56 }
 0x3ad   : > { %v3842_v39 = vmul.f32 %v3765_v0, %v3595_v31  ;;  %v3843_v60 = vmul.f32 %v3765_v0, %v3596_v9  ;;  %v3600_v38 = vsub.f32 %v8606_v5, %v3413_v56 }
 0x3ae   : > { %v3565_v7 = vsub.f32 %v3527_v23, %v3546_v46  ;;  %v4741_v57 = vpop.eup %4740 }
 0x3af   : > { %v3886_v44 = vmul.f32 %v7940_v22, %v3842_v39  ;;  %v3887_v41 = vmul.f32 %v7942_v6, %v3843_v60  ;;  %v3767_v12 = vmul.f32 %v4741_v57, %v3621_v26  ;;  %vm3773_vm3 = vweird.f32 %v4741_v57 }
 0x3b0   : > { %v3622_v4 = vadd.f32 1e-05, %v3565_v7  ;;  %vm3774_vm5 = vmor %vm3772_vm4, %vm3773_vm3 }
 0x3b1   : > { %v3930_v34 = vadd.f32 %v7948_v27, %v3886_v44  ;;  %v3931_v53 = vadd.f32 %v7950_v18, %v3887_v41  ;;  %v3768_v43 = vmul.f32 %v4741_v57, %v3767_v12 }
 0x3b2   : > { %4742 = vrsqrt.f32 %v3622_v4  ;;  %vm3782_vm7 = vweird.f32 %v3622_v4 }
 0x3b3   : > { %v3955_v20 = vpack.c.bf16 %v3931_v53, %v3930_v34  ;;  %v3769_v54 = vmul.f32 0.5, %v3768_v43 }
 0x3b5   : > { %3974 = vst [vmem:[%s8013_s20 + $0x68] sm:$0xff] %v3955_v20  ;;  %v3770_v55 = vsub.f32 1.5, %v3769_v54 }
 0x3b6   : > { %v3384_v14 = vpop.xlane.xlu1 %3383 }
 0x3b7   : > { %v3771_v25 = vmul.f32 %v4741_v57, %v3770_v55  ;;  %v3414_v26 = vmul.f32 %v7876_v52, %v3384_v14 }
 0x3b8   : > { %v4743_v29 = vpop.eup %4742 }
 0x3b9   : > { %v3775_v11 = vsel %vm3774_vm5, %v4741_v57, %v3771_v25  ;;  %v3777_v42 = vmul.f32 %v4743_v29, %v3622_v4  ;;  %vm3783_vm6 = vweird.f32 %v4743_v29  ;;  %v3547_v17 = vmul.f32 %v3414_v26, %v3414_v26 }
 0x3ba   : > { %v3844_v19 = vmul.f32 %v3775_v11, %v3597_v15  ;;  %v3845_v33 = vmul.f32 %v3775_v11, %v3598_v47  ;;  %vm3784_vm8 = vmor %vm3782_vm7, %vm3783_vm6 }
 0x3bb   : > { %v3778_v49 = vmul.f32 %v4743_v29, %v3777_v42 }
 0x3bc   : > { %v3888_v45 = vmul.f32 %v7940_v22, %v3844_v19  ;;  %v3889_v35 = vmul.f32 %v7942_v6, %v3845_v33 }
 0x3bd   : > { %v3779_v16 = vmul.f32 0.5, %v3778_v49  ;;  %v3601_v49 = vsub.f32 %v7953_v51, %v3414_v26 }
 0x3be   : > { %v3932_v50 = vadd.f32 %v7948_v27, %v3888_v45  ;;  %v3933_v8 = vadd.f32 %v7950_v18, %v3889_v35  ;;  %v3387_v32 = vpop.xlane.xlu2 %3386 }
 0x3bf   : > { %v3780_v36 = vsub.f32 1.5, %v3779_v16  ;;  %v8241_v57 = vmul.f32 %v7876_v52, %v3387_v32 }
 0x3c0   : > { %v3956_v48 = vpack.c.bf16 %v3933_v8, %v3932_v50 }
 0x3c1   : > { %v3781_v62 = vmul.f32 %v4743_v29, %v3780_v36  ;;  %v3548_v4 = vmul.f32 %v8241_v57, %v8241_v57 }
 0x3c2   : > { %3975 = vst [vmem:[%s8013_s20 + $0x70] sm:$0xff] %v3956_v48 }
 0x3c3   : > { %v3785_v24 = vsel %vm3784_vm8, %v4743_v29, %v3781_v62 }
 0x3c4   : > { %v3846_v3 = vmul.f32 %v3785_v24, %v3599_v59  ;;  %v3847_v37 = vmul.f32 %v3785_v24, %v3600_v38 }
 0x3c6   : > { %v3890_v63 = vmul.f32 %v7940_v22, %v3846_v3  ;;  %v3891_v13 = vmul.f32 %v7942_v6, %v3847_v37  ;;  %v3505_v58 = vpop.xlane.xlu2 %3504  ;;  %v3390_v9 = vpop.xlane.xlu0 %3389 }
 0x3c7   : > { %v3528_v31 = vmul.f32 %v3505_v58, %v7876_v52  ;;  %v3416_v39 = vmul.f32 %v7876_v52, %v3390_v9 }
 0x3c8   : > { %v3934_v0 = vadd.f32 %v7948_v27, %v3890_v63  ;;  %v3935_v56 = vadd.f32 %v7950_v18, %v3891_v13  ;;  %v3511_v23 = vpop.xlane.xlu1 %3510  ;;  %v3603_v63 = vsub.f32 %v7976_v10, %v8241_v57  ;;  %v3604_v13 = vsub.f32 %v7992_v21, %v8241_v57 }
 0x3c9   : > { %v3566_v60 = vsub.f32 %v3528_v31, %v3547_v17  ;;  %v3530_v44 = vmul.f32 %v3511_v23, %v7876_v52  ;;  %v3549_v7 = vmul.f32 %v3416_v39, %v3416_v39  ;;  %v3605_v36 = vsub.f32 %v8017_v40, %v3416_v39 }
 0x3ca   : > { %v3957_v46 = vpack.c.bf16 %v3935_v56, %v3934_v0  ;;  %v3606_v51 = vsub.f32 %v8038_v1, %v3416_v39 }
 0x3cb   : > { %v3623_v41 = vadd.f32 1e-05, %v3566_v60  ;;  %v3568_v34 = vsub.f32 %v3530_v44, %v3549_v7 }
 0x3cc   : > { %3976 = vst [vmem:[%s8013_s20 + $0x78] sm:$0xff] %v3957_v46 }
 0x3cd   : > { %4744 = vrsqrt.f32 %v3623_v41  ;;  %v3625_v53 = vadd.f32 1e-05, %v3568_v34  ;;  %vm3792_vm10 = vweird.f32 %v3623_v41 }
 0x3ce   : > { %v3508_v12 = vpop.xlane.xlu0 %3507 }
 0x3cf   : > { %v3529_v20 = vmul.f32 %v3508_v12, %v7876_v52  ;;  %4746 = vrsqrt.f32 %v3625_v53  ;;  %v3602_v52 = vsub.f32 %v7960_v2, %v3414_v26  ;;  %vm3812_vm13 = vweird.f32 %v3625_v53 }
 0x3d1   : > { %v3567_v43 = vsub.f32 %v3529_v20, %v3548_v4 }
 0x3d3   : > { %v4745_v54 = vpop.eup %4744  ;;  %v3624_v25 = vadd.f32 1e-05, %v3567_v43 }
 0x3d4   : > { %v3787_v55 = vmul.f32 %v4745_v54, %v3623_v41  ;;  %vm3793_vm9 = vweird.f32 %v4745_v54 }
 0x3d5   : > { %4748 = vrsqrt.f32 %v3624_v25  ;;  %v4747_v28 = vpop.eup %4746  ;;  %vm3794_vm11 = vmor %vm3792_vm10, %vm3793_vm9  ;;  %vm3802_vm0 = vweird.f32 %v3624_v25 }
 0x3d6   : > { %v3788_v29 = vmul.f32 %v4745_v54, %v3787_v55  ;;  %v3807_v61 = vmul.f32 %v4747_v28, %v3625_v53  ;;  %vm3813_vm12 = vweird.f32 %v4747_v28 }
 0x3d7   : > { %vm3814_vm14 = vmor %vm3812_vm13, %vm3813_vm12 }
 0x3d8   : > { %v3789_v15 = vmul.f32 0.5, %v3788_v29  ;;  %v3808_v11 = vmul.f32 %v4747_v28, %v3807_v61 }
 0x3da   : > { %v3790_v47 = vsub.f32 1.5, %v3789_v15  ;;  %v3809_v33 = vmul.f32 0.5, %v3808_v11 }
 0x3db   : > { %v4749_v42 = vpop.eup %4748 }
 0x3dc   : > { %v3791_v19 = vmul.f32 %v4745_v54, %v3790_v47  ;;  %v3797_v45 = vmul.f32 %v4749_v42, %v3624_v25  ;;  %v3810_v16 = vsub.f32 1.5, %v3809_v33  ;;  %vm3803_vm15 = vweird.f32 %v4749_v42 }
 0x3dd   : > { %vm3804_vm1 = vmor %vm3802_vm0, %vm3803_vm15 }
 0x3de   : > { %v3795_v35 = vsel %vm3794_vm11, %v4745_v54, %v3791_v19  ;;  %v3798_v32 = vmul.f32 %v4749_v42, %v3797_v45  ;;  %v3811_v48 = vmul.f32 %v4747_v28, %v3810_v16 }
 0x3df   : > { %v3848_v50 = vmul.f32 %v3795_v35, %v3601_v49  ;;  %v3849_v8 = vmul.f32 %v3795_v35, %v3602_v52 }
 0x3e0   : > { %v3799_v2 = vmul.f32 0.5, %v3798_v32  ;;  %v3815_v30 = vsel %vm3814_vm14, %v4747_v28, %v3811_v48 }
 0x3e1   : > { %v3892_v14 = vmul.f32 %v7940_v22, %v3848_v50  ;;  %v3893_v62 = vmul.f32 %v7942_v6, %v3849_v8  ;;  %v3852_v38 = vmul.f32 %v3815_v30, %v3605_v36  ;;  %v3853_v24 = vmul.f32 %v3815_v30, %v3606_v51 }
 0x3e2   : > { %v3800_v40 = vsub.f32 1.5, %v3799_v2 }
 0x3e3   : > { %v3936_v59 = vadd.f32 %v7948_v27, %v3892_v14  ;;  %v3937_v5 = vadd.f32 %v7950_v18, %v3893_v62  ;;  %v3896_v3 = vmul.f32 %v7940_v22, %v3852_v38  ;;  %v3897_v37 = vmul.f32 %v7942_v6, %v3853_v24 }
 0x3e4   : > { %v3801_v1 = vmul.f32 %v4749_v42, %v3800_v40 }
 0x3e5   : > { %v3958_v26 = vpack.c.bf16 %v3937_v5, %v3936_v59  ;;  %v3940_v58 = vadd.f32 %v7948_v27, %v3896_v3  ;;  %v3941_v31 = vadd.f32 %v7950_v18, %v3897_v37 }
 0x3e6   : > { %v3805_v17 = vsel %vm3804_vm1, %v4749_v42, %v3801_v1 }
 0x3e7   : > { %3977 = vst [vmem:[%s8013_s20 + $0x80] sm:$0xff] %v3958_v26  ;;  %v3960_v9 = vpack.c.bf16 %v3941_v31, %v3940_v58  ;;  %v3850_v0 = vmul.f32 %v3805_v17, %v3603_v63  ;;  %v3851_v56 = vmul.f32 %v3805_v17, %v3604_v13 }
 0x3e9   : > { %3979 = vst [vmem:[%s8013_s20 + $0x90] sm:$0xff] %v3960_v9  ;;  %v3894_v10 = vmul.f32 %v7940_v22, %v3850_v0  ;;  %v3895_v21 = vmul.f32 %v7942_v6, %v3851_v56 }
 0x3eb   : > { %v3938_v39 = vadd.f32 %v7948_v27, %v3894_v10  ;;  %v3939_v60 = vadd.f32 %v7950_v18, %v3895_v21 }
 0x3ed   : > { %v3959_v23 = vpack.c.bf16 %v3939_v60, %v3938_v39 }
 0x3ef   : > { %3978 = vst [vmem:[%s8013_s20 + $0x88] sm:$0xff] %v3959_v23 }
 0x3f0   : > { %4779 = shalt.err (!%p4776_p3)
}
 0x3f1   : > { %s4817_s12 = smov 128   ;;  %s4818_s13 = smov 8  }
 0x3f2   : > { %4592 = dma.vmem_to_hbm [thread:$0]  (%p4882_p5), %s3995_s27, 2432, %s3997_s28, %s3981_s29, %s4817_s12, %s4817_s12, %s4818_s13  }
 0x3f3 PF: > { %p4598_p4 = scmp.ge.s32.totalorder %s4814_s18, 2  ;;  %s4011_s14 = sand.u32 1, %s4802_s15  }
 0x3f4   : > { %s4012_s20 = scalar_lea.sflag [#allocation3], %s4011_s14 }
 0x3f5   : > { %p4595_p7 = pnand %p4598_p4, %p4886_p6 }
 0x3f7   : > { %p4596_p8 = pneg %p4595_p7 }
 0x3f9   : > { %4797 = dma.done.wait (%p4596_p8), %s4012_s20, 2432  }
 0x3fa   : > { %4799 = vsyncadd (%p4596_p8), %s4012_s20, 4294964864  ;;  %p14_p9 = scmp.ge.s32.totalorder %s4869_s21, 4   ;;  %s8607_s15 = smov %s4806_s16 }
 0x3fb   : > { %s8608_s16 = smov %s4810_s17  ;;  %s8609_s17 = smov %s4880_s24 }
 0x3fc   : > { %s8610_s18 = smov %s4869_s21  ;;  %16 = sbr.rel (!%p14_p9) target bundleno = 3 (0x3), region = 71 }
 0x401   :  { %4018 = vsyncpa [#allocation3], 1 }
 0x402   :  { %4020 = vsyncpa [#allocation3 + $0x1], 1 }

</bundles_post_ra>
